<compile_context>
chip_gen: v5e
topology: v5e:2x2
jax: 0.10.0
libtpu: 0.0.40
codegen_flags: <defaults>
</compile_context>

<pallas_src>
import jax
import jax.numpy as jnp
import numpy as np
from jax import lax
from jax.experimental import pallas as pl
from jax.experimental.pallas import tpu as pltpu


COUT_TILE = 128  # lane-dense output-channel tile (keeps weight block small on v7x)


def scale_pred_kernel(x_ref, w_ref, b_ref, o_ref, xpad_ref):
    # x_ref:    (1, H, W, Cin)           un-padded input block (f32)
    # w_ref:    (3, 3, Cin, COUT_TILE)   BN-scale-folded conv weights (bf16)
    # b_ref:    (1, COUT_TILE)           folded BN bias (f32)
    # o_ref:    (1, H*W, COUT_TILE)      lane-dense output slab (doubles as f32 accumulator)
    # xpad_ref: (H+2, W+2, Cin) bf16 VMEM scratch (in-kernel halo padding, single cast)
    H = x_ref.shape[1]
    W = x_ref.shape[2]
    Cin = x_ref.shape[3]
    HW = o_ref.shape[1]
    CT = o_ref.shape[2]

    # Build the zero-padded image in VMEM (no jnp.pad HBM round trip) and cast
    # f32 -> bf16 exactly once here (instead of once per conv tap).
    xpad_ref[...] = jnp.zeros_like(xpad_ref)
    xpad_ref[1:H + 1, 1:W + 1, :] = x_ref[0].astype(xpad_ref.dtype)

    # Initialise the accumulator (the f32 output block) with the folded-BN bias,
    # so the epilogue is only the LeakyReLU vmax.
    o_ref[0] = jnp.broadcast_to(b_ref[...], (HW, CT))

    # 3x3 conv as 9 shifted MXU matmuls: bf16 operands, f32 accumulation.
    for dy in range(3):
        for dx in range(3):
            patch = xpad_ref[dy:dy + H, dx:dx + W, :].reshape(HW, Cin)
            o_ref[0] += jnp.dot(patch, w_ref[dy, dx],
                                preferred_element_type=jnp.float32)

    # LeakyReLU(0.1) as a single vmax.
    y = o_ref[0]
    o_ref[0] = jnp.maximum(y, 0.1 * y)


def scale_prediction(x_nhwc, w_hwio, gamma, beta, running_mean, running_var,
                     eps=1e-5):
    N, H, W, Cin = x_nhwc.shape
    Cout = w_hwio.shape[-1]

    # Fold BatchNorm (inference) into the conv:
    #   scale = gamma / sqrt(var + eps);  w <- w * scale;  bias <- beta - mean*scale
    scale = gamma / jnp.sqrt(running_var + eps)
    bias = beta - running_mean * scale
    w_folded = (w_hwio * scale).astype(jnp.bfloat16)   # bf16 weights for the MXU

    # Lane-dense output: pad Cout up to a multiple of 128 (zero-padded weight /
    # bias channels produce junk-free zero columns that are sliced off after).
    cout_pad = ((Cout + COUT_TILE - 1) // COUT_TILE) * COUT_TILE
    if cout_pad != Cout:
        w_folded = jnp.pad(
            w_folded, ((0, 0), (0, 0), (0, 0), (0, cout_pad - Cout)))
        bias = jnp.pad(bias, (0, cout_pad - Cout))
    bias2d = bias.reshape(1, cout_pad).astype(jnp.float32)

    grid = (N, cout_pad // COUT_TILE)

    out_flat = pl.pallas_call(
        scale_pred_kernel,
        out_shape=jax.ShapeDtypeStruct((N, H * W, cout_pad), jnp.float32),
        grid=grid,
        in_specs=[
            pl.BlockSpec((1, H, W, Cin), lambda n, j: (n, 0, 0, 0)),
            pl.BlockSpec((3, 3, Cin, COUT_TILE), lambda n, j: (0, 0, 0, j)),
            pl.BlockSpec((1, COUT_TILE), lambda n, j: (0, j)),
        ],
        out_specs=pl.BlockSpec((1, H * W, COUT_TILE), lambda n, j: (n, 0, j)),
        scratch_shapes=[
            pltpu.VMEM((H + 2, W + 2, Cin), jnp.bfloat16),
        ],
        compiler_params=pltpu.CompilerParams(
            dimension_semantics=("parallel", "parallel")),
    )(x_nhwc, w_folded, bias2d)

    # Reshape the lane-dense slab back to NHWC and drop padded channels
    # (both are cheap metadata / slice ops in XLA).
    out = out_flat.reshape(N, H, W, cout_pad)
    if cout_pad != Cout:
        out = out[..., :Cout]
    return out.astype(x_nhwc.dtype)


def reference(x_nhwc, w_hwio, gamma, beta, running_mean, running_var, eps=1e-5):
    y = lax.conv_general_dilated(
        x_nhwc, w_hwio, window_strides=(1, 1), padding=((1, 1), (1, 1)),
        dimension_numbers=("NHWC", "HWIO", "NHWC"))
    scale = gamma / jnp.sqrt(running_var + eps)
    bias = beta - running_mean * scale
    y = y * scale + bias
    return jnp.where(y > 0, y, 0.1 * y)


if __name__ == "__main__":
    key = jax.random.PRNGKey(0)
    k_x, k_w, k_g, k_b, k_m, k_v = jax.random.split(key, 6)

    N, Cin, H, W = 2, 4, 16, 16
    Cout = 2 * Cin

    # PyTorch-style NCHW input and OIHW conv weight (bias=False since bn_act=True).
    x_nchw = jax.random.normal(k_x, (N, Cin, H, W), dtype=jnp.float32)
    w_oihw = jax.random.normal(k_w, (Cout, Cin, 3, 3), dtype=jnp.float32) * 0.1

    # BatchNorm2d params / running stats (deterministic, non-trivial).
    gamma = 0.5 + jax.random.uniform(k_g, (Cout,), dtype=jnp.float32)
    beta = 0.1 * jax.random.normal(k_b, (Cout,), dtype=jnp.float32)
    running_mean = 0.1 * jax.random.normal(k_m, (Cout,), dtype=jnp.float32)
    running_var = 0.5 + jax.random.uniform(k_v, (Cout,), dtype=jnp.float32)

    # Kernel layout: NHWC input, HWIO weights.
    x_nhwc = jnp.transpose(x_nchw, (0, 2, 3, 1))
    w_hwio = jnp.transpose(w_oihw, (2, 3, 1, 0))

    out = scale_prediction(x_nhwc, w_hwio, gamma, beta,
                           running_mean, running_var)
    out = jax.block_until_ready(out)

    ref = jax.block_until_ready(
        reference(x_nhwc, w_hwio, gamma, beta, running_mean, running_var))

    assert out.shape == (N, H, W, Cout), out.shape
    # Tolerance loosened vs f32-only path: matmul operands are bf16 (f32 accum).
    np.testing.assert_allclose(np.asarray(out), np.asarray(ref),
                               rtol=3e-2, atol=3e-2)
    print("KERNEL_OK")
</pallas_src>

<mosaic_0001>
module attributes {stable_mosaic.version = 11 : i64} {
  func.func @scale_pred_kernel(%arg0: i32, %arg1: i32, %arg2: memref<1x16x16x4xf32, #tpu.memory_space<vmem>>, %arg3: memref<3x3x4x128xbf16, #tpu.memory_space<vmem>>, %arg4: memref<1x128xf32, #tpu.memory_space<vmem>>, %arg5: memref<1x256x128xf32, #tpu.memory_space<vmem>>, %arg6: memref<18x18x4xbf16, #tpu.memory_space<vmem>>) attributes {dimension_semantics = [#tpu.dimension_semantics<parallel>, #tpu.dimension_semantics<parallel>], iteration_bounds = array<i64: 2, 1>, scalar_prefetch = 0 : i64, scratch_operands = 1 : i64, tpu.core_type = #tpu.core_type<tc>, window_params = [{transform_indices = @transform_0, window_bounds = array<i64: 1, 16, 16, 4>}, {transform_indices = @transform_1, window_bounds = array<i64: 3, 3, 4, 128>}, {transform_indices = @transform_2, window_bounds = array<i64: 1, 128>}, {transform_indices = @transform_3, window_bounds = array<i64: 1, 256, 128>}]} {
    %cst = arith.constant 0.000000e+00 : bf16
    %0 = vector.broadcast %cst : bf16 to vector<18x18x4xbf16>
    %c0 = arith.constant 0 : index
    %c0_0 = arith.constant 0 : index
    %c0_1 = arith.constant 0 : index
    %1 = vector.load %arg6[%c0, %c0_0, %c0_1] : memref<18x18x4xbf16, #tpu.memory_space<vmem>>, vector<18x18x4xbf16>
    tpu.vector_store %arg6[%c0, %c0_0, %c0_1], %0 {strides = array<i32>} : memref<18x18x4xbf16, #tpu.memory_space<vmem>>, vector<18x18x4xbf16>,
    %c0_2 = arith.constant 0 : index
    %c0_3 = arith.constant 0 : index
    %c0_4 = arith.constant 0 : index
    %c0_5 = arith.constant 0 : index
    %2 = vector.load %arg2[%c0_2, %c0_3, %c0_4, %c0_5] : memref<1x16x16x4xf32, #tpu.memory_space<vmem>>, vector<1x16x16x4xf32>
    %3 = vector.shape_cast %2 : vector<1x16x16x4xf32> to vector<16x16x4xf32>
    %4 = arith.truncf %3 : vector<16x16x4xf32> to vector<16x16x4xbf16>
    %c1 = arith.constant 1 : index
    %c1_6 = arith.constant 1 : index
    %c0_7 = arith.constant 0 : index
    %5 = vector.load %arg6[%c1, %c1_6, %c0_7] : memref<18x18x4xbf16, #tpu.memory_space<vmem>>, vector<16x16x4xbf16>
    tpu.vector_store %arg6[%c1, %c1_6, %c0_7], %4 {strides = array<i32>} : memref<18x18x4xbf16, #tpu.memory_space<vmem>>, vector<16x16x4xbf16>,
    %c0_8 = arith.constant 0 : index
    %c0_9 = arith.constant 0 : index
    %6 = vector.load %arg4[%c0_8, %c0_9] : memref<1x128xf32, #tpu.memory_space<vmem>>, vector<1x128xf32>
    %7 = vector.shape_cast %6 : vector<1x128xf32> to vector<1x128xf32>
    %8 = vector.broadcast %7 : vector<1x128xf32> to vector<256x128xf32>
    %c0_10 = arith.constant 0 : index
    %c0_11 = arith.constant 0 : index
    %c0_12 = arith.constant 0 : index
    %9 = vector.load %arg5[%c0_10, %c0_11, %c0_12] : memref<1x256x128xf32, #tpu.memory_space<vmem>>, vector<1x256x128xf32>
    %10 = vector.shape_cast %9 : vector<1x256x128xf32> to vector<256x128xf32>
    %11 = vector.shape_cast %8 : vector<256x128xf32> to vector<1x256x128xf32>
    tpu.vector_store %arg5[%c0_10, %c0_11, %c0_12], %11 {strides = array<i32>} : memref<1x256x128xf32, #tpu.memory_space<vmem>>, vector<1x256x128xf32>,
    %c0_13 = arith.constant 0 : index
    %c0_14 = arith.constant 0 : index
    %c0_15 = arith.constant 0 : index
    %12 = vector.load %arg6[%c0_13, %c0_14, %c0_15] : memref<18x18x4xbf16, #tpu.memory_space<vmem>>, vector<16x16x4xbf16>
    %13 = vector.shape_cast %12 : vector<16x16x4xbf16> to vector<256x4xbf16>
    %c0_16 = arith.constant 0 : index
    %c0_17 = arith.constant 0 : index
    %c0_18 = arith.constant 0 : index
    %14 = vector.load %arg5[%c0_16, %c0_17, %c0_18] : memref<1x256x128xf32, #tpu.memory_space<vmem>>, vector<1x256x128xf32>
    %15 = vector.shape_cast %14 : vector<1x256x128xf32> to vector<256x128xf32>
    %c0_19 = arith.constant 0 : index
    %c0_20 = arith.constant 0 : index
    %c0_21 = arith.constant 0 : index
    %c0_22 = arith.constant 0 : index
    %16 = vector.load %arg3[%c0_19, %c0_20, %c0_21, %c0_22] : memref<3x3x4x128xbf16, #tpu.memory_space<vmem>>, vector<1x1x4x128xbf16>
    %17 = vector.shape_cast %16 : vector<1x1x4x128xbf16> to vector<4x128xbf16>
    %cst_23 = arith.constant dense<0.000000e+00> : vector<256x128xf32>
    %18 = tpu.matmul %13, %17, %cst_23 {dimension_numbers = #tpu.dot_dimension_numbers<[1], [0], [0], [1], [0, 0, 1, 1], [], []>} : vector<256x4xbf16>, vector<4x128xbf16>, vector<256x128xf32> -> vector<256x128xf32>
    %19 = arith.addf %15, %18 : vector<256x128xf32>
    %c0_24 = arith.constant 0 : index
    %c0_25 = arith.constant 0 : index
    %c0_26 = arith.constant 0 : index
    %20 = vector.load %arg5[%c0_24, %c0_25, %c0_26] : memref<1x256x128xf32, #tpu.memory_space<vmem>>, vector<1x256x128xf32>
    %21 = vector.shape_cast %20 : vector<1x256x128xf32> to vector<256x128xf32>
    %22 = vector.shape_cast %19 : vector<256x128xf32> to vector<1x256x128xf32>
    tpu.vector_store %arg5[%c0_24, %c0_25, %c0_26], %22 {strides = array<i32>} : memref<1x256x128xf32, #tpu.memory_space<vmem>>, vector<1x256x128xf32>,
    %c0_27 = arith.constant 0 : index
    %c1_28 = arith.constant 1 : index
    %c0_29 = arith.constant 0 : index
    %23 = vector.load %arg6[%c0_27, %c1_28, %c0_29] : memref<18x18x4xbf16, #tpu.memory_space<vmem>>, vector<16x16x4xbf16>
    %24 = vector.shape_cast %23 : vector<16x16x4xbf16> to vector<256x4xbf16>
    %c0_30 = arith.constant 0 : index
    %c0_31 = arith.constant 0 : index
    %c0_32 = arith.constant 0 : index
    %25 = vector.load %arg5[%c0_30, %c0_31, %c0_32] : memref<1x256x128xf32, #tpu.memory_space<vmem>>, vector<1x256x128xf32>
    %26 = vector.shape_cast %25 : vector<1x256x128xf32> to vector<256x128xf32>
    %c0_33 = arith.constant 0 : index
    %c1_34 = arith.constant 1 : index
    %c0_35 = arith.constant 0 : index
    %c0_36 = arith.constant 0 : index
    %27 = vector.load %arg3[%c0_33, %c1_34, %c0_35, %c0_36] : memref<3x3x4x128xbf16, #tpu.memory_space<vmem>>, vector<1x1x4x128xbf16>
    %28 = vector.shape_cast %27 : vector<1x1x4x128xbf16> to vector<4x128xbf16>
    %cst_37 = arith.constant dense<0.000000e+00> : vector<256x128xf32>
    %29 = tpu.matmul %24, %28, %cst_37 {dimension_numbers = #tpu.dot_dimension_numbers<[1], [0], [0], [1], [0, 0, 1, 1], [], []>} : vector<256x4xbf16>, vector<4x128xbf16>, vector<256x128xf32> -> vector<256x128xf32>
    %30 = arith.addf %26, %29 : vector<256x128xf32>
    %c0_38 = arith.constant 0 : index
    %c0_39 = arith.constant 0 : index
    %c0_40 = arith.constant 0 : index
    %31 = vector.load %arg5[%c0_38, %c0_39, %c0_40] : memref<1x256x128xf32, #tpu.memory_space<vmem>>, vector<1x256x128xf32>
    %32 = vector.shape_cast %31 : vector<1x256x128xf32> to vector<256x128xf32>
    %33 = vector.shape_cast %30 : vector<256x128xf32> to vector<1x256x128xf32>
    tpu.vector_store %arg5[%c0_38, %c0_39, %c0_40], %33 {strides = array<i32>} : memref<1x256x128xf32, #tpu.memory_space<vmem>>, vector<1x256x128xf32>,
    %c0_41 = arith.constant 0 : index
    %c2 = arith.constant 2 : index
    %c0_42 = arith.constant 0 : index
    %34 = vector.load %arg6[%c0_41, %c2, %c0_42] : memref<18x18x4xbf16, #tpu.memory_space<vmem>>, vector<16x16x4xbf16>
    %35 = vector.shape_cast %34 : vector<16x16x4xbf16> to vector<256x4xbf16>
    %c0_43 = arith.constant 0 : index
    %c0_44 = arith.constant 0 : index
    %c0_45 = arith.constant 0 : index
    %36 = vector.load %arg5[%c0_43, %c0_44, %c0_45] : memref<1x256x128xf32, #tpu.memory_space<vmem>>, vector<1x256x128xf32>
    %37 = vector.shape_cast %36 : vector<1x256x128xf32> to vector<256x128xf32>
    %c0_46 = arith.constant 0 : index
    %c2_47 = arith.constant 2 : index
    %c0_48 = arith.constant 0 : index
    %c0_49 = arith.constant 0 : index
    %38 = vector.load %arg3[%c0_46, %c2_47, %c0_48, %c0_49] : memref<3x3x4x128xbf16, #tpu.memory_space<vmem>>, vector<1x1x4x128xbf16>
    %39 = vector.shape_cast %38 : vector<1x1x4x128xbf16> to vector<4x128xbf16>
    %cst_50 = arith.constant dense<0.000000e+00> : vector<256x128xf32>
    %40 = tpu.matmul %35, %39, %cst_50 {dimension_numbers = #tpu.dot_dimension_numbers<[1], [0], [0], [1], [0, 0, 1, 1], [], []>} : vector<256x4xbf16>, vector<4x128xbf16>, vector<256x128xf32> -> vector<256x128xf32>
    %41 = arith.addf %37, %40 : vector<256x128xf32>
    %c0_51 = arith.constant 0 : index
    %c0_52 = arith.constant 0 : index
    %c0_53 = arith.constant 0 : index
    %42 = vector.load %arg5[%c0_51, %c0_52, %c0_53] : memref<1x256x128xf32, #tpu.memory_space<vmem>>, vector<1x256x128xf32>
    %43 = vector.shape_cast %42 : vector<1x256x128xf32> to vector<256x128xf32>
    %44 = vector.shape_cast %41 : vector<256x128xf32> to vector<1x256x128xf32>
    tpu.vector_store %arg5[%c0_51, %c0_52, %c0_53], %44 {strides = array<i32>} : memref<1x256x128xf32, #tpu.memory_space<vmem>>, vector<1x256x128xf32>,
    %c1_54 = arith.constant 1 : index
    %c0_55 = arith.constant 0 : index
    %c0_56 = arith.constant 0 : index
    %45 = vector.load %arg6[%c1_54, %c0_55, %c0_56] : memref<18x18x4xbf16, #tpu.memory_space<vmem>>, vector<16x16x4xbf16>
    %46 = vector.shape_cast %45 : vector<16x16x4xbf16> to vector<256x4xbf16>
    %c0_57 = arith.constant 0 : index
    %c0_58 = arith.constant 0 : index
    %c0_59 = arith.constant 0 : index
    %47 = vector.load %arg5[%c0_57, %c0_58, %c0_59] : memref<1x256x128xf32, #tpu.memory_space<vmem>>, vector<1x256x128xf32>
    %48 = vector.shape_cast %47 : vector<1x256x128xf32> to vector<256x128xf32>
    %c1_60 = arith.constant 1 : index
    %c0_61 = arith.constant 0 : index
    %c0_62 = arith.constant 0 : index
    %c0_63 = arith.constant 0 : index
    %49 = vector.load %arg3[%c1_60, %c0_61, %c0_62, %c0_63] : memref<3x3x4x128xbf16, #tpu.memory_space<vmem>>, vector<1x1x4x128xbf16>
    %50 = vector.shape_cast %49 : vector<1x1x4x128xbf16> to vector<4x128xbf16>
    %cst_64 = arith.constant dense<0.000000e+00> : vector<256x128xf32>
    %51 = tpu.matmul %46, %50, %cst_64 {dimension_numbers = #tpu.dot_dimension_numbers<[1], [0], [0], [1], [0, 0, 1, 1], [], []>} : vector<256x4xbf16>, vector<4x128xbf16>, vector<256x128xf32> -> vector<256x128xf32>
    %52 = arith.addf %48, %51 : vector<256x128xf32>
    %c0_65 = arith.constant 0 : index
    %c0_66 = arith.constant 0 : index
    %c0_67 = arith.constant 0 : index
    %53 = vector.load %arg5[%c0_65, %c0_66, %c0_67] : memref<1x256x128xf32, #tpu.memory_space<vmem>>, vector<1x256x128xf32>
    %54 = vector.shape_cast %53 : vector<1x256x128xf32> to vector<256x128xf32>
    %55 = vector.shape_cast %52 : vector<256x128xf32> to vector<1x256x128xf32>
    tpu.vector_store %arg5[%c0_65, %c0_66, %c0_67], %55 {strides = array<i32>} : memref<1x256x128xf32, #tpu.memory_space<vmem>>, vector<1x256x128xf32>,
    %c1_68 = arith.constant 1 : index
    %c1_69 = arith.constant 1 : index
    %c0_70 = arith.constant 0 : index
    %56 = vector.load %arg6[%c1_68, %c1_69, %c0_70] : memref<18x18x4xbf16, #tpu.memory_space<vmem>>, vector<16x16x4xbf16>
    %57 = vector.shape_cast %56 : vector<16x16x4xbf16> to vector<256x4xbf16>
    %c0_71 = arith.constant 0 : index
    %c0_72 = arith.constant 0 : index
    %c0_73 = arith.constant 0 : index
    %58 = vector.load %arg5[%c0_71, %c0_72, %c0_73] : memref<1x256x128xf32, #tpu.memory_space<vmem>>, vector<1x256x128xf32>
    %59 = vector.shape_cast %58 : vector<1x256x128xf32> to vector<256x128xf32>
    %c1_74 = arith.constant 1 : index
    %c1_75 = arith.constant 1 : index
    %c0_76 = arith.constant 0 : index
    %c0_77 = arith.constant 0 : index
    %60 = vector.load %arg3[%c1_74, %c1_75, %c0_76, %c0_77] : memref<3x3x4x128xbf16, #tpu.memory_space<vmem>>, vector<1x1x4x128xbf16>
    %61 = vector.shape_cast %60 : vector<1x1x4x128xbf16> to vector<4x128xbf16>
    %cst_78 = arith.constant dense<0.000000e+00> : vector<256x128xf32>
    %62 = tpu.matmul %57, %61, %cst_78 {dimension_numbers = #tpu.dot_dimension_numbers<[1], [0], [0], [1], [0, 0, 1, 1], [], []>} : vector<256x4xbf16>, vector<4x128xbf16>, vector<256x128xf32> -> vector<256x128xf32>
    %63 = arith.addf %59, %62 : vector<256x128xf32>
    %c0_79 = arith.constant 0 : index
    %c0_80 = arith.constant 0 : index
    %c0_81 = arith.constant 0 : index
    %64 = vector.load %arg5[%c0_79, %c0_80, %c0_81] : memref<1x256x128xf32, #tpu.memory_space<vmem>>, vector<1x256x128xf32>
    %65 = vector.shape_cast %64 : vector<1x256x128xf32> to vector<256x128xf32>
    %66 = vector.shape_cast %63 : vector<256x128xf32> to vector<1x256x128xf32>
    tpu.vector_store %arg5[%c0_79, %c0_80, %c0_81], %66 {strides = array<i32>} : memref<1x256x128xf32, #tpu.memory_space<vmem>>, vector<1x256x128xf32>,
    %c1_82 = arith.constant 1 : index
    %c2_83 = arith.constant 2 : index
    %c0_84 = arith.constant 0 : index
    %67 = vector.load %arg6[%c1_82, %c2_83, %c0_84] : memref<18x18x4xbf16, #tpu.memory_space<vmem>>, vector<16x16x4xbf16>
    %68 = vector.shape_cast %67 : vector<16x16x4xbf16> to vector<256x4xbf16>
    %c0_85 = arith.constant 0 : index
    %c0_86 = arith.constant 0 : index
    %c0_87 = arith.constant 0 : index
    %69 = vector.load %arg5[%c0_85, %c0_86, %c0_87] : memref<1x256x128xf32, #tpu.memory_space<vmem>>, vector<1x256x128xf32>
    %70 = vector.shape_cast %69 : vector<1x256x128xf32> to vector<256x128xf32>
    %c1_88 = arith.constant 1 : index
    %c2_89 = arith.constant 2 : index
    %c0_90 = arith.constant 0 : index
    %c0_91 = arith.constant 0 : index
    %71 = vector.load %arg3[%c1_88, %c2_89, %c0_90, %c0_91] : memref<3x3x4x128xbf16, #tpu.memory_space<vmem>>, vector<1x1x4x128xbf16>
    %72 = vector.shape_cast %71 : vector<1x1x4x128xbf16> to vector<4x128xbf16>
    %cst_92 = arith.constant dense<0.000000e+00> : vector<256x128xf32>
    %73 = tpu.matmul %68, %72, %cst_92 {dimension_numbers = #tpu.dot_dimension_numbers<[1], [0], [0], [1], [0, 0, 1, 1], [], []>} : vector<256x4xbf16>, vector<4x128xbf16>, vector<256x128xf32> -> vector<256x128xf32>
    %74 = arith.addf %70, %73 : vector<256x128xf32>
    %c0_93 = arith.constant 0 : index
    %c0_94 = arith.constant 0 : index
    %c0_95 = arith.constant 0 : index
    %75 = vector.load %arg5[%c0_93, %c0_94, %c0_95] : memref<1x256x128xf32, #tpu.memory_space<vmem>>, vector<1x256x128xf32>
    %76 = vector.shape_cast %75 : vector<1x256x128xf32> to vector<256x128xf32>
    %77 = vector.shape_cast %74 : vector<256x128xf32> to vector<1x256x128xf32>
    tpu.vector_store %arg5[%c0_93, %c0_94, %c0_95], %77 {strides = array<i32>} : memref<1x256x128xf32, #tpu.memory_space<vmem>>, vector<1x256x128xf32>,
    %c2_96 = arith.constant 2 : index
    %c0_97 = arith.constant 0 : index
    %c0_98 = arith.constant 0 : index
    %78 = vector.load %arg6[%c2_96, %c0_97, %c0_98] : memref<18x18x4xbf16, #tpu.memory_space<vmem>>, vector<16x16x4xbf16>
    %79 = vector.shape_cast %78 : vector<16x16x4xbf16> to vector<256x4xbf16>
    %c0_99 = arith.constant 0 : index
    %c0_100 = arith.constant 0 : index
    %c0_101 = arith.constant 0 : index
    %80 = vector.load %arg5[%c0_99, %c0_100, %c0_101] : memref<1x256x128xf32, #tpu.memory_space<vmem>>, vector<1x256x128xf32>
    %81 = vector.shape_cast %80 : vector<1x256x128xf32> to vector<256x128xf32>
    %c2_102 = arith.constant 2 : index
    %c0_103 = arith.constant 0 : index
    %c0_104 = arith.constant 0 : index
    %c0_105 = arith.constant 0 : index
    %82 = vector.load %arg3[%c2_102, %c0_103, %c0_104, %c0_105] : memref<3x3x4x128xbf16, #tpu.memory_space<vmem>>, vector<1x1x4x128xbf16>
    %83 = vector.shape_cast %82 : vector<1x1x4x128xbf16> to vector<4x128xbf16>
    %cst_106 = arith.constant dense<0.000000e+00> : vector<256x128xf32>
    %84 = tpu.matmul %79, %83, %cst_106 {dimension_numbers = #tpu.dot_dimension_numbers<[1], [0], [0], [1], [0, 0, 1, 1], [], []>} : vector<256x4xbf16>, vector<4x128xbf16>, vector<256x128xf32> -> vector<256x128xf32>
    %85 = arith.addf %81, %84 : vector<256x128xf32>
    %c0_107 = arith.constant 0 : index
    %c0_108 = arith.constant 0 : index
    %c0_109 = arith.constant 0 : index
    %86 = vector.load %arg5[%c0_107, %c0_108, %c0_109] : memref<1x256x128xf32, #tpu.memory_space<vmem>>, vector<1x256x128xf32>
    %87 = vector.shape_cast %86 : vector<1x256x128xf32> to vector<256x128xf32>
    %88 = vector.shape_cast %85 : vector<256x128xf32> to vector<1x256x128xf32>
    tpu.vector_store %arg5[%c0_107, %c0_108, %c0_109], %88 {strides = array<i32>} : memref<1x256x128xf32, #tpu.memory_space<vmem>>, vector<1x256x128xf32>,
    %c2_110 = arith.constant 2 : index
    %c1_111 = arith.constant 1 : index
    %c0_112 = arith.constant 0 : index
    %89 = vector.load %arg6[%c2_110, %c1_111, %c0_112] : memref<18x18x4xbf16, #tpu.memory_space<vmem>>, vector<16x16x4xbf16>
    %90 = vector.shape_cast %89 : vector<16x16x4xbf16> to vector<256x4xbf16>
    %c0_113 = arith.constant 0 : index
    %c0_114 = arith.constant 0 : index
    %c0_115 = arith.constant 0 : index
    %91 = vector.load %arg5[%c0_113, %c0_114, %c0_115] : memref<1x256x128xf32, #tpu.memory_space<vmem>>, vector<1x256x128xf32>
    %92 = vector.shape_cast %91 : vector<1x256x128xf32> to vector<256x128xf32>
    %c2_116 = arith.constant 2 : index
    %c1_117 = arith.constant 1 : index
    %c0_118 = arith.constant 0 : index
    %c0_119 = arith.constant 0 : index
    %93 = vector.load %arg3[%c2_116, %c1_117, %c0_118, %c0_119] : memref<3x3x4x128xbf16, #tpu.memory_space<vmem>>, vector<1x1x4x128xbf16>
    %94 = vector.shape_cast %93 : vector<1x1x4x128xbf16> to vector<4x128xbf16>
    %cst_120 = arith.constant dense<0.000000e+00> : vector<256x128xf32>
    %95 = tpu.matmul %90, %94, %cst_120 {dimension_numbers = #tpu.dot_dimension_numbers<[1], [0], [0], [1], [0, 0, 1, 1], [], []>} : vector<256x4xbf16>, vector<4x128xbf16>, vector<256x128xf32> -> vector<256x128xf32>
    %96 = arith.addf %92, %95 : vector<256x128xf32>
    %c0_121 = arith.constant 0 : index
    %c0_122 = arith.constant 0 : index
    %c0_123 = arith.constant 0 : index
    %97 = vector.load %arg5[%c0_121, %c0_122, %c0_123] : memref<1x256x128xf32, #tpu.memory_space<vmem>>, vector<1x256x128xf32>
    %98 = vector.shape_cast %97 : vector<1x256x128xf32> to vector<256x128xf32>
    %99 = vector.shape_cast %96 : vector<256x128xf32> to vector<1x256x128xf32>
    tpu.vector_store %arg5[%c0_121, %c0_122, %c0_123], %99 {strides = array<i32>} : memref<1x256x128xf32, #tpu.memory_space<vmem>>, vector<1x256x128xf32>,
    %c2_124 = arith.constant 2 : index
    %c2_125 = arith.constant 2 : index
    %c0_126 = arith.constant 0 : index
    %100 = vector.load %arg6[%c2_124, %c2_125, %c0_126] : memref<18x18x4xbf16, #tpu.memory_space<vmem>>, vector<16x16x4xbf16>
    %101 = vector.shape_cast %100 : vector<16x16x4xbf16> to vector<256x4xbf16>
    %c0_127 = arith.constant 0 : index
    %c0_128 = arith.constant 0 : index
    %c0_129 = arith.constant 0 : index
    %102 = vector.load %arg5[%c0_127, %c0_128, %c0_129] : memref<1x256x128xf32, #tpu.memory_space<vmem>>, vector<1x256x128xf32>
    %103 = vector.shape_cast %102 : vector<1x256x128xf32> to vector<256x128xf32>
    %c2_130 = arith.constant 2 : index
    %c2_131 = arith.constant 2 : index
    %c0_132 = arith.constant 0 : index
    %c0_133 = arith.constant 0 : index
    %104 = vector.load %arg3[%c2_130, %c2_131, %c0_132, %c0_133] : memref<3x3x4x128xbf16, #tpu.memory_space<vmem>>, vector<1x1x4x128xbf16>
    %105 = vector.shape_cast %104 : vector<1x1x4x128xbf16> to vector<4x128xbf16>
    %cst_134 = arith.constant dense<0.000000e+00> : vector<256x128xf32>
    %106 = tpu.matmul %101, %105, %cst_134 {dimension_numbers = #tpu.dot_dimension_numbers<[1], [0], [0], [1], [0, 0, 1, 1], [], []>} : vector<256x4xbf16>, vector<4x128xbf16>, vector<256x128xf32> -> vector<256x128xf32>
    %107 = arith.addf %103, %106 : vector<256x128xf32>
    %c0_135 = arith.constant 0 : index
    %c0_136 = arith.constant 0 : index
    %c0_137 = arith.constant 0 : index
    %108 = vector.load %arg5[%c0_135, %c0_136, %c0_137] : memref<1x256x128xf32, #tpu.memory_space<vmem>>, vector<1x256x128xf32>
    %109 = vector.shape_cast %108 : vector<1x256x128xf32> to vector<256x128xf32>
    %110 = vector.shape_cast %107 : vector<256x128xf32> to vector<1x256x128xf32>
    tpu.vector_store %arg5[%c0_135, %c0_136, %c0_137], %110 {strides = array<i32>} : memref<1x256x128xf32, #tpu.memory_space<vmem>>, vector<1x256x128xf32>,
    %c0_138 = arith.constant 0 : index
    %c0_139 = arith.constant 0 : index
    %c0_140 = arith.constant 0 : index
    %111 = vector.load %arg5[%c0_138, %c0_139, %c0_140] : memref<1x256x128xf32, #tpu.memory_space<vmem>>, vector<1x256x128xf32>
    %112 = vector.shape_cast %111 : vector<1x256x128xf32> to vector<256x128xf32>
    %cst_141 = arith.constant 1.000000e-01 : f32
    %113 = vector.broadcast %cst_141 : f32 to vector<256x128xf32>
    %114 = arith.mulf %113, %112 : vector<256x128xf32>
    %115 = arith.maximumf %112, %114 : vector<256x128xf32>
    %c0_142 = arith.constant 0 : index
    %c0_143 = arith.constant 0 : index
    %c0_144 = arith.constant 0 : index
    %116 = vector.load %arg5[%c0_142, %c0_143, %c0_144] : memref<1x256x128xf32, #tpu.memory_space<vmem>>, vector<1x256x128xf32>
    %117 = vector.shape_cast %116 : vector<1x256x128xf32> to vector<256x128xf32>
    %118 = vector.shape_cast %115 : vector<256x128xf32> to vector<1x256x128xf32>
    tpu.vector_store %arg5[%c0_142, %c0_143, %c0_144], %118 {strides = array<i32>} : memref<1x256x128xf32, #tpu.memory_space<vmem>>, vector<1x256x128xf32>,
    return
  }
  func.func @transform_0(%arg0: i32, %arg1: i32) -> (i32, i32, i32, i32) {
    %c0_i32 = arith.constant 0 : i32
    %c0_i32_0 = arith.constant 0 : i32
    %c0_i32_1 = arith.constant 0 : i32
    %c0_i32_2 = arith.constant 0 : i32
    return %arg0, %c0_i32, %c0_i32_0, %c0_i32_1 : i32, i32, i32, i32
  }
  func.func @transform_1(%arg0: i32, %arg1: i32) -> (i32, i32, i32, i32) {
    %c0_i32 = arith.constant 0 : i32
    %c0_i32_0 = arith.constant 0 : i32
    %c0_i32_1 = arith.constant 0 : i32
    %c0_i32_2 = arith.constant 0 : i32
    return %c0_i32, %c0_i32_0, %c0_i32_1, %arg1 : i32, i32, i32, i32
  }
  func.func @transform_2(%arg0: i32, %arg1: i32) -> (i32, i32) {
    %c0_i32 = arith.constant 0 : i32
    %c0_i32_0 = arith.constant 0 : i32
    return %c0_i32, %arg1 : i32, i32
  }
  func.func @transform_3(%arg0: i32, %arg1: i32) -> (i32, i32, i32) {
    %c0_i32 = arith.constant 0 : i32
    %c0_i32_0 = arith.constant 0 : i32
    return %arg0, %c0_i32, %arg1 : i32, i32, i32
  }
}

</mosaic_0001>

<bundles_post_ra>
// kernel: tpu_custom_call.1
= control target key start
LH: loop header
LB: loop body
LE: loop exit
PB: predicated region body
PF: predicated region fallthrough
CT: control target
= control target key end

     0   :  { %8 = vsyncpa [#allocation4], 0  ;;  %s8050_s0 = inlined_call_operand.vmem [shape: f32[2,16,16,4], index: 0, kind: input, shape index: {}]   ;;  %s8051_s1 = inlined_call_operand.vmem [shape: bf16[3,3,4,128], index: 1, kind: input, shape index: {}]   ;;  %s8052_s2 = inlined_call_operand.vmem [shape: f32[1,128], index: 2, kind: input, shape index: {}]   ;;  %s8053_s3 = inlined_call_operand.hbm [shape: f32[2,256,128], index: 3, kind: output, shape index: {}]  }
   0x1   :  { %10 = vsyncpa [#allocation4 + $0x1], 0  ;;  %s6373_s12 = smov 0   ;;  %s6375_s13 = smov 0  }
   0x2   :  { %s6377_s14 = smov 0   ;;  %s6379_s15 = smov 0  }
   0x3   :  { %s6381_s16 = smov 0   ;;  %s6383_s17 = smov 0  }
   0x4 LB: > { %s5750_s18 = sadd.s32 4294967295, %s6348_s17   ;;  %s5751_s19 = sadd.s32 4294967294, %s6348_s17   ;;  %s6348_s17 = sphi %s6383_s17, %s16_s17   ;;  %s6344_s16 = sphi %s6381_s16, %s8070_s16   ;;  %s6340_s15 = sphi %s6379_s15, %s8069_s15   ;;  %s6336_s14 = sphi %s6377_s14, %s8068_s14   ;;  %s6332_s13 = sphi %s6375_s13, %s8067_s13   ;;  %s6328_s12 = sphi %s6373_s12, %s8066_s12  }
   0x5   : > { %s28_s20 = sadd.s32 1, %s6344_s16  ;;  %s115_s21 = sadd.s32 1, %s6336_s14 }
   0x6   : > { %p30_p0 = scmp.ge.s32.totalorder %s28_s20, 2  ;;  %p125_p1 = scmp.ne.s32.totalorder %s6336_s14, %s6332_s13 }
   0x7   : > { %p126_p2 = scmp.eq.s32.totalorder %s5750_s18, 1  ;;  %p131_p3 = scmp.ne.s32.totalorder %s6332_s13, %s6328_s12 }
   0x8   : > { %s8072_s20 = smov (%p30_p0, %s28_s20), 0  ;;  %p132_p5 = scmp.eq.s32.totalorder %s5751_s19, 1 }
   0x9   : > { %p6413_p4 = por %p126_p2, %p125_p1  ;;  %s110_s23 = ssub.s32 %s6344_s16, %s8072_s20 }
   0xa   : > { %p5756_p6 = scmp.ge.s32.totalorder %s6348_s17, 1  ;;  %p113_p7 = scmp.eq.s32.totalorder %s110_s23, 0 }
   0xb   : > { %p6420_p8 = por %p132_p5, %p131_p3  ;;  %p171_p9 = scmp.lt.s32.totalorder %s6348_s17, 3 }
   0xc   : > { %s6426_s25 = scalar_select %p113_p7, %s6336_s14, %s115_s21  }
   0xd   : > { %p172_p10 = pnand %p5756_p6, %p171_p9 }
   0xe   : > { %p202_p11 = scmp.lt.s32.totalorder (!%p172_p10), %s6340_s15, 1  ;;  %s199_s6 = sand.u32 (!%p172_p10), 1, %s6332_s13  }
   0xf   : > { %175 = sbr.rel (%p172_p10) target bundleno = 800 (0x320), region = 32  ;;  %s5757_s7 = sshll.u32 (!%p172_p10), %s199_s6, 8 }
  0x10   : > { %s6958_s10 = scalar_lea.vmem (!%p172_p10), [#allocation3], %s5757_s7  ;;  %s6290_s7 = scalar_lea.hbm (!%p172_p10), %s8053_s3, 512 }
  0x11   : > { %s5648_s26 = sshll.u32 (!%p172_p10), %s6958_s10, 4  ;;  %s5649_s26 = int_to_ptr.vmem [resolvable:$true] %s5648_s26 }
  0x14   : > { %v876_v0 = vld [vmem:[%s8051_s1] sm:$0x3]  ;;  %vm1006_vm0 = vcmask 1041408   ;;  %vm215_vm1 = vcmask 27648   ;;  %vm218_vm2 = vcmask 24576   ;;  %v6350_v2 = vmov 0  }
  0x15   : > { %v1008_v1 = vsel %vm1006_vm0, %v876_v0, 0  ;;  %229 = vst.msk [vmem:[#allocation2 + $0x30] sm:$0xf] %vm215_vm1, %v6350_v2  ;;  %vm335_vm3 = vsmask.f32 256  ;;  %s203_s28 = scalar_select %p202_p11, %s6340_s15, 1 }
  0x16   : > { %6207 = vmatpush.bf16.msra.mxu1 %v1008_v1  ;;  %6208 = vmatpush.bf16.msra.mxu2 %v1008_v1  ;;  %230 = vst.msk [vmem:[#allocation2 + $0x34] sm:$0xf] %vm215_vm1, %v6350_v2  ;;  %vm6440_vm4 = vmand %vm218_vm2, %vm335_vm3  ;;  %vm336_vm5 = vsmask.f32 4368  ;;  %vm660_vm6 = vsmask.f32 7938 }
  0x17   : > { %216 = vst.msk [vmem:[#allocation2] sm:$0xf] %vm215_vm1, %v6350_v2  ;;  %6209 = vmatpush.bf16.msra.mxu3 %v1008_v1  ;;  %1017 = vmatpush.bf16.msra.mxu0 %v1008_v1  ;;  %s6157_s29 = sshll.u32 %s203_s28, 8  ;;  %vm6468_vm7 = vmor %vm335_vm3, %vm336_vm5  ;;  %vm957_vm9 = vcmask 31744   ;;  %v5840_v38 = vld [vmem:[%s8051_s1 + $0x2] sm:$0x3] }
  0x18   : > { %217 = vst.msk [vmem:[#allocation2 + $0x4] sm:$0xf] %vm215_vm1, %v6350_v2  ;;  %s6451_s5 = scalar_lea.vmem %s8050_s0, %s6157_s29  ;;  %vm6477_vm8 = vmand %vm215_vm1, %vm660_vm6  ;;  %v5873_v39 = vld [vmem:[%s8051_s1 + $0x4] sm:$0x3]  ;;  %v1729_v43 = vsel %vm1006_vm0, %v5840_v38, 0  ;;  %vm1980_vm13 = vcmask 1042432  }
  0x19   : > { %219 = vst.msk [vmem:[#allocation2 + $0x8] sm:$0x1] %vm218_vm2, %v6350_v2  ;;  %v277_v4 = vld [vmem:[%s6451_s5 + $0x30] sm:$0xff]  ;;  %v278_v5 = vld [vmem:[%s6451_s5 + $0x38] sm:$0xff]  ;;  %v279_v36 = vld [vmem:[%s6451_s5 + $0x40] sm:$0xff]  ;;  %v2226_v44 = vsel %vm1006_vm0, %v5873_v39, 0 }
  0x1a   : > { %220 = vst.msk [vmem:[#allocation2 + $0xc] sm:$0xf] %vm215_vm1, %v6350_v2  ;;  %v309_v6 = vpack.c.bf16 %v277_v4, %v277_v4  ;;  %v310_v7 = vpack.c.bf16 %v278_v5, %v278_v5  ;;  %v285_v23 = vld [vmem:[%s6451_s5 + $0x70] sm:$0xff]  ;;  %v286_v24 = vld [vmem:[%s6451_s5 + $0x78] sm:$0xff]  ;;  %v280_v37 = vld [vmem:[%s6451_s5 + $0x48] sm:$0xff]  ;;  %v311_v40 = vpack.c.bf16 %v279_v36, %v279_v36  ;;  %1738 = vmatpush.bf16.msrb.mxu1 %v1729_v43  ;;  %vm1981_vm14 = vcmask 1046532  }
  0x1b   : > { %221 = vst.msk [vmem:[#allocation2 + $0x10] sm:$0xf] %vm215_vm1, %v6350_v2  ;;  %v293_v25 = vld [vmem:[%s6451_s5 + $0xb0] sm:$0xff]  ;;  %v294_v26 = vld [vmem:[%s6451_s5 + $0xb8] sm:$0xff]  ;;  %v6522_v27 = vpack.c.bf16 %v285_v23, %v285_v23  ;;  %v318_v28 = vpack.c.bf16 %v286_v24, %v286_v24  ;;  %v312_v41 = vpack.c.bf16 %v280_v37, %v280_v37  ;;  %v287_v45 = vld [vmem:[%s6451_s5 + $0x80] sm:$0xff]  ;;  %2235 = vmatpush.bf16.msrb.mxu2 %v2226_v44 }
  0x1c   : > { %222 = vst.msk [vmem:[#allocation2 + $0x14] sm:$0x1] %vm218_vm2, %v6350_v2  ;;  %v390_v8 = vshrl.u32 %v309_v6, 16  ;;  %v393_v9 = vshll.u32 %v309_v6, 16  ;;  %v398_v10 = vshrl.u32 %v310_v7, 16  ;;  %v401_v11 = vshll.u32 %v310_v7, 16  ;;  %vm6877_vm15 = vmor %vm1980_vm13, %vm1981_vm14 }
  0x1d   : > { %223 = vst.msk [vmem:[#allocation2 + $0x18] sm:$0xf] %vm215_vm1, %v6350_v2  ;;  %v685_v16 = vld [vmem:[#allocation2 + $0x30] sm:$0xf]  ;;  %v6528_v29 = vpack.c.bf16 %v293_v25, %v293_v25  ;;  %v326_v30 = vpack.c.bf16 %v294_v26, %v294_v26  ;;  %v458_v31 = vshrl.u32 %v6522_v27, 16  ;;  %v466_v32 = vshrl.u32 %v318_v28, 16 }
  0x1e   : > { %224 = vst.msk [vmem:[#allocation2 + $0x1c] sm:$0xf] %vm215_vm1, %v6350_v2  ;;  %v392_v13 = vrot.slane %v390_v8, 7  ;;  %v6472_v14 = vrot.slane %v398_v10, 7  ;;  %v469_v33 = vshll.u32 %v318_v28, 16  ;;  %v407_v48 = vshrl.u32 %v311_v40, 16 }
  0x1f   : > { %225 = vst.msk [vmem:[#allocation2 + $0x20] sm:$0x1] %vm218_vm2, %v6350_v2  ;;  %v526_v34 = vshrl.u32 %v6528_v29, 16  ;;  %v534_v35 = vshrl.u32 %v326_v30, 16  ;;  %v6552_v42 = vrot.slane %v458_v31, 7  ;;  %v6559_v46 = vrot.slane %v466_v32, 7 }
  0x20   : > { %226 = vst.msk [vmem:[#allocation2 + $0x24] sm:$0xf] %vm215_vm1, %v6350_v2  ;;  %v395_v17 = vor.u32 %v393_v9, %v392_v13  ;;  %v396_v18 = vrot.slane %v392_v13, 4  ;;  %v403_v19 = vor.u32 %v401_v11, %v6472_v14  ;;  %v5890_v47 = vld [vmem:[%s8051_s1 + $0x6] sm:$0x3]  ;;  %v319_v49 = vpack.c.bf16 %v287_v45, %v287_v45  ;;  %v288_v53 = vld [vmem:[%s6451_s5 + $0x88] sm:$0xff] }
  0x21   : > { %227 = vst.msk [vmem:[#allocation2 + $0x28] sm:$0xf] %vm215_vm1, %v6350_v2  ;;  %v528_v50 = vrot.slane %v526_v34, 7  ;;  %v2576_v51 = vsel %vm1006_vm0, %v5890_v47, 0  ;;  %v415_v52 = vshrl.u32 %v312_v41, 16  ;;  %v6570_v54 = vrot.slane %v534_v35, 7 }
  0x22   : > { %228 = vst.msk [vmem:[#allocation2 + $0x2c] sm:$0x1] %vm218_vm2, %v6350_v2  ;;  %v404_v20 = vsel %vm6468_vm7, %v396_v18, %v403_v19  ;;  %v686_v21 = vsel %vm6477_vm8, %v395_v17, %v685_v16  ;;  %v537_v55 = vshll.u32 %v326_v30, 16  ;;  %2585 = vmatpush.bf16.msrb.mxu3 %v2576_v51  ;;  %v320_v56 = vpack.c.bf16 %v288_v53, %v288_v53  ;;  %v6158_v1 = vld [vmem:[#allocation2] sm:$0xff]  ;;  %v296_v7 = vld [vmem:[%s6451_s5 + $0xc8] sm:$0xff] }
  0x23   : > { %231 = vst.msk [vmem:[#allocation2 + $0x38] sm:$0x1] %vm218_vm2, %v6350_v2  ;;  %v475_v57 = vshrl.u32 %v319_v49, 16  ;;  %v461_v58 = vshll.u32 %v6522_v27, 16  ;;  %v529_v59 = vshll.u32 %v6528_v29, 16  ;;  %v410_v60 = vshll.u32 %v311_v40, 16  ;;  %5824 = vmatmul.msk.bf16.vlgmr.msra.gmra.mxu0 %vm957_vm9, %v6158_v1 }
  0x24   : > { %687 = vst [vmem:[#allocation2 + $0x30] sm:$0xf] %v686_v21  ;;  %v418_v61 = vshll.u32 %v312_v41, 16  ;;  %v409_v62 = vrot.slane %v407_v48, 7  ;;  %v6578_v63 = vrot.slane %v415_v52, 7  ;;  %v483_v0 = vshrl.u32 %v320_v56, 16 }
  0x25   : > { %688 = vst.msk [vmem:[#allocation2 + $0x34] sm:$0xf] %vm215_vm1, %v404_v20  ;;  %v6582_v4 = vrot.slane %v475_v57, 7  ;;  %v478_v5 = vshll.u32 %v319_v49, 16  ;;  %v295_v6 = vld [vmem:[%s6451_s5 + $0xc0] sm:$0xff]  ;;  %v464_v8 = vrot.slane %v6552_v42, 4  ;;  %v471_v9 = vor.u32 %v469_v33, %v6559_v46 }
  0x26   : > { %232 = vst.msk [vmem:[#allocation2 + $0x3c] sm:$0xf] %vm215_vm1, %v6350_v2  ;;  %v532_v10 = vrot.slane %v528_v50, 4  ;;  %v539_v11 = vor.u32 %v537_v55, %v6570_v54  ;;  %v271_v13 = vld [vmem:[%s6451_s5] sm:$0xff]  ;;  %v6596_v16 = vor.u32 %v461_v58, %v6552_v42  ;;  %v6600_v18 = vor.u32 %v529_v59, %v528_v50  ;;  %v272_v24 = vld [vmem:[%s6451_s5 + $0x8] sm:$0xff]  ;;  %v281_v48 = vld [vmem:[%s6451_s5 + $0x50] sm:$0xff] }
  0x27   : > { %233 = vst.msk [vmem:[#allocation2 + $0x40] sm:$0xf] %vm215_vm1, %v6350_v2  ;;  %v327_v19 = vpack.c.bf16 %v295_v6, %v295_v6  ;;  %v6602_v20 = vpack.c.bf16 %v296_v7, %v296_v7  ;;  %v6606_v21 = vor.u32 %v410_v60, %v409_v62  ;;  %v486_v23 = vshll.u32 %v320_v56, 16  ;;  %v282_v49 = vld [vmem:[%s6451_s5 + $0x58] sm:$0xff]  ;;  %v289_v50 = vld [vmem:[%s6451_s5 + $0x90] sm:$0xff] }
  0x28   : > { %234 = vst.msk [vmem:[#allocation2 + $0x44] sm:$0x1] %vm218_vm2, %v6350_v2  ;;  %v6611_v25 = vpack.c.bf16 %v271_v13, %v271_v13  ;;  %v413_v26 = vrot.slane %v409_v62, 4  ;;  %v420_v27 = vor.u32 %v418_v61, %v6578_v63  ;;  %v6619_v29 = vor.u32 %v478_v5, %v6582_v4  ;;  %v290_v55 = vld [vmem:[%s6451_s5 + $0x98] sm:$0xff]  ;;  %v297_v61 = vld [vmem:[%s6451_s5 + $0xd0] sm:$0xff] }
  0x29   : > { %235 = vst.msk [vmem:[#allocation2 + $0x48] sm:$0xf] %vm215_vm1, %v6350_v2  ;;  %v543_v30 = vshrl.u32 %v327_v19, 16  ;;  %v6625_v31 = vsel %vm6468_vm7, %v464_v8, %v471_v9  ;;  %v6629_v32 = vsel %vm6468_vm7, %v532_v10, %v539_v11  ;;  %v481_v36 = vrot.slane %v6582_v4, 4  ;;  %v298_v62 = vld [vmem:[%s6451_s5 + $0xd8] sm:$0xff] }
  0x2a   : > { %236 = vst.msk [vmem:[#allocation2 + $0x4c] sm:$0xf] %vm215_vm1, %v6350_v2  ;;  %v551_v37 = vshrl.u32 %v6602_v20, 16  ;;  %v6643_v38 = vpack.c.bf16 %v272_v24, %v272_v24  ;;  %v546_v41 = vshll.u32 %v327_v19, 16  ;;  %v339_v42 = vshrl.u32 %v6611_v25, 16 }
  0x2b   : > { %237 = vst.msk [vmem:[#allocation2 + $0x50] sm:$0x1] %vm218_vm2, %v6350_v2  ;;  %v6648_v40 = vrot.slane %v543_v30, 7  ;;  %v6659_v44 = vsel %vm6468_vm7, %v413_v26, %v420_v27  ;;  %v554_v51 = vshll.u32 %v6602_v20, 16  ;;  %v313_v52 = vpack.c.bf16 %v281_v48, %v281_v48  ;;  %v5971_v5 = vld [vmem:[%s8051_s1 + $0x8] sm:$0x3] }
  0x2c   : > { %v6162_v22 = vld [vmem:[#allocation2 + $0x30] sm:$0xff]  ;;  %238 = vst.msk [vmem:[#allocation2 + $0x54] sm:$0xf] %vm215_vm1, %v6350_v2  ;;  %v314_v53 = vpack.c.bf16 %v282_v49, %v282_v49  ;;  %v342_v56 = vshll.u32 %v6611_v25, 16  ;;  %v6679_v57 = vrot.slane %v551_v37, 7  ;;  %v321_v58 = vpack.c.bf16 %v289_v50, %v289_v50 }
  0x2d   : > { %239 = vst.msk [vmem:[#allocation2 + $0x58] sm:$0xf] %vm215_vm1, %v6350_v2  ;;  %5828 = vmatmul.msk.bf16.vlgmr.msra.gmra.mxu1 %vm957_vm9, %v6162_v22  ;;  %v6608_v22 = vrot.slane %v483_v0, 7  ;;  %v6616_v28 = vld [vmem:[#allocation2 + $0x3c] sm:$0xf]  ;;  %v322_v59 = vpack.c.bf16 %v290_v55, %v290_v55  ;;  %v347_v60 = vshrl.u32 %v6643_v38, 16  ;;  %v6689_v1 = vor.u32 %v546_v41, %v6648_v40 }
  0x2e   : > { %240 = vst.msk [vmem:[#allocation2 + $0x5c] sm:$0x1] %vm218_vm2, %v6350_v2  ;;  %v693_v45 = vsel %vm6477_vm8, %v6606_v21, %v6616_v28  ;;  %v424_v6 = vshrl.u32 %v313_v52, 16  ;;  %v6696_v7 = vrot.slane %v339_v42, 7  ;;  %v3294_v8 = vsel %vm1006_vm0, %v5971_v5, 0 }
  0x2f   : > { %241 = vst.msk [vmem:[#allocation2 + $0x60] sm:$0xf] %vm215_vm1, %v6350_v2  ;;  %v488_v39 = vor.u32 %v486_v23, %v6608_v22  ;;  %v427_v9 = vshll.u32 %v313_v52, 16  ;;  %v432_v10 = vshrl.u32 %v314_v53, 16  ;;  %v492_v11 = vshrl.u32 %v321_v58, 16  ;;  %3303 = vmatpush.bf16.msrb.mxu0 %v3294_v8 }
  0x30   : > { %242 = vst.msk [vmem:[#allocation2 + $0x64] sm:$0xf] %vm215_vm1, %v6350_v2  ;;  %v426_v13 = vrot.slane %v424_v6, 7  ;;  %v500_v23 = vshrl.u32 %v322_v59, 16  ;;  %v330_v24 = vpack.c.bf16 %v298_v62, %v298_v62  ;;  %v549_v25 = vrot.slane %v6648_v40, 4 }
  0x31   : > { %243 = vst.msk [vmem:[#allocation2 + $0x68] sm:$0x1] %vm218_vm2, %v6350_v2  ;;  %v489_v0 = vsel %vm6468_vm7, %v481_v36, %v488_v39  ;;  %v6705_v19 = vrot.slane %v432_v10, 7  ;;  %v494_v20 = vrot.slane %v492_v11, 7  ;;  %v556_v26 = vor.u32 %v554_v51, %v6679_v57  ;;  %v274_v39 = vld [vmem:[%s6451_s5 + $0x18] sm:$0xff]  ;;  %v283_v10 = vld [vmem:[%s6451_s5 + $0x60] sm:$0xff] }
  0x32   : > { %244 = vst.msk [vmem:[#allocation2 + $0x6c] sm:$0xf] %vm215_vm1, %v6350_v2  ;;  %v503_v27 = vshll.u32 %v322_v59, 16  ;;  %v350_v30 = vshll.u32 %v6643_v38, 16  ;;  %v430_v36 = vrot.slane %v426_v13, 4  ;;  %v6717_v37 = vor.u32 %v342_v56, %v6696_v7  ;;  %v284_v11 = vld [vmem:[%s6451_s5 + $0x68] sm:$0xff] }
  0x33   : > { %245 = vst.msk [vmem:[#allocation2 + $0x70] sm:$0xf] %vm215_vm1, %v6350_v2  ;;  %v6721_v40 = vrot.slane %v500_v23, 7  ;;  %v345_v38 = vrot.slane %v6696_v7, 4  ;;  %v6724_v41 = vrot.slane %v347_v60, 7  ;;  %v568_v51 = vshrl.u32 %v330_v24, 16 }
  0x34   : > { %246 = vst.msk [vmem:[#allocation2 + $0x74] sm:$0x1] %vm218_vm2, %v6350_v2  ;;  %v6729_v49 = vld [vmem:[#allocation2 + $0xc] sm:$0xf]  ;;  %v498_v52 = vrot.slane %v494_v20, 4  ;;  %v6742_v60 = vpack.c.bf16 %v274_v39, %v274_v39  ;;  %v557_v21 = vsel %vm6468_vm7, %v549_v25, %v556_v26  ;;  %v316_v23 = vpack.c.bf16 %v284_v11, %v284_v11 }
  0x35   : > { %247 = vst.msk [vmem:[#allocation2 + $0x78] sm:$0xf] %vm215_vm1, %v6350_v2  ;;  %v352_v55 = vor.u32 %v350_v30, %v6724_v41  ;;  %v6740_v56 = vrot.slane %v568_v51, 7  ;;  %v6762_v6 = vld [vmem:[#allocation2 + $0x18] sm:$0xf] }
  0x36   : > { %248 = vst.msk [vmem:[#allocation2 + $0x7c] sm:$0xf] %vm215_vm1, %v6350_v2  ;;  %v6598_v17 = vld [vmem:[#allocation2 + $0x60] sm:$0xf]  ;;  %v364_v5 = vshrl.u32 %v6742_v60, 16  ;;  %v367_v25 = vshll.u32 %v6742_v60, 16 }
  0x37   : > { %249 = vst.msk [vmem:[#allocation2 + $0x80] sm:$0x1] %vm218_vm2, %v6350_v2  ;;  %v714_v35 = vsel %vm6477_vm8, %v6596_v16, %v6598_v17  ;;  %v435_v16 = vshll.u32 %v314_v53, 16  ;;  %v495_v17 = vshll.u32 %v321_v58, 16  ;;  %v505_v53 = vor.u32 %v503_v27, %v6721_v40 }
  0x38   : > { %250 = vst.msk [vmem:[#allocation2 + $0x84] sm:$0xf] %vm215_vm1, %v6350_v2  ;;  %v571_v58 = vshll.u32 %v330_v24, 16  ;;  %v292_v24 = vld [vmem:[%s6451_s5 + $0xa8] sm:$0xff]  ;;  %vm1211_vm10 = vsmask.f32 3328 }
  0x39   : > { %251 = vst.msk [vmem:[#allocation2 + $0x88] sm:$0xf] %vm215_vm1, %v6350_v2  ;;  %v6633_v34 = vld [vmem:[#allocation2 + $0x6c] sm:$0xf]  ;;  %v437_v42 = vor.u32 %v435_v16, %v6705_v19  ;;  %v497_v48 = vor.u32 %v495_v17, %v494_v20  ;;  %v506_v7 = vsel %vm6468_vm7, %v498_v52, %v505_v53  ;;  %v315_v20 = vpack.c.bf16 %v283_v10, %v283_v10 }
  0x3a   : > { %252 = vst.msk [vmem:[#allocation2 + $0x8c] sm:$0x1] %vm218_vm2, %v6350_v2  ;;  %v721_v47 = vsel %vm6477_vm8, %v6619_v29, %v6633_v34  ;;  %v324_v27 = vpack.c.bf16 %v292_v24, %v292_v24  ;;  %vm1212_vm11 = vsmask.f32 7440 }
  0x3b   : > { %253 = vst.msk [vmem:[#allocation2 + $0x90] sm:$0xf] %vm215_vm1, %v6350_v2  ;;  %vm6860_vm12 = vmor %vm1211_vm10, %vm1212_vm11 }
  0x3c   : > { %254 = vst.msk [vmem:[#allocation2 + $0x94] sm:$0xf] %vm215_vm1, %v6350_v2  ;;  %v727_v28 = vld [vmem:[#allocation2 + $0x78] sm:$0xf]  ;;  %v520_v60 = vshll.u32 %v324_v27, 16 }
  0x3d   : > { %255 = vst.msk [vmem:[#allocation2 + $0x98] sm:$0x1] %vm218_vm2, %v6350_v2  ;;  %v728_v8 = vsel %vm6477_vm8, %v497_v48, %v727_v28  ;;  %v452_v48 = vshll.u32 %v316_v23, 16 }
  0x3e   : > { %256 = vst.msk [vmem:[#allocation2 + $0x9c] sm:$0xf] %vm215_vm1, %v6350_v2 }
  0x3f   : > { %257 = vst.msk [vmem:[#allocation2 + $0xa0] sm:$0xf] %vm215_vm1, %v6350_v2 }
  0x40   : > { %258 = vst.msk [vmem:[#allocation2 + $0xa4] sm:$0x1] %vm218_vm2, %v6350_v2 }
  0x41   : > { %259 = vst.msk [vmem:[#allocation2 + $0xa8] sm:$0xf] %vm215_vm1, %v6350_v2 }
  0x42   : > { %260 = vst.msk [vmem:[#allocation2 + $0xac] sm:$0xf] %vm215_vm1, %v6350_v2  ;;  %v6631_v33 = vld [vmem:[#allocation2 + $0x90] sm:$0xf] }
  0x43   : > { %261 = vst.msk [vmem:[#allocation2 + $0xb0] sm:$0x1] %vm218_vm2, %v6350_v2  ;;  %v742_v43 = vsel %vm6477_vm8, %v6600_v18, %v6631_v33  ;;  %v329_v18 = vpack.c.bf16 %v297_v61, %v297_v61  ;;  %v429_v33 = vor.u32 %v427_v9, %v426_v13  ;;  %v663_v61 = vsel %vm6477_vm8, %v6717_v37, %v6729_v49  ;;  %v291_v13 = vld [vmem:[%s6451_s5 + $0xa0] sm:$0xff]  ;;  %v706_v49 = vld [vmem:[#allocation2 + $0x54] sm:$0xf] }
  0x44   : > { %262 = vst.msk [vmem:[#allocation2 + $0xb4] sm:$0xf] %vm215_vm1, %v6350_v2  ;;  %v353_v9 = vsel %vm6468_vm7, %v345_v38, %v352_v55  ;;  %v323_v26 = vpack.c.bf16 %v291_v13, %v291_v13  ;;  %v275_v37 = vld [vmem:[%s6451_s5 + $0x20] sm:$0xff]  ;;  %v441_v38 = vshrl.u32 %v315_v20, 16 }
  0x45   : > { %263 = vst.msk [vmem:[#allocation2 + $0xb8] sm:$0xf] %vm215_vm1, %v6350_v2  ;;  %v6691_v4 = vld [vmem:[#allocation2 + $0x9c] sm:$0xf]  ;;  %v563_v50 = vshll.u32 %v329_v18, 16 }
  0x46   : > { %264 = vst.msk [vmem:[#allocation2 + $0xbc] sm:$0x1] %vm218_vm2, %v6350_v2  ;;  %v443_v52 = vrot.slane %v441_v38, 7  ;;  %v512_v55 = vshll.u32 %v323_v26, 16 }
  0x47   : > { %265 = vst.msk [vmem:[#allocation2 + $0xc0] sm:$0xf] %vm215_vm1, %v6350_v2 }
  0x48   : > { %266 = vst.msk [vmem:[#allocation2 + $0xc4] sm:$0xf] %vm215_vm1, %v6350_v2  ;;  %v755_v62 = vld [vmem:[#allocation2 + $0xa8] sm:$0xf] }
  0x49   : > { %267 = vst.msk [vmem:[#allocation2 + $0xc8] sm:$0x1] %vm218_vm2, %v6350_v2 }
  0x4a   : > { %268 = vst.msk [vmem:[#allocation2 + $0xcc] sm:$0xf] %vm215_vm1, %v6350_v2 }
  0x4b   : > { %269 = vst.msk [vmem:[#allocation2 + $0xd0] sm:$0xf] %vm215_vm1, %v6350_v2 }
  0x4c   : > { %270 = vst.msk [vmem:[#allocation2 + $0xd4] sm:$0x1] %vm218_vm2, %v6350_v2  ;;  %v749_v2 = vsel %vm6477_vm8, %v6689_v1, %v6691_v4  ;;  %v438_v1 = vsel %vm6468_vm7, %v430_v36, %v437_v42  ;;  %v573_v4 = vor.u32 %v571_v58, %v6740_v56  ;;  %v300_v36 = vld [vmem:[%s6451_s5 + $0xe8] sm:$0xff]  ;;  %v449_v42 = vshrl.u32 %v316_v23, 16  ;;  %v762_v23 = vld [vmem:[#allocation2 + $0xb4] sm:$0xf] }
  0x4d   : > { %715 = vst [vmem:[#allocation2 + $0x60] sm:$0xf] %v714_v35  ;;  %v273_v35 = vld [vmem:[%s6451_s5 + $0x10] sm:$0xff] }
  0x4e   : > { %716 = vst.msk [vmem:[#allocation2 + $0x64] sm:$0xf] %vm215_vm1, %v6625_v31  ;;  %v560_v31 = vshrl.u32 %v329_v18, 16  ;;  %v305_v59 = vpack.c.bf16 %v273_v35, %v273_v35  ;;  %v6795_v53 = vrot.slane %v449_v42, 7 }
  0x4f   : > { %743 = vst [vmem:[#allocation2 + $0x90] sm:$0xf] %v742_v43  ;;  %v699_v43 = vld [vmem:[#allocation2 + $0x48] sm:$0xf] }
  0x50   : > { %744 = vst.msk [vmem:[#allocation2 + $0x94] sm:$0xf] %vm215_vm1, %v6629_v32  ;;  %v562_v32 = vrot.slane %v560_v31, 7  ;;  %v356_v29 = vshrl.u32 %v305_v59, 16  ;;  %v359_v34 = vshll.u32 %v305_v59, 16  ;;  %v444_v31 = vshll.u32 %v315_v20, 16 }
  0x51   : > { %694 = vst [vmem:[#allocation2 + $0x3c] sm:$0xf] %v693_v45  ;;  %v517_v59 = vshrl.u32 %v324_v27, 16 }
  0x52   : > { %695 = vst.msk [vmem:[#allocation2 + $0x40] sm:$0xf] %vm215_vm1, %v6659_v44  ;;  %v565_v45 = vor.u32 %v563_v50, %v562_v32  ;;  %v700_v44 = vsel %vm6477_vm8, %v429_v33, %v699_v43  ;;  %v6774_v16 = vrot.slane %v356_v29, 7  ;;  %v299_v33 = vld [vmem:[%s6451_s5 + $0xe0] sm:$0xff]  ;;  %v509_v50 = vshrl.u32 %v323_v26, 16 }
  0x53   : > { %722 = vst [vmem:[#allocation2 + $0x6c] sm:$0xf] %v721_v47  ;;  %v331_v43 = vpack.c.bf16 %v299_v33, %v299_v33  ;;  %v446_v28 = vor.u32 %v444_v31, %v443_v52  ;;  %v307_v29 = vpack.c.bf16 %v275_v37, %v275_v37 }
  0x54   : > { %723 = vst.msk [vmem:[#allocation2 + $0x70] sm:$0xf] %vm215_vm1, %v489_v0  ;;  %v566_v0 = vrot.slane %v562_v32, 4  ;;  %v756_v18 = vsel %vm6477_vm8, %v565_v45, %v755_v62  ;;  %v361_v30 = vor.u32 %v359_v34, %v6774_v16  ;;  %v332_v32 = vpack.c.bf16 %v300_v36, %v300_v36  ;;  %v276_v62 = vld [vmem:[%s6451_s5 + $0x28] sm:$0xff] }
  0x55   : > { %v6166_v47 = vld [vmem:[#allocation2 + $0x60] sm:$0xff]  ;;  %750 = vst [vmem:[#allocation2 + $0x9c] sm:$0xf] %v749_v2  ;;  %v362_v2 = vrot.slane %v6774_v16, 4  ;;  %v511_v58 = vrot.slane %v509_v50, 7  ;;  %v447_v45 = vrot.slane %v443_v52, 4 }
  0x56   : > { %751 = vst.msk [vmem:[#allocation2 + $0xa0] sm:$0xf] %vm215_vm1, %v557_v21  ;;  %5832 = vmatmul.msk.bf16.vlgmr.msra.gmra.mxu2 %vm957_vm9, %v6166_v47  ;;  %v574_v39 = vsel %vm6468_vm7, %v566_v0, %v573_v4  ;;  %v672_v51 = vsel %vm6477_vm8, %v361_v30, %v6762_v6  ;;  %v6798_v21 = vrot.slane %v364_v5, 7  ;;  %v6803_v47 = vrot.slane %v517_v59, 7 }
  0x57   : > { %v6170_v17 = vld [vmem:[#allocation2 + $0x90] sm:$0xff]  ;;  %701 = vst [vmem:[#allocation2 + $0x48] sm:$0xf] %v700_v44  ;;  %v454_v44 = vor.u32 %v452_v48, %v6795_v53  ;;  %v515_v34 = vrot.slane %v511_v58, 4  ;;  %v707_v5 = vsel %vm6477_vm8, %v446_v28, %v706_v49  ;;  %v577_v6 = vshrl.u32 %v331_v43, 16 }
  0x58   : > { %702 = vst.msk [vmem:[#allocation2 + $0x4c] sm:$0xf] %vm215_vm1, %v438_v1  ;;  %5836 = vmatmul.msk.bf16.vlgmr.msra.gmra.mxu3 %vm957_vm9, %v6170_v17  ;;  %v734_v1 = vld [vmem:[#allocation2 + $0x84] sm:$0xf]  ;;  %v369_v0 = vor.u32 %v367_v25, %v6798_v21  ;;  %v585_v16 = vshrl.u32 %v332_v32, 16  ;;  %v588_v17 = vshll.u32 %v332_v32, 16 }
  0x59   : > { %v6163_v35 = vld [vmem:[#allocation2 + $0x3c] sm:$0xff]  ;;  %729 = vst [vmem:[#allocation2 + $0x78] sm:$0xf] %v728_v8  ;;  %v455_v4 = vsel %vm6468_vm7, %v447_v45, %v454_v44  ;;  %v522_v8 = vor.u32 %v520_v60, %v6803_v47  ;;  %v579_v13 = vrot.slane %v577_v6, 7  ;;  %v373_v24 = vshrl.u32 %v307_v29, 16 }
  0x5a   : > { %730 = vst.msk [vmem:[#allocation2 + $0x7c] sm:$0xf] %vm215_vm1, %v506_v7  ;;  %5829 = vmatmul.msk.bf16.gmra.mxu1 %vm957_vm9, %v6163_v35  ;;  %v580_v7 = vshll.u32 %v331_v43, 16  ;;  %v370_v10 = vsel %vm6468_vm7, %v362_v2, %v369_v0  ;;  %v376_v25 = vshll.u32 %v307_v29, 16  ;;  %v6819_v2 = vrot.slane %v585_v16, 7 }
  0x5b   : > { %664 = vst [vmem:[#allocation2 + $0xc] sm:$0xf] %v663_v61  ;;  %v514_v61 = vor.u32 %v512_v55, %v511_v58  ;;  %v6167_v11 = vld [vmem:[#allocation2 + $0x6c] sm:$0xff]  ;;  %v523_v20 = vsel %vm6468_vm7, %v515_v34, %v522_v8  ;;  %v583_v30 = vrot.slane %v579_v13, 4  ;;  %v375_v36 = vrot.slane %v373_v24, 7 }
  0x5c   : > { %665 = vst.msk [vmem:[#allocation2 + $0x10] sm:$0xf] %vm215_vm1, %v353_v9  ;;  %v582_v27 = vor.u32 %v580_v7, %v579_v13  ;;  %v678_v43 = vld [vmem:[#allocation2 + $0x24] sm:$0xf]  ;;  %v354_v52 = vrot.slane %v6724_v41, 4 }
  0x5d   : > { %757 = vst [vmem:[#allocation2 + $0xa8] sm:$0xf] %v756_v18  ;;  %v735_v9 = vsel %vm6477_vm8, %v514_v61, %v734_v1  ;;  %v308_v18 = vpack.c.bf16 %v276_v62, %v276_v62  ;;  %v6171_v35 = vld [vmem:[#allocation2 + $0x9c] sm:$0xff]  ;;  %v378_v49 = vor.u32 %v376_v25, %v375_v36  ;;  %v379_v50 = vrot.slane %v375_v36, 4  ;;  %v668_v32 = vld [vmem:[#allocation2 + $0x14] sm:$0x1] }
  0x5e   : > { %758 = vst.msk [vmem:[#allocation2 + $0xac] sm:$0xf] %vm215_vm1, %v574_v39  ;;  %v590_v39 = vor.u32 %v588_v17, %v6819_v2  ;;  %v763_v38 = vsel %vm6477_vm8, %v582_v27, %v762_v23  ;;  %v1163_v55 = vld [vmem:[#allocation2] sm:$0xf]  ;;  %v1164_v58 = vld [vmem:[#allocation2 + $0x4] sm:$0xf]  ;;  %v669_v44 = vsel %vm6440_vm4, %v354_v52, %v668_v32 }
  0x5f   : > { %673 = vst [vmem:[#allocation2 + $0x18] sm:$0xf] %v672_v51  ;;  %v381_v33 = vshrl.u32 %v308_v18, 16  ;;  %v384_v37 = vshll.u32 %v308_v18, 16  ;;  %v6164_v42 = vld [vmem:[#allocation2 + $0x48] sm:$0xff]  ;;  %v679_v59 = vsel %vm6477_vm8, %v378_v49, %v678_v43  ;;  %v1215_v28 = vshrl.u32 %v1163_v55, 16 }
  0x60   : > { %708 = vst [vmem:[#allocation2 + $0x54] sm:$0xf] %v707_v5  ;;  %v591_v48 = vsel %vm6468_vm7, %v583_v30, %v590_v39  ;;  %v1218_v45 = vshll.u32 %v1163_v55, 16  ;;  %v1224_v62 = vshll.u32 %v1164_v58, 16  ;;  %v1228_v29 = vshrl.u32 %v1164_v58, 16 }
  0x61   : > { %709 = vst.msk [vmem:[#allocation2 + $0x58] sm:$0xf] %vm215_vm1, %v455_v4  ;;  %v6826_v31 = vrot.slane %v381_v33, 7  ;;  %v1217_v61 = vrot.slane %v1215_v28, 4  ;;  %v1165_v1 = vld [vmem:[#allocation2 + $0x8] sm:$0x1] }
  0x62   : > { %736 = vst [vmem:[#allocation2 + $0x84] sm:$0xf] %v735_v9  ;;  %v1220_v34 = vrot.slane %v1218_v45, 5  ;;  %v1226_v0 = vrot.slane %v1224_v62, 5  ;;  %v1230_v4 = vrot.slane %v1228_v29, 4  ;;  %v6168_v5 = vld [vmem:[#allocation2 + $0x78] sm:$0xff] }
  0x63   : > { %v6159_v26 = vld [vmem:[#allocation2 + $0xc] sm:$0xff]  ;;  %737 = vst.msk [vmem:[#allocation2 + $0x88] sm:$0xf] %vm215_vm1, %v523_v20  ;;  %v386_v51 = vor.u32 %v384_v37, %v6826_v31  ;;  %v1234_v9 = vshll.u32 %v1165_v1, 16  ;;  %v6004_v13 = vld [vmem:[%s8051_s1 + $0xa] sm:$0x3] }
  0x64   : > { %674 = vst.msk [vmem:[#allocation2 + $0x1c] sm:$0xf] %vm215_vm1, %v370_v10  ;;  %5825 = vmatmul.msk.bf16.gmra.mxu0 %vm957_vm9, %v6159_v26  ;;  %v1221_v8 = vor.u32 %v1220_v34, %v1217_v61  ;;  %v1231_v10 = vor.u32 %v1230_v4, %v1226_v0  ;;  %v6021_v16 = vld [vmem:[%s8051_s1 + $0xc] sm:$0x3]  ;;  %v2732_v17 = vld [vmem:[#allocation2 + $0x10] sm:$0xf] }
  0x65   : > { %764 = vst [vmem:[#allocation2 + $0xb4] sm:$0xf] %v763_v38  ;;  %v387_v60 = vsel %vm6468_vm7, %v379_v50, %v386_v51  ;;  %v6172_v6 = vld [vmem:[#allocation2 + $0xa8] sm:$0xff]  ;;  %v371_v18 = vrot.slane %v6798_v21, 4  ;;  %v3788_v20 = vsel %vm1006_vm0, %v6004_v13, 0  ;;  %v4139_v23 = vsel %vm1006_vm0, %v6021_v16, 0 }
  0x66   : > { %5833 = vmatmul.msk.bf16.gmra.mxu2 %vm957_vm9, %v6167_v11  ;;  %765 = vst.msk [vmem:[#allocation2 + $0xb8] sm:$0xf] %vm215_vm1, %v591_v48  ;;  %v2731_v11 = vld [vmem:[#allocation2 + $0xc] sm:$0xf]  ;;  %v1222_v24 = vrot.slane %v1221_v8, 4  ;;  %v1236_v25 = vrot.slane %v1234_v9, 5  ;;  %3797 = vmatpush.bf16.msra.mxu1 %v3788_v20 }
  0x67   : > { %680 = vst [vmem:[#allocation2 + $0x24] sm:$0xf] %v679_v59  ;;  %v6102_v26 = vld [vmem:[%s8051_s1 + $0xe] sm:$0x3]  ;;  %v2780_v27 = vshrl.u32 %v2731_v11, 16  ;;  %v2783_v30 = vshll.u32 %v2731_v11, 16  ;;  %4148 = vmatpush.bf16.msra.mxu2 %v4139_v23 }
  0x68   : > { %5837 = vmatmul.msk.bf16.gmra.mxu3 %vm957_vm9, %v6171_v35  ;;  %681 = vst.msk [vmem:[#allocation2 + $0x28] sm:$0xf] %vm215_vm1, %v387_v60  ;;  %v6165_v7 = vld [vmem:[#allocation2 + $0x54] sm:$0xff]  ;;  %v1232_v21 = vrot.slane %v1231_v10, 4  ;;  %v4857_v36 = vsel %vm1006_vm0, %v6102_v26, 0  ;;  %v2789_v37 = vshll.u32 %v2732_v17, 16 }
  0x69   : > { %670 = vst [vmem:[#allocation2 + $0x14] sm:$0x1] %v669_v44  ;;  %v2793_v35 = vshrl.u32 %v2732_v17, 16  ;;  %4866 = vmatpush.bf16.msra.mxu3 %v4857_v36  ;;  %v1166_v39 = vld [vmem:[#allocation2 + $0xc] sm:$0xf]  ;;  %v2782_v48 = vrot.slane %v2780_v27, 4 }
  0x6a   : > { %5830 = vmatmul.msk.bf16.gmra.mxu1 %vm957_vm9, %v6164_v42  ;;  %v1167_v38 = vld [vmem:[#allocation2 + $0x10] sm:$0xf]  ;;  %v1227_v42 = vsel %vm6860_vm12, %v1222_v24, %v1226_v0  ;;  %v2785_v49 = vrot.slane %v2783_v30, 5  ;;  %v675_v50 = vld [vmem:[#allocation2 + $0x20] sm:$0x1]  ;;  %v1237_v51 = vsel %vm6860_vm12, %v1232_v21, %v1236_v25  ;;  %v6870_v55 = vrot.slane %v2789_v37, 5 }
  0x6b   : > { %v6160_v41 = vld [vmem:[#allocation2 + $0x18] sm:$0xff]  ;;  %v1885_v43 = vld [vmem:[#allocation2 + $0x4] sm:$0xf]  ;;  %v2795_v32 = vrot.slane %v2793_v35, 4  ;;  %v676_v58 = vsel %vm6440_vm4, %v371_v18, %v675_v50  ;;  %v1239_v59 = vshrl.u32 %v1166_v39, 16  ;;  %v1242_v60 = vshll.u32 %v1166_v39, 16 }
  0x6c   : > { %v1248_v28 = vshll.u32 %v1167_v38, 16  ;;  %v1252_v45 = vshrl.u32 %v1167_v38, 16  ;;  %677 = vst [vmem:[#allocation2 + $0x20] sm:$0x1] %v676_v58  ;;  %v1884_v44 = vld [vmem:[#allocation2] sm:$0xe]  ;;  %v1632_v61 = vunpack.c.l.b16 %v1227_v42  ;;  %v1633_v34 = vunpack.c.l.b16 %v1237_v51 }
  0x6d   : > { %v1985_v62 = vrot.slane %v1885_v43, 5  ;;  %v1886_v1 = vld [vmem:[#allocation2 + $0x8] sm:$0x1]  ;;  %v2796_v0 = vor.u32 %v2795_v32, %v6870_v55  ;;  %v1244_v8 = vrot.slane %v1242_v60, 5  ;;  %v5857_v11 = vrot.slane %v1884_v44, 9  ;;  %v6173_v16 = vld [vmem:[#allocation2 + $0xb4] sm:$0xff] }
  0x6e   : > { %v1250_v9 = vrot.slane %v1248_v28, 5  ;;  %v1254_v10 = vrot.slane %v1252_v45, 4  ;;  %v1988_v20 = vrot.slane %v1886_v1, 5  ;;  %v388_v25 = vrot.slane %v6826_v31, 4  ;;  %v2735_v30 = vld [vmem:[#allocation2 + $0x1c] sm:$0xf] }
  0x6f   : > { %v6161_v29 = vld [vmem:[#allocation2 + $0x24] sm:$0xff]  ;;  %v1987_v18 = vrot.slane %v1985_v62, 4  ;;  %v2797_v26 = vrot.slane %v2796_v0, 4  ;;  %v1664_v36 = vpack.c.b16 %v1633_v34, %v1632_v61  ;;  %v1986_v38 = vsel %vm6877_vm15, %v5857_v11, %v1985_v62  ;;  %v682_v42 = vld [vmem:[#allocation2 + $0x2c] sm:$0x1] }
  0x70   : > { %v2733_v52 = vld [vmem:[#allocation2 + $0x14] sm:$0x1]  ;;  %v1255_v35 = vor.u32 %v1254_v10, %v1250_v9  ;;  %v2813_v50 = vshll.u32 %v2735_v30, 16  ;;  %v2817_v51 = vshrl.u32 %v2735_v30, 16  ;;  %v683_v58 = vsel %vm6440_vm4, %v388_v25, %v682_v42  ;;  %v1169_v45 = vld [vmem:[#allocation2 + $0x18] sm:$0xf] }
  0x71   : > { %v2799_v4 = vshll.u32 %v2733_v52, 16  ;;  %v1168_v13 = vld [vmem:[#allocation2 + $0x14] sm:$0x1]  ;;  %684 = vst [vmem:[#allocation2 + $0x2c] sm:$0x1] %v683_v58  ;;  %v2129_v34 = vunpack.c.l.b16 %v1986_v38  ;;  %v1266_v10 = vshll.u32 %v1169_v45, 16 }
  0x72   : > { %v1258_v39 = vshll.u32 %v1168_v13, 16  ;;  %v1256_v60 = vrot.slane %v1255_v35, 4  ;;  %v2819_v61 = vrot.slane %v2817_v51, 4  ;;  %v1887_v25 = vld [vmem:[#allocation2 + $0xc] sm:$0xe]  ;;  %v405_v30 = vrot.slane %v6472_v14, 4 }
  0x73   : > { %v2801_v27 = vrot.slane %v2799_v4, 5  ;;  %v2736_v0 = vld [vmem:[#allocation2 + $0x20] sm:$0x1]  ;;  %v2737_v42 = vld [vmem:[#allocation2 + $0x24] sm:$0xf]  ;;  %v6187_v3 = vld [vmem:[#allocation2 + $0xa8] sm:$0xff] }
  0x74   : > { %5826 = vmatmul.msk.bf16.gmra.mxu0 %vm957_vm9, %v6160_v41  ;;  %v2786_v41 = vor.u32 %v2785_v49, %v2782_v48  ;;  %v6135_v48 = vld [vmem:[%s8051_s1 + $0x10] sm:$0x3]  ;;  %v1260_v28 = vrot.slane %v1258_v39, 5  ;;  %v1171_v35 = vld [vmem:[#allocation2 + $0x20] sm:$0x1] }
  0x75   : > { %v2802_v43 = vsel %vm6860_vm12, %v2797_v26, %v2801_v27  ;;  %v5351_v52 = vsel %vm1006_vm0, %v6135_v48, 0  ;;  %v5858_v48 = vrot.slane %v1887_v25, 9  ;;  %v2738_v51 = vld [vmem:[#allocation2 + $0x28] sm:$0xf] }
  0x76   : > { %5834 = vmatmul.msk.bf16.gmra.mxu2 %vm957_vm9, %v6168_v5  ;;  %v2734_v5 = vld [vmem:[#allocation2 + $0x18] sm:$0xf]  ;;  %v2787_v23 = vrot.slane %v2786_v41, 4  ;;  %5360 = vmatpush.bf16.msra.mxu0 %v5351_v52  ;;  %v3198_v62 = vunpack.c.l.b16 %v2802_v43  ;;  %v2815_v41 = vrot.slane %v2813_v50, 5 }
  0x77   : > { %v2804_v24 = vshrl.u32 %v2734_v5, 16  ;;  %v2807_v21 = vshll.u32 %v2734_v5, 16 }
  0x78   : > { %5838 = vmatmul.msk.bf16.gmra.mxu3 %vm957_vm9, %v6172_v6  ;;  %v6169_v6 = vld [vmem:[#allocation2 + $0x84] sm:$0xff]  ;;  %v2792_v31 = vsel %vm6860_vm12, %v2787_v23, %v6870_v55  ;;  %v1989_v55 = vsel %vm6877_vm15, %v1987_v18, %v1988_v20  ;;  %v2820_v18 = vor.u32 %v2819_v61, %v2815_v41  ;;  %v2823_v20 = vshll.u32 %v2736_v0, 16  ;;  %v2739_v25 = vld [vmem:[#allocation2 + $0x2c] sm:$0x1] }
  0x79   : > { %v2806_v49 = vrot.slane %v2804_v24, 4  ;;  %v2809_v32 = vrot.slane %v2807_v21, 5  ;;  %v3197_v44 = vunpack.c.l.b16 %v2792_v31  ;;  %v2130_v1 = vunpack.c.l.b16 %v1989_v55  ;;  %v6174_v31 = vld [vmem:[#allocation2 + $0xc] sm:$0xff]  ;;  %v1172_v0 = vld [vmem:[#allocation2 + $0x24] sm:$0xf] }
  0x7a   : > { %5831 = vmatmul.msk.bf16.gmra.mxu1 %vm957_vm9, %v6165_v7  ;;  %v1241_v7 = vrot.slane %v1239_v59, 4  ;;  %v2825_v50 = vrot.slane %v2823_v20, 5  ;;  %v1282_v55 = vshll.u32 %v1171_v35, 16  ;;  %v1290_v20 = vshll.u32 %v1172_v0, 16 }
  0x7b   : > { %v2810_v4 = vor.u32 %v2809_v32, %v2806_v49  ;;  %v2161_v21 = vpack.c.b16 %v2130_v1, %v2129_v34  ;;  %v2821_v49 = vrot.slane %v2820_v18, 4  ;;  %v1287_v18 = vshrl.u32 %v1172_v0, 16 }
  0x7c   : > { %v1245_v37 = vor.u32 %v1244_v8, %v1241_v7  ;;  %v1888_v7 = vld [vmem:[#allocation2 + $0x10] sm:$0xf]  ;;  %v1263_v8 = vshrl.u32 %v1169_v45, 16  ;;  %v2837_v45 = vshll.u32 %v2738_v51, 16 }
  0x7d   : > { %v1992_v26 = vrot.slane %v1888_v7, 5  ;;  %v2811_v27 = vrot.slane %v2810_v4, 4  ;;  %v1173_v4 = vld [vmem:[#allocation2 + $0x28] sm:$0xf] }
  0x7e   : > { %v1246_v59 = vrot.slane %v1245_v37, 4  ;;  %v1268_v37 = vrot.slane %v1266_v10, 5 }
  0x7f   : > { %v1994_v52 = vrot.slane %v1992_v26, 4  ;;  %v2816_v14 = vsel %vm6860_vm12, %v2811_v27, %v2815_v41  ;;  %v1993_v41 = vsel %vm6877_vm15, %v5858_v48, %v1992_v26  ;;  %v1292_v48 = vrot.slane %v1290_v20, 5 }
  0x80   : > { %v1251_v5 = vsel %vm6860_vm12, %v1246_v59, %v1250_v9  ;;  %v1889_v9 = vld [vmem:[#allocation2 + $0x14] sm:$0x1]  ;;  %v2828_v59 = vshrl.u32 %v2737_v42, 16  ;;  %v3199_v1 = vunpack.c.l.b16 %v2816_v14  ;;  %v2131_v26 = vunpack.c.l.b16 %v1993_v41 }
  0x81   : > { %v1634_v23 = vunpack.c.l.b16 %v1251_v5  ;;  %v1995_v32 = vrot.slane %v1889_v9, 5  ;;  %v2741_v41 = vld [vmem:[#allocation2 + $0x34] sm:$0xf] }
  0x82   : > { %v2830_v7 = vrot.slane %v2828_v59, 4 }
  0x83   : > { %v1996_v34 = vsel %vm6877_vm15, %v1994_v52, %v1995_v32  ;;  %v1890_v32 = vld [vmem:[#allocation2 + $0x18] sm:$0xe] }
  0x84   : > { %5827 = vmatmul.msk.bf16.gmra.mxu0 %vm957_vm9, %v6161_v29  ;;  %v1170_v29 = vld [vmem:[#allocation2 + $0x1c] sm:$0xf]  ;;  %v2132_v27 = vunpack.c.l.b16 %v1996_v34 }
  0x85   : > { %v1272_v11 = vshll.u32 %v1170_v29, 16  ;;  %v1276_v13 = vshrl.u32 %v1170_v29, 16  ;;  %v2826_v29 = vsel %vm6860_vm12, %v2821_v49, %v2825_v50 }
  0x86   : > { %5835 = vmatmul.msk.bf16.gmra.mxu2 %vm957_vm9, %v6169_v6  ;;  %v1261_v6 = vsel %vm6860_vm12, %v1256_v60, %v1260_v28  ;;  %v2831_v60 = vshll.u32 %v2737_v42, 16  ;;  %v1174_v42 = vld [vmem:[#allocation2 + $0x2c] sm:$0x1] }
  0x87   : > { %v1635_v24 = vunpack.c.l.b16 %v1261_v6  ;;  %v1274_v39 = vrot.slane %v1272_v11, 5  ;;  %v1278_v38 = vrot.slane %v1276_v13, 4  ;;  %v1284_v6 = vrot.slane %v1282_v55, 5 }
  0x88   : > { %5839 = vmatmul.msk.bf16.gmra.mxu3 %vm957_vm9, %v6173_v16  ;;  %v3229_v16 = vpack.c.b16 %v3198_v62, %v3197_v44  ;;  %v2841_v44 = vshrl.u32 %v2738_v51, 16  ;;  %v689_v62 = vld [vmem:[#allocation2 + $0x38] sm:$0x1]  ;;  %v3200_v11 = vunpack.c.l.b16 %v2826_v29  ;;  %v2839_v13 = vrot.slane %v2837_v45, 5 }
  0x89   : > { %v1665_v43 = vpack.c.b16 %v1635_v24, %v1634_v23  ;;  %v1279_v28 = vor.u32 %v1278_v38, %v1274_v39  ;;  %v690_v61 = vsel %vm6440_vm4, %v405_v30, %v689_v62  ;;  %v1296_v23 = vshll.u32 %v1173_v4, 16  ;;  %v2740_v62 = vld [vmem:[#allocation2 + $0x30] sm:$0xf] }
  0x8a   : > { %5841 = vmatmul.msk.bf16.vlgmr.msrb.gmra.mxu1 %vm957_vm9, %v1664_v36  ;;  %v1265_v36 = vrot.slane %v1263_v8, 4  ;;  %691 = vst [vmem:[#allocation2 + $0x38] sm:$0x1] %v690_v61  ;;  %v2833_v8 = vrot.slane %v2831_v60, 5  ;;  %v1300_v24 = vshrl.u32 %v1173_v4, 16  ;;  %v2847_v38 = vshll.u32 %v2739_v25, 16 }
  0x8b   : > { %v1280_v10 = vrot.slane %v1279_v28, 4  ;;  %v6924_v49 = vrot.slane %v1296_v23, 5  ;;  %v2162_v51 = vpack.c.b16 %v2132_v27, %v2131_v26  ;;  %v1306_v55 = vshll.u32 %v1174_v42, 16  ;;  %v6175_v28 = vld [vmem:[#allocation2 + $0x18] sm:$0xff]  ;;  %v1175_v27 = vld [vmem:[#allocation2 + $0x30] sm:$0xf] }
  0x8c   : > { %v1269_v58 = vor.u32 %v1268_v37, %v1265_v36  ;;  %v1891_v36 = vld [vmem:[#allocation2 + $0x1c] sm:$0xf]  ;;  %v3230_v37 = vpack.c.b16 %v3200_v11, %v3199_v1  ;;  %v1302_v50 = vrot.slane %v1300_v24, 4  ;;  %v2849_v60 = vrot.slane %v2847_v38, 5 }
  0x8d   : > { %v1285_v9 = vsel %vm6860_vm12, %v1280_v10, %v1284_v6  ;;  %v422_v29 = vrot.slane %v6578_v63, 4  ;;  %v5859_v61 = vrot.slane %v1890_v32, 9  ;;  %v696_v10 = vld [vmem:[#allocation2 + $0x44] sm:$0x1] }
  0x8e   : > { %v1270_v5 = vrot.slane %v1269_v58, 4  ;;  %v1637_v52 = vunpack.c.l.b16 %v1285_v9  ;;  %v1892_v58 = vld [vmem:[#allocation2 + $0x20] sm:$0x1] }
  0x8f   : > { %v2002_v0 = vrot.slane %v1892_v58, 5  ;;  %v697_v20 = vsel %vm6440_vm4, %v422_v29, %v696_v10  ;;  %v6176_v10 = vld [vmem:[#allocation2 + $0x24] sm:$0xff] }
  0x90   : > { %v1275_v30 = vsel %vm6860_vm12, %v1270_v5, %v1274_v39  ;;  %v1999_v39 = vrot.slane %v1891_v36, 5  ;;  %v1308_v5 = vrot.slane %v1306_v55, 5  ;;  %698 = vst [vmem:[#allocation2 + $0x44] sm:$0x1] %v697_v20 }
  0x92   : > { %v2001_v1 = vrot.slane %v1999_v39, 4  ;;  %v2000_v23 = vsel %vm6877_vm15, %v5859_v61, %v1999_v39 }
  0x93   : > { %v2133_v39 = vunpack.c.l.b16 %v2000_v23 }
  0x94   : > { %5972 = vmatmul.msk.bf16.vlgmr.msrb.gmra.mxu0 %vm957_vm9, %v3229_v16  ;;  %v2843_v16 = vrot.slane %v2841_v44, 4  ;;  %v1303_v44 = vor.u32 %v1302_v50, %v6924_v49  ;;  %v2003_v24 = vsel %vm6877_vm15, %v2001_v1, %v2002_v0  ;;  %v439_v1 = vrot.slane %v6705_v19, 4 }
  0x96   : > { %5874 = vmatmul.msk.bf16.vlgmr.msrb.gmra.mxu2 %vm957_vm9, %v2161_v21  ;;  %v2834_v21 = vor.u32 %v2833_v8, %v2830_v7  ;;  %v2844_v35 = vor.u32 %v2843_v16, %v2839_v13  ;;  %v2852_v7 = vshrl.u32 %v2740_v62, 16  ;;  %v2855_v8 = vshll.u32 %v2740_v62, 16  ;;  %v6941_v16 = vld [vmem:[%s8052_s2] ss:$0 sm:$0xff] }
  0x97   : > { %v1304_v11 = vrot.slane %v1303_v44, 4 }
  0x98   : > { %5955 = vmatmul.msk.bf16.vlgmr.msrb.gmra.mxu3 %vm957_vm9, %v6174_v31  ;;  %v1289_v31 = vrot.slane %v1287_v18, 4  ;;  %v2835_v14 = vrot.slane %v2834_v21, 4  ;;  %v2845_v59 = vrot.slane %v2844_v35, 4  ;;  %v2861_v18 = vshll.u32 %v2741_v41, 16  ;;  %v1894_v21 = vld [vmem:[#allocation2 + $0x28] sm:$0xf] }
  0x99   : > { %v2857_v35 = vrot.slane %v2855_v8, 5  ;;  %v1309_v42 = vsel %vm6860_vm12, %v1304_v11, %v1308_v5  ;;  %v2744_v8 = vld [vmem:[#allocation2 + $0x40] sm:$0xf] }
  0x9a   : > { %5842 = vmatmul.msk.bf16.gmra.mxu1 %vm957_vm9, %v1665_v43  ;;  %v1636_v43 = vunpack.c.l.b16 %v1275_v30  ;;  %v1293_v45 = vor.u32 %v1292_v48, %v1289_v31  ;;  %v2840_v4 = vsel %vm6860_vm12, %v2835_v14, %v2839_v13  ;;  %v2850_v6 = vsel %vm6860_vm12, %v2845_v59, %v2849_v60  ;;  %v1176_v30 = vld [vmem:[#allocation2 + $0x34] sm:$0xf]  ;;  %v2742_v31 = vld [vmem:[#allocation2 + $0x38] sm:$0x1]  ;;  %v1893_v60 = vld [vmem:[#allocation2 + $0x24] sm:$0xe] }
  0x9b   : > { %v2865_v13 = vshrl.u32 %v2741_v41, 16  ;;  %v3201_v25 = vunpack.c.l.b16 %v2840_v4  ;;  %v3202_v9 = vunpack.c.l.b16 %v2850_v6  ;;  %v6956_v48 = vrot.slane %v2861_v18, 5  ;;  %v1177_v4 = vld [vmem:[#allocation2 + $0x38] sm:$0x1] }
  0x9c   : > { %v1666_v34 = vpack.c.b16 %v1637_v52, %v1636_v43  ;;  %v1294_v63 = vrot.slane %v1293_v45, 4  ;;  %v1314_v43 = vshll.u32 %v1175_v27, 16  ;;  %v1320_v52 = vshll.u32 %v1176_v30, 16 }
  0x9d   : > { %v2867_v50 = vrot.slane %v2865_v13, 4  ;;  %v1324_v32 = vshrl.u32 %v1176_v30, 16  ;;  %v2134_v14 = vunpack.c.l.b16 %v2003_v24  ;;  %v3231_v55 = vpack.c.b16 %v3202_v9, %v3201_v25 }
  0x9e   : > { %v1299_v38 = vsel %vm6860_vm12, %v1294_v63, %v6924_v49  ;;  %v2006_v49 = vrot.slane %v1894_v21, 5  ;;  %v1639_v59 = vunpack.c.l.b16 %v1309_v42  ;;  %v2871_v62 = vshll.u32 %v2742_v31, 16  ;;  %v703_v21 = vld [vmem:[#allocation2 + $0x50] sm:$0x1] }
  0x9f   : > { %v1638_v58 = vunpack.c.l.b16 %v1299_v38  ;;  %v2868_v44 = vor.u32 %v2867_v50, %v6956_v48  ;;  %v1316_v61 = vrot.slane %v1314_v43, 5  ;;  %v1322_v41 = vrot.slane %v1320_v52, 5 }
  0xa0   : > { %v2163_v0 = vpack.c.b16 %v2134_v14, %v2133_v39  ;;  %v5860_v5 = vrot.slane %v1893_v60, 9  ;;  %v2008_v11 = vrot.slane %v2006_v49, 4  ;;  %v2873_v13 = vrot.slane %v2871_v62, 5  ;;  %v2745_v39 = vld [vmem:[#allocation2 + $0x44] sm:$0x1] }
  0xa1   : > { %v1667_v63 = vpack.c.b16 %v1639_v59, %v1638_v58  ;;  %v1330_v24 = vshll.u32 %v1177_v4, 16  ;;  %v2869_v25 = vrot.slane %v2868_v44, 4  ;;  %v2889_v30 = vshrl.u32 %v2744_v8, 16  ;;  %v1897_v62 = vld [vmem:[#allocation2 + $0x34] sm:$0xf] }
  0xa2   : > { %v2007_v9 = vsel %vm6877_vm15, %v5860_v5, %v2006_v49  ;;  %v1178_v49 = vld [vmem:[#allocation2 + $0x3c] sm:$0xf] }
  0xa3   : > { %v1332_v31 = vrot.slane %v1330_v24, 5  ;;  %v2874_v50 = vsel %vm6860_vm12, %v2869_v25, %v2873_v13  ;;  %v2135_v59 = vunpack.c.l.b16 %v2007_v9 }
  0xa4   : > { %5973 = vmatmul.msk.bf16.gmra.mxu0 %vm957_vm9, %v3230_v37  ;;  %v2854_v37 = vrot.slane %v2852_v7, 4  ;;  %v2743_v7 = vld [vmem:[#allocation2 + $0x3c] sm:$0xf]  ;;  %v3204_v58 = vunpack.c.l.b16 %v2874_v50 }
  0xa5   : > { %v2876_v19 = vshrl.u32 %v2743_v7, 16 }
  0xa6   : > { %5875 = vmatmul.msk.bf16.gmra.mxu2 %vm957_vm9, %v2162_v51  ;;  %v1311_v51 = vshrl.u32 %v1175_v27, 16  ;;  %v2858_v45 = vor.u32 %v2857_v35, %v2854_v37  ;;  %v2885_v27 = vshll.u32 %v2744_v8, 16  ;;  %v704_v35 = vsel %vm6440_vm4, %v439_v1, %v703_v21  ;;  %v2746_v21 = vld [vmem:[#allocation2 + $0x48] sm:$0xf] }
  0xa7   : > { %705 = vst [vmem:[#allocation2 + $0x50] sm:$0x1] %v704_v35  ;;  %v1335_v1 = vshrl.u32 %v1178_v49, 16 }
  0xa8   : > { %5956 = vmatmul.msk.bf16.gmra.mxu3 %vm957_vm9, %v6175_v28  ;;  %v1895_v28 = vld [vmem:[#allocation2 + $0x2c] sm:$0x1]  ;;  %v1313_v29 = vrot.slane %v1311_v51, 4  ;;  %v2859_v18 = vrot.slane %v2858_v45, 4  ;;  %v2878_v51 = vrot.slane %v2876_v19, 4  ;;  %v6978_v52 = vrot.slane %v2885_v27, 5 }
  0xa9   : > { %v2009_v6 = vrot.slane %v1895_v28, 5  ;;  %v6177_v27 = vld [vmem:[#allocation2 + $0x30] sm:$0xff] }
  0xaa   : > { %5843 = vmatmul.msk.bf16.gmra.mxu1 %vm957_vm9, %v1666_v34  ;;  %v1039_v26 = vpop.f32.mrf.mxu1  ;;  %v1326_v34 = vrot.slane %v1324_v32, 4  ;;  %v1317_v20 = vor.u32 %v1316_v61, %v1313_v29  ;;  %v2864_v37 = vsel %vm6860_vm12, %v2859_v18, %v6956_v48  ;;  %v2891_v32 = vrot.slane %v2889_v30, 4  ;;  %v1180_v30 = vld [vmem:[#allocation2 + $0x44] sm:$0x1] }
  0xab   : > { %v1107_v36 = vadd.f32 %v6941_v16, %v1039_v26  ;;  %v2879_v26 = vshll.u32 %v2743_v7, 16  ;;  %v3203_v14 = vunpack.c.l.b16 %v2864_v37  ;;  %v2747_v37 = vld [vmem:[#allocation2 + $0x4c] sm:$0xf] }
  0xac   : > { %v1327_v23 = vor.u32 %v1326_v34, %v1322_v41  ;;  %v1318_v38 = vrot.slane %v1317_v20, 4  ;;  %v2892_v61 = vor.u32 %v2891_v32, %v6978_v52  ;;  %v2895_v34 = vshll.u32 %v2745_v39, 16  ;;  %v710_v32 = vld [vmem:[#allocation2 + $0x5c] sm:$0x1] }
  0xad   : > { %1139 = vst [vmem:[%s6958_s10 + $0x40] sm:$0xff] %v1107_v36  ;;  %v2010_v36 = vsel %vm6877_vm15, %v2008_v11, %v2009_v6  ;;  %v2881_v43 = vrot.slane %v2879_v26, 5  ;;  %v3232_v6 = vpack.c.b16 %v3204_v58, %v3203_v14  ;;  %v1898_v11 = vld [vmem:[#allocation2 + $0x38] sm:$0x1]  ;;  %v456_v26 = vrot.slane %v6795_v53, 4 }
  0xae   : > { %v1328_v42 = vrot.slane %v1327_v23, 4  ;;  %v2136_v60 = vunpack.c.l.b16 %v2010_v36  ;;  %v1323_v28 = vsel %vm6860_vm12, %v1318_v38, %v1322_v41  ;;  %v2013_v41 = vrot.slane %v1897_v62, 5 }
  0xaf   : > { %v2882_v29 = vor.u32 %v2881_v43, %v2878_v51  ;;  %v1640_v8 = vunpack.c.l.b16 %v1323_v28  ;;  %v2893_v13 = vrot.slane %v2892_v61, 4  ;;  %v2897_v20 = vrot.slane %v2895_v34, 5 }
  0xb0   : > { %v1333_v44 = vsel %vm6860_vm12, %v1328_v42, %v1332_v31  ;;  %v2164_v7 = vpack.c.b16 %v2136_v60, %v2135_v59  ;;  %v1337_v23 = vrot.slane %v1335_v1, 4  ;;  %v2016_v36 = vrot.slane %v1898_v11, 5  ;;  %v1181_v59 = vld [vmem:[#allocation2 + $0x48] sm:$0xf]  ;;  %v1182_v60 = vld [vmem:[#allocation2 + $0x4c] sm:$0xf] }
  0xb1   : > { %v2883_v18 = vrot.slane %v2882_v29, 4  ;;  %v2015_v38 = vrot.slane %v2013_v41, 4  ;;  %v2898_v31 = vsel %vm6860_vm12, %v2893_v13, %v2897_v20  ;;  %v1354_v51 = vshll.u32 %v1180_v30, 16  ;;  %v1900_v29 = vld [vmem:[#allocation2 + $0x40] sm:$0xf] }
  0xb2   : > { %v1041_v48 = vpop.f32.mrf.mxu1  ;;  %v2900_v43 = vshrl.u32 %v2746_v21, 16  ;;  %v2903_v39 = vshll.u32 %v2746_v21, 16  ;;  %v2913_v14 = vshrl.u32 %v2747_v37, 16  ;;  %v711_v58 = vsel %vm6440_vm4, %v456_v26, %v710_v32  ;;  %v1899_v20 = vld [vmem:[#allocation2 + $0x3c] sm:$0xe] }
  0xb3   : > { %v1108_v45 = vadd.f32 %v6941_v16, %v1041_v48  ;;  %v2888_v42 = vsel %vm6860_vm12, %v2883_v18, %v6978_v52  ;;  %v2909_v48 = vshll.u32 %v2747_v37, 16  ;;  %712 = vst [vmem:[#allocation2 + $0x5c] sm:$0x1] %v711_v58  ;;  %v3206_v62 = vunpack.c.l.b16 %v2898_v31  ;;  %v6178_v32 = vld [vmem:[#allocation2 + $0x3c] sm:$0xff] }
  0xb4   : > { %5974 = vmatmul.msk.bf16.gmra.mxu0 %vm957_vm9, %v3231_v55  ;;  %v1179_v55 = vld [vmem:[#allocation2 + $0x40] sm:$0xf]  ;;  %v2902_v61 = vrot.slane %v2900_v43, 4  ;;  %v2905_v34 = vrot.slane %v2903_v39, 5  ;;  %v2020_v13 = vrot.slane %v1900_v29, 5  ;;  %v5862_v31 = vrot.slane %v1899_v20, 9 }
  0xb5   : > { %1140 = vst [vmem:[%s6958_s10 + $0x48] sm:$0xff] %v1108_v45  ;;  %v1344_v4 = vshll.u32 %v1179_v55, 16  ;;  %v1348_v5 = vshrl.u32 %v1179_v55, 16  ;;  %v3205_v55 = vunpack.c.l.b16 %v2888_v42  ;;  %v7006_v1 = vrot.slane %v2909_v48, 5  ;;  %v2749_v42 = vld [vmem:[#allocation2 + $0x54] sm:$0xf] }
  0xb6   : > { %5876 = vmatmul.msk.bf16.gmra.mxu2 %vm957_vm9, %v2163_v0  ;;  %v1338_v0 = vshll.u32 %v1178_v49, 16  ;;  %v2017_v49 = vsel %vm6877_vm15, %v2015_v38, %v2016_v36  ;;  %v473_v43 = vrot.slane %v6559_v46, 4  ;;  %v2021_v46 = vsel %vm6877_vm15, %v5862_v31, %v2020_v13 }
  0xb7   : > { %v6987_v25 = vrot.slane %v1344_v4, 5  ;;  %v1350_v19 = vrot.slane %v1348_v5, 4  ;;  %v7008_v4 = vpop.f32.mrf.mxu0  ;;  %v1359_v5 = vshrl.u32 %v1181_v59, 16 }
  0xb8   : > { %5957 = vmatmul.msk.bf16.gmra.mxu3 %vm957_vm9, %v6176_v10  ;;  %v1896_v10 = vld [vmem:[#allocation2 + $0x30] sm:$0xe]  ;;  %v1340_v24 = vrot.slane %v1338_v0, 5  ;;  %v2915_v0 = vrot.slane %v2913_v14, 4 }
  0xb9   : > { %v5861_v9 = vrot.slane %v1896_v10, 9  ;;  %v1351_v50 = vor.u32 %v1350_v19, %v6987_v25  ;;  %v2748_v10 = vld [vmem:[#allocation2 + $0x50] sm:$0x1]  ;;  %v2906_v19 = vor.u32 %v2905_v34, %v2902_v61  ;;  %v1361_v30 = vrot.slane %v1359_v5, 4  ;;  %v717_v61 = vld [vmem:[#allocation2 + $0x68] sm:$0x1] }
  0xba   : > { %5844 = vmatmul.msk.bf16.gmra.mxu1 %vm957_vm9, %v1667_v63  ;;  %v1641_v63 = vunpack.c.l.b16 %v1333_v44  ;;  %v1341_v53 = vor.u32 %v1340_v24, %v1337_v23  ;;  %v1356_v44 = vrot.slane %v1354_v51, 5  ;;  %v1901_v23 = vld [vmem:[#allocation2 + $0x44] sm:$0x1]  ;;  %v3233_v24 = vpack.c.b16 %v3206_v62, %v3205_v55  ;;  %v2750_v51 = vld [vmem:[#allocation2 + $0x58] sm:$0xf] }
  0xbb   : > { %v2014_v52 = vsel %vm6877_vm15, %v5861_v9, %v2013_v41  ;;  %v1352_v45 = vrot.slane %v1351_v50, 4  ;;  %v2916_v26 = vor.u32 %v2915_v0, %v7006_v1  ;;  %v2023_v50 = vrot.slane %v1901_v23, 5  ;;  %v2751_v23 = vld [vmem:[#allocation2 + $0x5c] sm:$0x1] }
  0xbc   : > { %v1668_v35 = vpack.c.b16 %v1641_v63, %v1640_v8  ;;  %v1342_v28 = vrot.slane %v1341_v53, 4  ;;  %v1372_v8 = vshrl.u32 %v1182_v60, 16  ;;  %v2137_v41 = vunpack.c.l.b16 %v2014_v52 }
  0xbd   : > { %v2138_v63 = vunpack.c.l.b16 %v2017_v49  ;;  %v1357_v18 = vsel %vm6860_vm12, %v1352_v45, %v1356_v44  ;;  %v2022_v53 = vrot.slane %v2020_v13, 4  ;;  %v2907_v39 = vrot.slane %v2906_v19, 4 }
  0xbe   : > { %v1347_v11 = vsel %vm6860_vm12, %v1342_v28, %v6987_v25  ;;  %v1374_v36 = vrot.slane %v1372_v8, 4  ;;  %v1643_v38 = vunpack.c.l.b16 %v1357_v18  ;;  %v1183_v25 = vld [vmem:[#allocation2 + $0x50] sm:$0x1]  ;;  %v2917_v48 = vrot.slane %v2916_v26, 4 }
  0xbf   : > { %v2165_v37 = vpack.c.b16 %v2138_v63, %v2137_v41  ;;  %v1378_v49 = vshll.u32 %v1183_v25, 16  ;;  %v2924_v55 = vshrl.u32 %v2749_v42, 16  ;;  %v2933_v28 = vshll.u32 %v2750_v51, 16  ;;  %v7026_v29 = vpop.f32.mrf.mxu0 }
  0xc0   : > { %v2937_v45 = vshrl.u32 %v2750_v51, 16  ;;  %v2024_v62 = vsel %vm6877_vm15, %v2022_v53, %v2023_v50  ;;  %v2912_v0 = vsel %vm6860_vm12, %v2907_v39, %v7006_v1  ;;  %v2943_v31 = vshll.u32 %v2751_v23, 16 }
  0xc1   : > { %v1380_v41 = vrot.slane %v1378_v49, 5  ;;  %v2926_v63 = vrot.slane %v2924_v55, 4  ;;  %v7040_v18 = vrot.slane %v2933_v28, 5  ;;  %v3207_v19 = vunpack.c.l.b16 %v2912_v0 }
  0xc2   : > { %v2939_v13 = vrot.slane %v2937_v45, 4 }
  0xc4   : > { %5975 = vmatmul.msk.bf16.gmra.mxu0 %vm957_vm9, %v3232_v6  ;;  %v1362_v6 = vshll.u32 %v1181_v59, 16 }
  0xc6   : > { %5877 = vmatmul.msk.bf16.gmra.mxu2 %vm957_vm9, %v2164_v7  ;;  %v1368_v7 = vshll.u32 %v1182_v60, 16  ;;  %v1364_v21 = vrot.slane %v1362_v6, 5  ;;  %v2927_v60 = vshll.u32 %v2749_v42, 16  ;;  %v718_v6 = vsel %vm6440_vm4, %v473_v43, %v717_v61 }
  0xc7   : > { %719 = vst [vmem:[#allocation2 + $0x68] sm:$0x1] %v718_v6  ;;  %v2940_v42 = vor.u32 %v2939_v13, %v7040_v18 }
  0xc8   : > { %5958 = vmatmul.msk.bf16.gmra.mxu3 %vm957_vm9, %v6177_v27  ;;  %v2919_v27 = vshll.u32 %v2748_v10, 16  ;;  %v7016_v9 = vrot.slane %v1368_v7, 5  ;;  %v1365_v58 = vor.u32 %v1364_v21, %v1361_v30  ;;  %v2929_v1 = vrot.slane %v2927_v60, 5  ;;  %v1185_v30 = vld [vmem:[#allocation2 + $0x58] sm:$0xf] }
  0xc9   : > { %v2139_v21 = vunpack.c.l.b16 %v2021_v46  ;;  %v1392_v43 = vshll.u32 %v1185_v30, 16  ;;  %v1902_v60 = vld [vmem:[#allocation2 + $0x48] sm:$0xe]  ;;  %v2941_v45 = vrot.slane %v2940_v42, 4 }
  0xca   : > { %5845 = vmatmul.msk.bf16.gmra.mxu1 %vm957_vm9, %v1668_v35  ;;  %v1642_v35 = vunpack.c.l.b16 %v1347_v11  ;;  %v2921_v14 = vrot.slane %v2919_v27, 5  ;;  %v1375_v52 = vor.u32 %v1374_v36, %v7016_v9  ;;  %v1366_v8 = vrot.slane %v1365_v58, 4  ;;  %v1184_v27 = vld [vmem:[#allocation2 + $0x54] sm:$0xf] }
  0xcb   : > { %v2140_v36 = vunpack.c.l.b16 %v2024_v62  ;;  %v2930_v25 = vor.u32 %v2929_v1, %v2926_v63  ;;  %v1383_v50 = vshrl.u32 %v1184_v27, 16  ;;  %v1386_v51 = vshll.u32 %v1184_v27, 16  ;;  %v1904_v62 = vld [vmem:[#allocation2 + $0x50] sm:$0x1]  ;;  %v2753_v1 = vld [vmem:[#allocation2 + $0x64] sm:$0xf] }
  0xcc   : > { %v1669_v59 = vpack.c.b16 %v1643_v38, %v1642_v35  ;;  %v2922_v5 = vsel %vm6860_vm12, %v2917_v48, %v2921_v14  ;;  %v1376_v10 = vrot.slane %v1375_v52, 4  ;;  %v1903_v38 = vld [vmem:[#allocation2 + $0x4c] sm:$0xf]  ;;  %v7056_v0 = vrot.slane %v1392_v43, 5 }
  0xcd   : > { %v3208_v26 = vunpack.c.l.b16 %v2922_v5  ;;  %v2027_v49 = vrot.slane %v1903_v38, 5  ;;  %v2931_v28 = vrot.slane %v2930_v25, 4  ;;  %v1385_v61 = vrot.slane %v1383_v50, 4 }
  0xce   : > { %v1381_v35 = vsel %vm6860_vm12, %v1376_v10, %v1380_v41  ;;  %v2752_v10 = vld [vmem:[#allocation2 + $0x60] sm:$0xf]  ;;  %v490_v41 = vrot.slane %v6608_v22, 4  ;;  %v5863_v63 = vrot.slane %v1902_v60, 9  ;;  %v2961_v38 = vshrl.u32 %v2753_v1, 16 }
  0xcf   : > { %v3234_v48 = vpack.c.b16 %v3208_v26, %v3207_v19  ;;  %v1645_v52 = vunpack.c.l.b16 %v1381_v35  ;;  %v2936_v23 = vsel %vm6860_vm12, %v2931_v28, %v7040_v18  ;;  %v2957_v35 = vshll.u32 %v2753_v1, 16  ;;  %v1905_v1 = vld [vmem:[#allocation2 + $0x54] sm:$0xe] }
  0xd0   : > { %v2028_v18 = vsel %vm6877_vm15, %v5863_v63, %v2027_v49 }
  0xd1   : > { %v7085_v28 = vrot.slane %v2957_v35, 5 }
  0xd4   : > { %5976 = vmatmul.msk.bf16.gmra.mxu0 %vm957_vm9, %v3233_v24 }
  0xd6   : > { %5878 = vmatmul.msk.bf16.gmra.mxu2 %vm957_vm9, %v2165_v37  ;;  %v1371_v37 = vsel %vm6860_vm12, %v1366_v8, %v7016_v9  ;;  %v2166_v9 = vpack.c.b16 %v2140_v36, %v2139_v21  ;;  %v1186_v8 = vld [vmem:[#allocation2 + $0x5c] sm:$0x1]  ;;  %v724_v21 = vld [vmem:[#allocation2 + $0x74] sm:$0x1] }
  0xd7   : > { %v1044_v44 = vpop.f32.mrf.mxu1  ;;  %v1644_v58 = vunpack.c.l.b16 %v1371_v37  ;;  %v1402_v27 = vshll.u32 %v1186_v8, 16  ;;  %v2951_v37 = vshll.u32 %v2752_v10, 16 }
  0xd8   : > { %5959 = vmatmul.msk.bf16.gmra.mxu3 %vm957_vm9, %v6178_v32  ;;  %v1109_v34 = vadd.f32 %v6941_v16, %v1044_v44  ;;  %v1396_v32 = vshrl.u32 %v1185_v30, 16  ;;  %v2945_v44 = vrot.slane %v2943_v31, 5  ;;  %v2948_v30 = vshrl.u32 %v2752_v10, 16 }
  0xd9   : > { %v1059_v7 = vpop.f32.mrf.mxu2  ;;  %v1670_v13 = vpack.c.b16 %v1645_v52, %v1644_v58  ;;  %v725_v31 = vsel %vm6440_vm4, %v490_v41, %v724_v21  ;;  %v1404_v58 = vrot.slane %v1402_v27, 5  ;;  %v2953_v60 = vrot.slane %v2951_v37, 5 }
  0xda   : > { %v1115_v11 = vadd.f32 %v6941_v16, %v1059_v7  ;;  %1141 = vst [vmem:[%s6958_s10 + $0x50] sm:$0xff] %v1109_v34  ;;  %5846 = vmatmul.msk.bf16.gmra.mxu1 %vm957_vm9, %v1669_v59  ;;  %v1388_v34 = vrot.slane %v1386_v51, 5  ;;  %v1398_v5 = vrot.slane %v1396_v32, 4  ;;  %v6179_v7 = vld [vmem:[#allocation2 + $0x48] sm:$0xff]  ;;  %v3209_v51 = vunpack.c.l.b16 %v2936_v23  ;;  %v1187_v32 = vld [vmem:[#allocation2 + $0x60] sm:$0xf] }
  0xdb   : > { %v1079_v20 = vpop.f32.mrf.mxu3  ;;  %v2950_v52 = vrot.slane %v2948_v30, 4  ;;  %726 = vst [vmem:[#allocation2 + $0x74] sm:$0x1] %v725_v31 }
  0xdc   : > { %1147 = vst [vmem:[%s6958_s10 + $0x80] sm:$0xff] %v1115_v11  ;;  %v1123_v24 = vadd.f32 %v6941_v16, %v1079_v20  ;;  %v2029_v11 = vrot.slane %v2027_v49, 4  ;;  %v2030_v20 = vrot.slane %v1904_v62, 5  ;;  %v1389_v26 = vor.u32 %v1388_v34, %v1385_v61  ;;  %v2754_v34 = vld [vmem:[#allocation2 + $0x68] sm:$0x1] }
  0xdd   : > { %v1399_v22 = vor.u32 %v1398_v5, %v7056_v0  ;;  %v2141_v5 = vunpack.c.l.b16 %v2028_v18  ;;  %v507_v18 = vrot.slane %v6721_v40, 4 }
  0xde   : > { %1155 = vst [vmem:[%s6958_s10 + $0xc0] sm:$0xff] %v1123_v24  ;;  %v2946_v24 = vsel %vm6860_vm12, %v2941_v45, %v2945_v44  ;;  %v2031_v50 = vsel %vm6877_vm15, %v2029_v11, %v2030_v20  ;;  %v2963_v45 = vrot.slane %v2961_v38, 4  ;;  %v1407_v44 = vshrl.u32 %v1187_v32, 16  ;;  %v1189_v38 = vld [vmem:[#allocation2 + $0x68] sm:$0x1] }
  0xdf   : > { %v1046_v53 = vpop.f32.mrf.mxu1  ;;  %v3210_v43 = vunpack.c.l.b16 %v2946_v24  ;;  %v2954_v20 = vor.u32 %v2953_v60, %v2950_v52  ;;  %v2967_v24 = vshll.u32 %v2754_v34, 16  ;;  %v731_v34 = vld [vmem:[#allocation2 + $0x80] sm:$0x1] }
  0xe0   : > { %v1110_v39 = vadd.f32 %v6941_v16, %v1046_v53  ;;  %v2964_v23 = vor.u32 %v2963_v45, %v7085_v28 }
  0xe1   : > { %v1061_v14 = vpop.f32.mrf.mxu2  ;;  %v7052_v55 = vpop.f32.mrf.mxu0  ;;  %v3235_v63 = vpack.c.b16 %v3210_v43, %v3209_v51  ;;  %v2756_v43 = vld [vmem:[#allocation2 + $0x70] sm:$0xf] }
  0xe2   : > { %v1116_v59 = vadd.f32 %v6941_v16, %v1061_v14  ;;  %1142 = vst [vmem:[%s6958_s10 + $0x58] sm:$0xff] %v1110_v39  ;;  %v1188_v39 = vld [vmem:[#allocation2 + $0x64] sm:$0xf]  ;;  %v1390_v14 = vrot.slane %v1389_v26, 4  ;;  %v2981_v45 = vshll.u32 %v2756_v43, 16 }
  0xe3   : > { %v1081_v46 = vpop.f32.mrf.mxu3  ;;  %v1416_v62 = vshll.u32 %v1188_v39, 16  ;;  %v1420_v61 = vshrl.u32 %v1188_v39, 16  ;;  %v6180_v39 = vld [vmem:[#allocation2 + $0x54] sm:$0xff] }
  0xe4   : > { %1148 = vst [vmem:[%s6958_s10 + $0x88] sm:$0xff] %v1116_v59  ;;  %v1124_v6 = vadd.f32 %v6941_v16, %v1081_v46  ;;  %5977 = vmatmul.msk.bf16.gmra.mxu0 %vm957_vm9, %v3234_v48  ;;  %v1906_v59 = vld [vmem:[#allocation2 + $0x58] sm:$0xf]  ;;  %v1410_v46 = vshll.u32 %v1187_v32, 16  ;;  %v1395_v8 = vsel %vm6860_vm12, %v1390_v14, %v7056_v0  ;;  %v2965_v14 = vrot.slane %v2964_v23, 4 }
  0xe5   : > { %v2034_v41 = vrot.slane %v1906_v59, 5  ;;  %v7097_v0 = vrot.slane %v1416_v62, 5  ;;  %v1422_v30 = vrot.slane %v1420_v61, 4  ;;  %v1646_v37 = vunpack.c.l.b16 %v1395_v8 }
  0xe6   : > { %5879 = vmatmul.msk.bf16.gmra.mxu2 %vm957_vm9, %v2166_v9  ;;  %1156 = vst [vmem:[%s6958_s10 + $0xc8] sm:$0xff] %v1124_v6  ;;  %v1400_v9 = vrot.slane %v1399_v22, 4  ;;  %v2142_v6 = vunpack.c.l.b16 %v2031_v50  ;;  %v1409_v22 = vrot.slane %v1407_v44, 4  ;;  %v1412_v27 = vrot.slane %v1410_v46, 5 }
  0xe7   : > { %v1049_v19 = vpop.f32.mrf.mxu1  ;;  %v2036_v50 = vrot.slane %v2034_v41, 4  ;;  %v1423_v52 = vor.u32 %v1422_v30, %v7097_v0  ;;  %v2985_v44 = vshrl.u32 %v2756_v43, 16  ;;  %v732_v8 = vsel %vm6440_vm4, %v507_v18, %v731_v34 }
  0xe8   : > { %5960 = vmatmul.msk.bf16.gmra.mxu3 %vm957_vm9, %v6179_v7  ;;  %v1111_v36 = vadd.f32 %v6941_v16, %v1049_v19  ;;  %v1405_v10 = vsel %vm6860_vm12, %v1400_v9, %v1404_v58  ;;  %v2969_v9 = vrot.slane %v2967_v24, 5  ;;  %v1413_v58 = vor.u32 %v1412_v27, %v1409_v22  ;;  %733 = vst [vmem:[#allocation2 + $0x80] sm:$0x1] %v732_v8  ;;  %v2757_v22 = vld [vmem:[#allocation2 + $0x74] sm:$0x1] }
  0xe9   : > { %v1064_v25 = vpop.f32.mrf.mxu2  ;;  %v7074_v42 = vpop.f32.mrf.mxu0  ;;  %v1647_v35 = vunpack.c.l.b16 %v1405_v10  ;;  %v7126_v23 = vrot.slane %v2981_v45, 5  ;;  %v2987_v24 = vrot.slane %v2985_v44, 4  ;;  %v1908_v44 = vld [vmem:[#allocation2 + $0x60] sm:$0xe] }
  0xea   : > { %v1117_v53 = vadd.f32 %v6941_v16, %v1064_v25  ;;  %1143 = vst [vmem:[%s6958_s10 + $0x60] sm:$0xff] %v1111_v36  ;;  %5847 = vmatmul.msk.bf16.gmra.mxu1 %vm957_vm9, %v1670_v13  ;;  %v1907_v13 = vld [vmem:[#allocation2 + $0x5c] sm:$0x1]  ;;  %v2167_v36 = vpack.c.b16 %v2142_v6, %v2141_v5  ;;  %v2755_v25 = vld [vmem:[#allocation2 + $0x6c] sm:$0xf] }
  0xeb   : > { %v1084_v48 = vpop.f32.mrf.mxu3  ;;  %v2037_v51 = vrot.slane %v1907_v13, 5  ;;  %v2972_v40 = vshrl.u32 %v2755_v25, 16  ;;  %v1671_v59 = vpack.c.b16 %v1647_v35, %v1646_v37  ;;  %v2975_v60 = vshll.u32 %v2755_v25, 16  ;;  %v1191_v37 = vld [vmem:[#allocation2 + $0x70] sm:$0xf] }
  0xec   : > { %1149 = vst [vmem:[%s6958_s10 + $0x90] sm:$0xff] %v1117_v53  ;;  %v1125_v49 = vadd.f32 %v6941_v16, %v1084_v48  ;;  %v5864_v53 = vrot.slane %v1905_v1, 9  ;;  %v2955_v48 = vrot.slane %v2954_v20, 4 }
  0xed   : > { %v2038_v61 = vsel %vm6877_vm15, %v2036_v50, %v2037_v51  ;;  %v2974_v13 = vrot.slane %v2972_v40, 4  ;;  %v2988_v50 = vor.u32 %v2987_v24, %v7126_v23  ;;  %v2991_v51 = vshll.u32 %v2757_v22, 16 }
  0xee   : > { %1157 = vst [vmem:[%s6958_s10 + $0xd0] sm:$0xff] %v1125_v49  ;;  %v1426_v49 = vshll.u32 %v1189_v38, 16  ;;  %v2035_v62 = vsel %vm6877_vm15, %v5864_v53, %v2034_v41  ;;  %v2960_v6 = vsel %vm6860_vm12, %v2955_v48, %v7085_v28  ;;  %v2977_v28 = vrot.slane %v2975_v60, 5 }
  0xef   : > { %v1051_v7 = vpop.f32.mrf.mxu1  ;;  %v3211_v30 = vunpack.c.l.b16 %v2960_v6  ;;  %v2143_v35 = vunpack.c.l.b16 %v2035_v62  ;;  %v2144_v38 = vunpack.c.l.b16 %v2038_v61  ;;  %v1440_v48 = vshll.u32 %v1191_v37, 16 }
  0xf0   : > { %v1112_v11 = vadd.f32 %v6941_v16, %v1051_v7  ;;  %v2970_v7 = vsel %vm6860_vm12, %v2965_v14, %v2969_v9  ;;  %v1428_v1 = vrot.slane %v1426_v49, 5  ;;  %v2978_v53 = vor.u32 %v2977_v28, %v2974_v13  ;;  %v2758_v13 = vld [vmem:[#allocation2 + $0x78] sm:$0xf] }
  0xf1   : > { %v1066_v19 = vpop.f32.mrf.mxu2  ;;  %v7095_v26 = vpop.f32.mrf.mxu0  ;;  %v1444_v14 = vshrl.u32 %v1191_v37, 16  ;;  %v2989_v62 = vrot.slane %v2988_v50, 4  ;;  %v2993_v61 = vrot.slane %v2991_v51, 5  ;;  %v7142_v8 = vrot.slane %v1440_v48, 5 }
  0xf2   : > { %v1118_v21 = vadd.f32 %v6941_v16, %v1066_v19  ;;  %1144 = vst [vmem:[%s6958_s10 + $0x68] sm:$0xff] %v1112_v11  ;;  %v1424_v11 = vrot.slane %v1423_v52, 4  ;;  %v5865_v28 = vrot.slane %v1908_v44, 9  ;;  %v1912_v44 = vld [vmem:[#allocation2 + $0x70] sm:$0xf] }
  0xf3   : > { %v1086_v31 = vpop.f32.mrf.mxu3 }
  0xf4   : > { %1150 = vst [vmem:[%s6958_s10 + $0x98] sm:$0xff] %v1118_v21  ;;  %v1126_v32 = vadd.f32 %v6941_v16, %v1086_v31  ;;  %5978 = vmatmul.msk.bf16.gmra.mxu0 %vm957_vm9, %v3235_v63  ;;  %v1414_v63 = vrot.slane %v1413_v58, 4  ;;  %v3212_v21 = vunpack.c.l.b16 %v2970_v7  ;;  %v1429_v18 = vsel %vm6860_vm12, %v1424_v11, %v1428_v1  ;;  %v1909_v31 = vld [vmem:[#allocation2 + $0x64] sm:$0xf]  ;;  %v1192_v1 = vld [vmem:[#allocation2 + $0x74] sm:$0x1] }
  0xf5   : > { %v1649_v40 = vunpack.c.l.b16 %v1429_v18  ;;  %v6181_v11 = vld [vmem:[#allocation2 + $0x60] sm:$0xff]  ;;  %v2999_v18 = vshll.u32 %v2758_v13, 16 }
  0xf6   : > { %5880 = vmatmul.msk.bf16.gmra.mxu2 %vm957_vm9, %v2167_v36  ;;  %1158 = vst [vmem:[%s6958_s10 + $0xd8] sm:$0xff] %v1126_v32  ;;  %v1190_v36 = vld [vmem:[#allocation2 + $0x6c] sm:$0xf]  ;;  %v1419_v25 = vsel %vm6860_vm12, %v1414_v63, %v7097_v0  ;;  %v3236_v58 = vpack.c.b16 %v3212_v21, %v3211_v30  ;;  %v2168_v0 = vpack.c.b16 %v2144_v38, %v2143_v35  ;;  %v1450_v35 = vshll.u32 %v1192_v1, 16 }
  0xf7   : > { %v1054_v46 = vpop.f32.mrf.mxu1  ;;  %v1431_v32 = vshrl.u32 %v1190_v36, 16  ;;  %v1648_v49 = vunpack.c.l.b16 %v1419_v25  ;;  %v2994_v21 = vsel %vm6860_vm12, %v2989_v62, %v2993_v61  ;;  %v2996_v38 = vshrl.u32 %v2758_v13, 16  ;;  %v738_v25 = vld [vmem:[#allocation2 + $0x8c] sm:$0x1] }
  0xf8   : > { %5961 = vmatmul.msk.bf16.gmra.mxu3 %vm957_vm9, %v6180_v39  ;;  %v1113_v5 = vadd.f32 %v6941_v16, %v1054_v46  ;;  %v1434_v39 = vshll.u32 %v1190_v36, 16  ;;  %v2979_v46 = vrot.slane %v2978_v53, 4  ;;  %v541_v1 = vrot.slane %v6570_v54, 4 }
  0xf9   : > { %v1069_v10 = vpop.f32.mrf.mxu2  ;;  %v7121_v41 = vpop.f32.mrf.mxu0  ;;  %v1433_v6 = vrot.slane %v1431_v32, 4  ;;  %v1672_v22 = vpack.c.b16 %v1649_v40, %v1648_v49  ;;  %v1452_v40 = vrot.slane %v1450_v35, 5 }
  0xfa   : > { %v1119_v20 = vadd.f32 %v6941_v16, %v1069_v10  ;;  %1145 = vst [vmem:[%s6958_s10 + $0x70] sm:$0xff] %v1113_v5  ;;  %5848 = vmatmul.msk.bf16.gmra.mxu1 %vm957_vm9, %v1671_v59  ;;  %v2041_v59 = vrot.slane %v1909_v31, 5  ;;  %v1910_v5 = vld [vmem:[#allocation2 + $0x68] sm:$0x1]  ;;  %v1436_v7 = vrot.slane %v1434_v39, 5  ;;  %v1446_v10 = vrot.slane %v1444_v14, 4 }
  0xfb   : > { %v1089_v19 = vpop.f32.mrf.mxu3  ;;  %v2984_v30 = vsel %vm6860_vm12, %v2979_v46, %v7126_v23  ;;  %v3214_v14 = vunpack.c.l.b16 %v2994_v21  ;;  %v3001_v46 = vrot.slane %v2999_v18, 5 }
  0xfc   : > { %1151 = vst [vmem:[%s6958_s10 + $0xa0] sm:$0xff] %v1119_v20  ;;  %v1127_v27 = vadd.f32 %v6941_v16, %v1089_v19  ;;  %v524_v20 = vrot.slane %v6803_v47, 4  ;;  %v2043_v24 = vrot.slane %v2041_v59, 4  ;;  %v2759_v19 = vld [vmem:[#allocation2 + $0x7c] sm:$0xf]  ;;  %v1437_v37 = vor.u32 %v1436_v7, %v1433_v6 }
  0xfd   : > { %v1447_v47 = vor.u32 %v1446_v10, %v7142_v8  ;;  %v3005_v31 = vshll.u32 %v2759_v19, 16  ;;  %v3009_v53 = vshrl.u32 %v2759_v19, 16  ;;  %v2042_v23 = vsel %vm6877_vm15, %v5865_v28, %v2041_v59  ;;  %v2760_v10 = vld [vmem:[#allocation2 + $0x80] sm:$0x1]  ;;  %v1911_v19 = vld [vmem:[#allocation2 + $0x6c] sm:$0xe] }
  0xfe   : > { %1159 = vst [vmem:[%s6958_s10 + $0xe0] sm:$0xff] %v1127_v27  ;;  %v2044_v27 = vrot.slane %v1910_v5, 5  ;;  %v3213_v48 = vunpack.c.l.b16 %v2984_v30  ;;  %v2998_v59 = vrot.slane %v2996_v38, 4 }
  0xff   : > { %v1056_v43 = vpop.f32.mrf.mxu1  ;;  %v1448_v49 = vrot.slane %v1447_v47, 4  ;;  %v7171_v62 = vrot.slane %v3005_v31, 5  ;;  %v3011_v61 = vrot.slane %v3009_v53, 4 }
 0x100   : > { %v1114_v9 = vadd.f32 %v6941_v16, %v1056_v43  ;;  %v739_v43 = vsel %vm6440_vm4, %v524_v20, %v738_v25  ;;  %v2045_v39 = vsel %vm6877_vm15, %v2043_v24, %v2044_v27  ;;  %v2048_v24 = vrot.slane %v1912_v44, 5 }
 0x101   : > { %v1071_v52 = vpop.f32.mrf.mxu2  ;;  %v7138_v60 = vpop.f32.mrf.mxu0  ;;  %740 = vst [vmem:[#allocation2 + $0x8c] sm:$0x1] %v739_v43  ;;  %v1453_v28 = vsel %vm6860_vm12, %v1448_v49, %v1452_v40  ;;  %v3237_v27 = vpack.c.b16 %v3214_v14, %v3213_v48  ;;  %v3002_v30 = vor.u32 %v3001_v46, %v2998_v59  ;;  %v3012_v21 = vor.u32 %v3011_v61, %v7171_v62  ;;  %v2761_v43 = vld [vmem:[#allocation2 + $0x84] sm:$0xf] }
 0x102   : > { %v1120_v45 = vadd.f32 %v6941_v16, %v1071_v52  ;;  %1146 = vst [vmem:[%s6958_s10 + $0x78] sm:$0xff] %v1114_v9  ;;  %v1193_v9 = vld [vmem:[#allocation2 + $0x78] sm:$0xf]  ;;  %v5866_v14 = vrot.slane %v1911_v19, 9 }
 0x103   : > { %v1091_v34 = vpop.f32.mrf.mxu3  ;;  %v1458_v5 = vshll.u32 %v1193_v9, 16  ;;  %v3003_v49 = vrot.slane %v3002_v30, 4  ;;  %v3013_v40 = vrot.slane %v3012_v21, 4 }
 0x104   : > { %1152 = vst [vmem:[%s6958_s10 + $0xa8] sm:$0xff] %v1120_v45  ;;  %v1128_v63 = vadd.f32 %v6941_v16, %v1091_v34  ;;  %5979 = vmatmul.msk.bf16.gmra.mxu0 %vm957_vm9, %v3236_v58  ;;  %v1194_v58 = vld [vmem:[#allocation2 + $0x7c] sm:$0xf]  ;;  %v1455_v34 = vshrl.u32 %v1193_v9, 16  ;;  %v2050_v9 = vrot.slane %v2048_v24, 4 }
 0x105   : > { %v1464_v6 = vshll.u32 %v1194_v58, 16  ;;  %v1468_v7 = vshrl.u32 %v1194_v58, 16  ;;  %v1460_v38 = vrot.slane %v1458_v5, 5 }
 0x106   : > { %5881 = vmatmul.msk.bf16.gmra.mxu2 %vm957_vm9, %v2168_v0  ;;  %1160 = vst [vmem:[%s6958_s10 + $0xe8] sm:$0xff] %v1128_v63  ;;  %v1438_v0 = vrot.slane %v1437_v37, 4  ;;  %v2145_v63 = vunpack.c.l.b16 %v2042_v23  ;;  %v3015_v37 = vshll.u32 %v2760_v10, 16  ;;  %v1457_v54 = vrot.slane %v1455_v34, 4  ;;  %v1195_v23 = vld [vmem:[#allocation2 + $0x80] sm:$0x1] }
 0x107   : > { %v7155_v36 = vpop.f32.mrf.mxu1  ;;  %v7185_v25 = vrot.slane %v1464_v6, 5  ;;  %v1474_v46 = vshll.u32 %v1195_v23, 16  ;;  %v3023_v34 = vshll.u32 %v2761_v43, 16  ;;  %v2049_v10 = vsel %vm6877_vm15, %v5866_v14, %v2048_v24  ;;  %v1196_v23 = vld [vmem:[#allocation2 + $0x84] sm:$0xf] }
 0x108   : > { %5962 = vmatmul.msk.bf16.gmra.mxu3 %vm957_vm9, %v6181_v11  ;;  %v2146_v11 = vunpack.c.l.b16 %v2045_v39  ;;  %v1443_v20 = vsel %vm6860_vm12, %v1438_v0, %v7142_v8  ;;  %v1470_v8 = vrot.slane %v1468_v7, 4  ;;  %v6182_v0 = vld [vmem:[#allocation2 + $0x6c] sm:$0xff]  ;;  %v3017_v59 = vrot.slane %v3015_v37, 5 }
 0x109   : > { %v1074_v50 = vpop.f32.mrf.mxu2  ;;  %v7161_v51 = vpop.f32.mrf.mxu0  ;;  %v1650_v53 = vunpack.c.l.b16 %v1443_v20  ;;  %v1476_v37 = vrot.slane %v1474_v46, 5 }
 0x10a   : > { %v1121_v32 = vadd.f32 %v6941_v16, %v1074_v50  ;;  %5849 = vmatmul.msk.bf16.gmra.mxu1 %vm957_vm9, %v1672_v22  ;;  %v1913_v22 = vld [vmem:[#allocation2 + $0x74] sm:$0x1]  ;;  %v2169_v31 = vpack.c.b16 %v2146_v11, %v2145_v63  ;;  %v1651_v50 = vunpack.c.l.b16 %v1453_v28  ;;  %v1471_v44 = vor.u32 %v1470_v8, %v7185_v25  ;;  %v745_v11 = vld [vmem:[#allocation2 + $0x98] sm:$0x1] }
 0x10b   : > { %v1094_v52 = vpop.f32.mrf.mxu3  ;;  %v2051_v58 = vrot.slane %v1913_v22, 5  ;;  %v3008_v28 = vsel %vm6860_vm12, %v3003_v49, %v7171_v62  ;;  %v3018_v19 = vsel %vm6860_vm12, %v3013_v40, %v3017_v59  ;;  %v746_v22 = vsel %vm6440_vm4, %v541_v1, %v745_v11  ;;  %v1916_v11 = vld [vmem:[#allocation2 + $0x80] sm:$0x1] }
 0x10c   : > { %1153 = vst [vmem:[%s6958_s10 + $0xb0] sm:$0xff] %v1121_v32  ;;  %v1129_v45 = vadd.f32 %v6941_v16, %v1094_v52  ;;  %v7191_v32 = vld [vmem:[%s8052_s2] ss:$0 sm:$0xff]  ;;  %v2762_v52 = vld [vmem:[#allocation2 + $0x88] sm:$0xf]  ;;  %v1673_v61 = vpack.c.b16 %v1651_v50, %v1650_v53  ;;  %v1472_v21 = vrot.slane %v1471_v44, 4  ;;  %v3215_v53 = vunpack.c.l.b16 %v3008_v28 }
 0x10d   : > { %v1099_v39 = vadd.f32 %v7191_v32, %v7008_v4  ;;  %v3020_v4 = vshrl.u32 %v2761_v43, 16  ;;  %v3029_v5 = vshll.u32 %v2762_v52, 16  ;;  %v3033_v6 = vshrl.u32 %v2762_v52, 16  ;;  %747 = vst [vmem:[#allocation2 + $0x98] sm:$0x1] %v746_v22 }
 0x10e   : > { %1161 = vst [vmem:[%s6958_s10 + $0xf0] sm:$0xff] %v1129_v45  ;;  %v1461_v45 = vor.u32 %v1460_v38, %v1457_v54  ;;  %v2052_v63 = vsel %vm6877_vm15, %v2050_v9, %v2051_v58  ;;  %v3025_v54 = vrot.slane %v3023_v34, 5  ;;  %v1100_v1 = vadd.f32 %v7191_v32, %v7026_v29  ;;  %v1197_v43 = vld [vmem:[#allocation2 + $0x88] sm:$0xf]  ;;  %v7229_v52 = vld [vmem:[#allocation2 + $0x7c] sm:$0xf] }
 0x10f   : > { %v7175_v13 = vpop.f32.mrf.mxu1  ;;  %v1820_v20 = vadd.f32 %v7155_v36, %v1099_v39  ;;  %v7219_v38 = vrot.slane %v3029_v5, 5  ;;  %v3035_v62 = vrot.slane %v3033_v6, 4  ;;  %v3216_v50 = vunpack.c.l.b16 %v3018_v19  ;;  %v1914_v5 = vld [vmem:[#allocation2 + $0x78] sm:$0xe] }
 0x110   : > { %v1462_v30 = vrot.slane %v1461_v45, 4  ;;  %v2147_v39 = vunpack.c.l.b16 %v2049_v10  ;;  %v1477_v9 = vsel %vm6860_vm12, %v1472_v21, %v1476_v37  ;;  %v1479_v40 = vshrl.u32 %v1196_v23, 16 }
 0x111   : > { %v1076_v47 = vpop.f32.mrf.mxu2  ;;  %v7183_v35 = vpop.f32.mrf.mxu0  ;;  %v1482_v59 = vshll.u32 %v1196_v23, 16  ;;  %v1488_v45 = vshll.u32 %v1197_v43, 16  ;;  %v1492_v44 = vshrl.u32 %v1197_v43, 16  ;;  %v1821_v46 = vadd.f32 %v7175_v13, %v1100_v1 }
 0x112   : > { %v1122_v18 = vadd.f32 %v6941_v16, %v1076_v47  ;;  %v3022_v47 = vrot.slane %v3020_v4, 4  ;;  %v1467_v14 = vsel %vm6860_vm12, %v1462_v30, %v7185_v25  ;;  %v3238_v25 = vpack.c.b16 %v3216_v50, %v3215_v53  ;;  %v2765_v50 = vld [vmem:[#allocation2 + $0x94] sm:$0xf] }
 0x113   : > { %v1096_v48 = vpop.f32.mrf.mxu3  ;;  %v1652_v34 = vunpack.c.l.b16 %v1467_v14  ;;  %v2055_v6 = vrot.slane %v7229_v52, 5  ;;  %v1484_v30 = vrot.slane %v1482_v59, 5  ;;  %v7239_v13 = vrot.slane %v1488_v45, 5  ;;  %v752_v52 = vld [vmem:[#allocation2 + $0xa4] sm:$0x1] }
 0x114   : > { %1154 = vst [vmem:[%s6958_s10 + $0xb8] sm:$0xff] %v1122_v18  ;;  %v1130_v16 = vadd.f32 %v7191_v32, %v1096_v48  ;;  %5980 = vmatmul.msk.bf16.gmra.mxu0 %vm957_vm9, %v3237_v27  ;;  %v2763_v18 = vld [vmem:[#allocation2 + $0x8c] sm:$0x1]  ;;  %v2148_v48 = vunpack.c.l.b16 %v2052_v63  ;;  %v3026_v29 = vor.u32 %v3025_v54, %v3022_v47  ;;  %v1494_v21 = vrot.slane %v1492_v44, 4  ;;  %v6183_v54 = vld [vmem:[#allocation2 + $0x78] sm:$0xff] }
 0x115   : > { %v558_v37 = vrot.slane %v6679_v57, 4  ;;  %v1101_v47 = vadd.f32 %v7191_v32, %v7052_v55  ;;  %v5867_v1 = vrot.slane %v1914_v5, 9  ;;  %v2058_v53 = vrot.slane %v1916_v11, 5  ;;  %v7270_v11 = vld [vmem:[#allocation2 + $0x88] sm:$0xf] }
 0x116   : > { %5882 = vmatmul.msk.bf16.gmra.mxu2 %vm957_vm9, %v2169_v31  ;;  %1162 = vst [vmem:[%s6958_s10 + $0xf8] sm:$0xff] %v1130_v16  ;;  %v3036_v16 = vor.u32 %v3035_v62, %v7219_v38  ;;  %v1198_v62 = vld [vmem:[#allocation2 + $0x8c] sm:$0x1]  ;;  %v1495_v14 = vor.u32 %v1494_v21, %v7239_v13 }
 0x117   : > { %v7201_v7 = vpop.f32.mrf.mxu1  ;;  %v2056_v59 = vsel %vm6877_vm15, %v5867_v1, %v2055_v6 }
 0x118   : > { %5963 = vmatmul.msk.bf16.gmra.mxu3 %vm957_vm9, %v6182_v0  ;;  %v3039_v0 = vshll.u32 %v2763_v18, 16  ;;  %v3037_v28 = vrot.slane %v3036_v16, 4  ;;  %v1822_v23 = vadd.f32 %v7201_v7, %v1101_v47  ;;  %v575_v16 = vrot.slane %v6740_v56, 4 }
 0x119   : > { %v2237_v27 = vpop.f32.mrf.mxu2  ;;  %v7216_v24 = vpop.f32.mrf.mxu0 }
 0x11a   : > { %v2317_v36 = vadd.f32 %v2237_v27, %v1820_v20  ;;  %5850 = vmatmul.msk.bf16.gmra.mxu1 %vm957_vm9, %v1673_v61  ;;  %v2170_v61 = vpack.c.b16 %v2148_v48, %v2147_v39  ;;  %v3027_v20 = vrot.slane %v3026_v29, 4  ;;  %v3041_v19 = vrot.slane %v3039_v0, 5 }
 0x11b   : > { %v2587_v8 = vpop.f32.mrf.mxu3  ;;  %v1481_v27 = vrot.slane %v1479_v40, 4  ;;  %v3057_v29 = vshrl.u32 %v2765_v50, 16  ;;  %v1102_v0 = vadd.f32 %v7191_v32, %v7074_v42  ;;  %v1496_v42 = vrot.slane %v1495_v14, 4 }
 0x11c   : > { %v2667_v31 = vadd.f32 %v2587_v8, %v2317_v36  ;;  %v2764_v8 = vld [vmem:[#allocation2 + $0x90] sm:$0xf]  ;;  %v3032_v55 = vsel %vm6860_vm12, %v3027_v20, %v7219_v38  ;;  %v3042_v43 = vsel %vm6860_vm12, %v3037_v28, %v3041_v19  ;;  %v753_v38 = vsel %vm6440_vm4, %v558_v37, %v752_v52  ;;  %v2766_v28 = vld [vmem:[#allocation2 + $0x98] sm:$0x1] }
 0x11d   : > { %v1485_v48 = vor.u32 %v1484_v30, %v1481_v27  ;;  %v3047_v7 = vshll.u32 %v2764_v8, 16  ;;  %754 = vst [vmem:[#allocation2 + $0xa4] sm:$0x1] %v753_v38  ;;  %v3059_v27 = vrot.slane %v3057_v29, 4 }
 0x11e   : > { %v3385_v58 = vadd.f32 %v7183_v35, %v2667_v31  ;;  %v1653_v35 = vunpack.c.l.b16 %v1477_v9  ;;  %v2057_v31 = vrot.slane %v2055_v6, 4  ;;  %v1498_v9 = vshll.u32 %v1198_v62, 16 }
 0x11f   : > { %v7232_v49 = vpop.f32.mrf.mxu1  ;;  %v1486_v5 = vrot.slane %v1485_v48, 4  ;;  %v3049_v19 = vrot.slane %v3047_v7, 5  ;;  %v2767_v7 = vld [vmem:[#allocation2 + $0x9c] sm:$0xf] }
 0x120   : > { %3417 = vst [vmem:[%s6958_s10] sm:$0xff] %v3385_v58  ;;  %v1674_v18 = vpack.c.b16 %v1653_v35, %v1652_v34  ;;  %v3044_v58 = vshrl.u32 %v2764_v8, 16  ;;  %v1200_v34 = vld [vmem:[#allocation2 + $0x94] sm:$0xf] }
 0x121   : > { %v2239_v4 = vpop.f32.mrf.mxu2  ;;  %v7237_v10 = vpop.f32.mrf.mxu0  ;;  %v1512_v37 = vshll.u32 %v1200_v34, 16  ;;  %v1516_v47 = vshrl.u32 %v1200_v34, 16  ;;  %v1491_v1 = vsel %vm6860_vm12, %v1486_v5, %v7239_v13  ;;  %v6184_v34 = vld [vmem:[#allocation2 + $0x84] sm:$0xff] }
 0x122   : > { %v2318_v63 = vadd.f32 %v2239_v4, %v1821_v46  ;;  %v2059_v46 = vsel %vm6877_vm15, %v2057_v31, %v2058_v53  ;;  %v3218_v4 = vunpack.c.l.b16 %v3042_v43  ;;  %v3046_v6 = vrot.slane %v3044_v58, 4 }
 0x123   : > { %v2589_v22 = vpop.f32.mrf.mxu3  ;;  %v2150_v62 = vunpack.c.l.b16 %v2059_v46  ;;  %v2062_v53 = vrot.slane %v7270_v11, 5  ;;  %v7290_v58 = vrot.slane %v1512_v37, 5  ;;  %v1518_v52 = vrot.slane %v1516_v47, 4 }
 0x124   : > { %v2668_v36 = vadd.f32 %v2589_v22, %v2318_v63  ;;  %5981 = vmatmul.msk.bf16.gmra.mxu0 %vm957_vm9, %v3238_v25  ;;  %v3217_v25 = vunpack.c.l.b16 %v3032_v55  ;;  %v1500_v63 = vrot.slane %v1498_v9, 5  ;;  %v3050_v43 = vor.u32 %v3049_v19, %v3046_v6 }
 0x125   : > { %v1654_v38 = vunpack.c.l.b16 %v1491_v1  ;;  %v1519_v11 = vor.u32 %v1518_v52, %v7290_v58 }
 0x126   : > { %5883 = vmatmul.msk.bf16.gmra.mxu2 %vm957_vm9, %v2170_v61  ;;  %v3386_v57 = vadd.f32 %v7216_v24, %v2668_v36  ;;  %v3053_v24 = vshll.u32 %v2765_v50, 16  ;;  %v1199_v61 = vld [vmem:[#allocation2 + $0x90] sm:$0xf]  ;;  %v1103_v36 = vadd.f32 %v7191_v32, %v7095_v26  ;;  %v1501_v31 = vsel %vm6860_vm12, %v1496_v42, %v1500_v63  ;;  %v1917_v26 = vld [vmem:[#allocation2 + $0x84] sm:$0xe] }
 0x127   : > { %v7253_v39 = vpop.f32.mrf.mxu1  ;;  %v1503_v30 = vshrl.u32 %v1199_v61, 16  ;;  %v1506_v21 = vshll.u32 %v1199_v61, 16  ;;  %v3063_v50 = vshll.u32 %v2766_v28, 16  ;;  %v3239_v55 = vpack.c.b16 %v3218_v4, %v3217_v25  ;;  %v2768_v4 = vld [vmem:[#allocation2 + $0xa0] sm:$0xf] }
 0x128   : > { %5964 = vmatmul.msk.bf16.gmra.mxu3 %vm957_vm9, %v6183_v54  ;;  %3418 = vst [vmem:[%s6958_s10 + $0x8] sm:$0xff] %v3386_v57  ;;  %v7272_v22 = vrot.slane %v3053_v24, 5  ;;  %v2149_v54 = vunpack.c.l.b16 %v2056_v59  ;;  %v1919_v57 = vld [vmem:[#allocation2 + $0x8c] sm:$0x1]  ;;  %v5868_v59 = vrot.slane %v1917_v26, 9  ;;  %v3068_v42 = vshrl.u32 %v2767_v7, 16 }
 0x129   : > { %v2242_v40 = vpop.f32.mrf.mxu2  ;;  %v7265_v45 = vpop.f32.mrf.mxu0  ;;  %v1505_v9 = vrot.slane %v1503_v30, 4  ;;  %v1508_v13 = vrot.slane %v1506_v21, 5  ;;  %v2065_v46 = vrot.slane %v1919_v57, 5  ;;  %v3065_v25 = vrot.slane %v3063_v50, 5 }
 0x12a   : > { %v2319_v44 = vadd.f32 %v2242_v40, %v1822_v23  ;;  %5851 = vmatmul.msk.bf16.gmra.mxu1 %vm957_vm9, %v1674_v18  ;;  %v1823_v23 = vadd.f32 %v7232_v49, %v1102_v0  ;;  %v2171_v29 = vpack.c.b16 %v2150_v62, %v2149_v54  ;;  %v1655_v49 = vunpack.c.l.b16 %v1501_v31  ;;  %v1201_v0 = vld [vmem:[#allocation2 + $0x98] sm:$0x1] }
 0x12b   : > { %v2592_v35 = vpop.f32.mrf.mxu3  ;;  %v1509_v63 = vor.u32 %v1508_v13, %v1505_v9  ;;  %v1522_v6 = vshll.u32 %v1201_v0, 16  ;;  %v3081_v30 = vshrl.u32 %v2768_v4, 16  ;;  %v1104_v21 = vadd.f32 %v7191_v32, %v7121_v41 }
 0x12c   : > { %v2669_v20 = vadd.f32 %v2592_v35, %v2319_v44  ;;  %v2064_v44 = vrot.slane %v2062_v53, 4  ;;  %v3051_v35 = vrot.slane %v3050_v43, 4  ;;  %v1675_v19 = vpack.c.b16 %v1655_v49, %v1654_v38  ;;  %v1202_v43 = vld [vmem:[#allocation2 + $0x9c] sm:$0xf] }
 0x12d   : > { %v1824_v37 = vadd.f32 %v7253_v39, %v1103_v36  ;;  %v2063_v54 = vsel %vm6877_vm15, %v5868_v59, %v2062_v53  ;;  %v3070_v36 = vrot.slane %v3068_v42, 4  ;;  %v1510_v50 = vrot.slane %v1509_v63, 4 }
 0x12e   : > { %v3387_v8 = vadd.f32 %v7237_v10, %v2669_v20  ;;  %v3060_v10 = vor.u32 %v3059_v27, %v7272_v22  ;;  %v3071_v20 = vshll.u32 %v2767_v7, 16  ;;  %v3077_v27 = vshll.u32 %v2768_v4, 16 }
 0x12f   : > { %v7277_v18 = vpop.f32.mrf.mxu1  ;;  %v2066_v62 = vsel %vm6877_vm15, %v2064_v44, %v2065_v46  ;;  %v3056_v41 = vsel %vm6860_vm12, %v3051_v35, %v7272_v22  ;;  %v1524_v26 = vrot.slane %v1522_v6, 5  ;;  %v2151_v22 = vunpack.c.l.b16 %v2063_v54  ;;  %v1920_v46 = vld [vmem:[#allocation2 + $0x90] sm:$0xe] }
 0x130   : > { %3419 = vst [vmem:[%s6958_s10 + $0x10] sm:$0xff] %v3387_v8  ;;  %v3061_v5 = vrot.slane %v3060_v10, 4  ;;  %v759_v8 = vld [vmem:[#allocation2 + $0xb0] sm:$0x1]  ;;  %v3073_v57 = vrot.slane %v3071_v20, 5  ;;  %v3083_v56 = vrot.slane %v3081_v30, 4  ;;  %v2152_v38 = vunpack.c.l.b16 %v2066_v62 }
 0x131   : > { %v2244_v48 = vpop.f32.mrf.mxu2  ;;  %v7288_v14 = vpop.f32.mrf.mxu0  ;;  %v760_v1 = vsel %vm6440_vm4, %v575_v16, %v759_v8  ;;  %v1203_v10 = vld [vmem:[#allocation2 + $0xa0] sm:$0xf]  ;;  %v1527_v13 = vshrl.u32 %v1202_v43, 16  ;;  %v1530_v16 = vshll.u32 %v1202_v43, 16  ;;  %v3219_v49 = vunpack.c.l.b16 %v3056_v41 }
 0x132   : > { %v2320_v24 = vadd.f32 %v2244_v48, %v1823_v23  ;;  %v3066_v39 = vsel %vm6860_vm12, %v3061_v5, %v3065_v25  ;;  %v1520_v23 = vrot.slane %v1519_v11, 4  ;;  %761 = vst [vmem:[#allocation2 + $0xb0] sm:$0x1] %v760_v1  ;;  %v7321_v48 = vrot.slane %v3077_v27, 5  ;;  %v1204_v27 = vld [vmem:[#allocation2 + $0xa4] sm:$0x1] }
 0x133   : > { %v2594_v40 = vpop.f32.mrf.mxu3  ;;  %v1536_v52 = vshll.u32 %v1203_v10, 16  ;;  %v1540_v7 = vshrl.u32 %v1203_v10, 16  ;;  %v3220_v0 = vunpack.c.l.b16 %v3066_v39  ;;  %v1515_v59 = vsel %vm6860_vm12, %v1510_v50, %v7290_v58 }
 0x134   : > { %v2670_v61 = vadd.f32 %v2594_v40, %v2320_v24  ;;  %5982 = vmatmul.msk.bf16.gmra.mxu0 %vm957_vm9, %v3239_v55  ;;  %v2769_v24 = vld [vmem:[#allocation2 + $0xa4] sm:$0x1]  ;;  %v1105_v40 = vadd.f32 %v7191_v32, %v7138_v60  ;;  %v1525_v44 = vsel %vm6860_vm12, %v1520_v23, %v1524_v26  ;;  %v3084_v35 = vor.u32 %v3083_v56, %v7321_v48 }
 0x135   : > { %v3087_v5 = vshll.u32 %v2769_v24, 16  ;;  %v1529_v60 = vrot.slane %v1527_v13, 4  ;;  %v1532_v63 = vrot.slane %v1530_v16, 5  ;;  %v7335_v11 = vrot.slane %v1536_v52, 5  ;;  %v7355_v52 = vld [vmem:[#allocation2 + $0xa0] sm:$0xf] }
 0x136   : > { %5884 = vmatmul.msk.bf16.gmra.mxu2 %vm957_vm9, %v2171_v29  ;;  %v3388_v28 = vadd.f32 %v7265_v45, %v2670_v61  ;;  %v7307_v45 = vld [vmem:[#allocation2 + $0x94] sm:$0xf]  ;;  %v1922_v61 = vld [vmem:[#allocation2 + $0x98] sm:$0x1]  ;;  %v1542_v58 = vrot.slane %v1540_v7, 4  ;;  %v1825_v6 = vadd.f32 %v7277_v18, %v1104_v21  ;;  %v2172_v20 = vpack.c.b16 %v2152_v38, %v2151_v22 }
 0x137   : > { %v7299_v47 = vpop.f32.mrf.mxu1  ;;  %v2069_v25 = vrot.slane %v7307_v45, 5  ;;  %v1657_v54 = vunpack.c.l.b16 %v1525_v44  ;;  %v2072_v8 = vrot.slane %v1922_v61, 5  ;;  %v3089_v1 = vrot.slane %v3087_v5, 5  ;;  %v6185_v22 = vld [vmem:[#allocation2 + $0x90] sm:$0xff] }
 0x138   : > { %5965 = vmatmul.msk.bf16.gmra.mxu3 %vm957_vm9, %v6184_v34  ;;  %3420 = vst [vmem:[%s6958_s10 + $0x18] sm:$0xff] %v3388_v28  ;;  %v3074_v34 = vor.u32 %v3073_v57, %v3070_v36  ;;  %v5869_v28 = vrot.slane %v1920_v46, 9  ;;  %v3085_v36 = vrot.slane %v3084_v35, 4  ;;  %v1533_v18 = vor.u32 %v1532_v63, %v1529_v60 }
 0x139   : > { %v2247_v31 = vpop.f32.mrf.mxu2  ;;  %v7318_v53 = vpop.f32.mrf.mxu0  ;;  %v2071_v62 = vrot.slane %v2069_v25, 4  ;;  %v1543_v21 = vor.u32 %v1542_v58, %v7335_v11  ;;  %v1546_v23 = vshll.u32 %v1204_v27, 16  ;;  %v592_v57 = vrot.slane %v6819_v2, 4 }
 0x13a   : > { %v2321_v55 = vadd.f32 %v2247_v31, %v1824_v37  ;;  %5852 = vmatmul.msk.bf16.gmra.mxu1 %vm957_vm9, %v1675_v19  ;;  %v3240_v19 = vpack.c.b16 %v3220_v0, %v3219_v49  ;;  %v1656_v37 = vunpack.c.l.b16 %v1515_v59  ;;  %v3075_v39 = vrot.slane %v3074_v34, 4  ;;  %v2771_v31 = vld [vmem:[#allocation2 + $0xac] sm:$0xf]  ;;  %v766_v59 = vld [vmem:[#allocation2 + $0xbc] sm:$0x1] }
 0x13b   : > { %v2597_v9 = vpop.f32.mrf.mxu3  ;;  %v7345_v43 = vsel %vm6877_vm15, %v5869_v28, %v2069_v25  ;;  %v1826_v56 = vadd.f32 %v7299_v47, %v1105_v40  ;;  %v7351_v13 = vsel %vm6877_vm15, %v2071_v62, %v2072_v8  ;;  %v3101_v16 = vshll.u32 %v2771_v31, 16 }
 0x13c   : > { %v2671_v29 = vadd.f32 %v2597_v9, %v2321_v55  ;;  %v1676_v9 = vpack.c.b16 %v1657_v54, %v1656_v37  ;;  %v3080_v7 = vsel %vm6860_vm12, %v3075_v39, %v7321_v48  ;;  %v3090_v47 = vsel %vm6860_vm12, %v3085_v36, %v3089_v1  ;;  %v1925_v54 = vld [vmem:[#allocation2 + $0xa4] sm:$0x1] }
 0x13d   : > { %v3105_v24 = vshrl.u32 %v2771_v31, 16  ;;  %v1534_v38 = vrot.slane %v1533_v18, 4  ;;  %v1544_v49 = vrot.slane %v1543_v21, 4  ;;  %v1548_v0 = vrot.slane %v1546_v23, 5 }
 0x13e   : > { %v3389_v4 = vadd.f32 %v7288_v14, %v2671_v29  ;;  %v2770_v14 = vld [vmem:[#allocation2 + $0xa8] sm:$0xf]  ;;  %v7366_v46 = vrot.slane %v3101_v16, 5  ;;  %v767_v48 = vsel %vm6440_vm4, %v592_v57, %v766_v59  ;;  %v2153_v34 = vunpack.c.l.b16 %v7345_v43  ;;  %v302_v43 = vld [vmem:[%s6451_s5 + $0xf8] sm:$0xff] }
 0x13f   : > { %v7333_v42 = vpop.f32.mrf.mxu1  ;;  %v3092_v26 = vshrl.u32 %v2770_v14, 16  ;;  %v3095_v10 = vshll.u32 %v2770_v14, 16  ;;  %v3107_v25 = vrot.slane %v3105_v24, 4  ;;  %768 = vst [vmem:[#allocation2 + $0xbc] sm:$0x1] %v767_v48  ;;  %v2154_v60 = vunpack.c.l.b16 %v7351_v13 }
 0x140   : > { %3421 = vst [vmem:[%s6958_s10 + $0x20] sm:$0xff] %v3389_v4  ;;  %v1106_v4 = vadd.f32 %v7191_v32, %v7161_v51  ;;  %v2076_v63 = vrot.slane %v7355_v52, 5  ;;  %v3221_v58 = vunpack.c.l.b16 %v3080_v7  ;;  %v1539_v51 = vsel %vm6860_vm12, %v1534_v38, %v7335_v11 }
 0x141   : > { %v2249_v30 = vpop.f32.mrf.mxu2  ;;  %v7339_v45 = vpop.f32.mrf.mxu0  ;;  %v3094_v40 = vrot.slane %v3092_v26, 4  ;;  %v3097_v44 = vrot.slane %v3095_v10, 5  ;;  %v1549_v32 = vsel %vm6860_vm12, %v1544_v49, %v1548_v0  ;;  %v3222_v27 = vunpack.c.l.b16 %v3090_v47 }
 0x142   : > { %v2322_v41 = vadd.f32 %v2249_v30, %v1825_v6  ;;  %v1205_v6 = vld [vmem:[#allocation2 + $0xa8] sm:$0xf]  ;;  %v301_v30 = vld [vmem:[%s6451_s5 + $0xf0] sm:$0xff]  ;;  %v3108_v8 = vor.u32 %v3107_v25, %v7366_v46  ;;  %v1827_v11 = vadd.f32 %v7333_v42, %v1106_v4  ;;  %v2078_v21 = vrot.slane %v2076_v63, 4  ;;  %s6206_s5 = sshll.u32 %s6340_s15, 8  ;;  %s5635_s15 = scalar_lea.sflag [#allocation4], %s199_s6 }
 0x143   : > { %v2599_v50 = vpop.f32.mrf.mxu3  ;;  %v3098_v62 = vor.u32 %v3097_v44, %v3094_v40  ;;  %v1551_v39 = vshrl.u32 %v1205_v6, 16  ;;  %v1554_v36 = vshll.u32 %v1205_v6, 16  ;;  %v1658_v26 = vunpack.c.l.b16 %v1539_v51  ;;  %v1207_v40 = vld [vmem:[#allocation2 + $0xb0] sm:$0x1]  ;;  %v6186_v44 = vld [vmem:[#allocation2 + $0x9c] sm:$0xff]  ;;  %s5647_s23 = scalar_lea.hbm %s8053_s3, %s6206_s5 }
 0x144   : > { %v2672_v55 = vadd.f32 %v2599_v50, %v2322_v41  ;;  %5983 = vmatmul.msk.bf16.gmra.mxu0 %vm957_vm9, %v3240_v19  ;;  %v1923_v19 = vld [vmem:[#allocation2 + $0x9c] sm:$0xe]  ;;  %v333_v41 = vpack.c.bf16 %v301_v30, %v301_v30  ;;  %v1659_v57 = vunpack.c.l.b16 %v1549_v32  ;;  %v2173_v24 = vpack.c.b16 %v2154_v60, %v2153_v34  ;;  %s5650_s27 = sshll.u32 %s5647_s23, 4  ;;  %s5651_s27 = int_to_ptr.hbm [resolvable:$true] %s5650_s27 }
 0x145   : > { %v5870_v18 = vrot.slane %v1923_v19, 9  ;;  %v3099_v10 = vrot.slane %v3098_v62, 4  ;;  %v1553_v42 = vrot.slane %v1551_v39, 4  ;;  %v1556_v52 = vrot.slane %v1554_v36, 5  ;;  %v1606_v6 = vld [vmem:[%s6958_s10 + $0x40] sm:$0xff]  ;;  %s6284_s28 = sshra.s32 %s5651_s27, 4  ;;  %s6285_s28 = int_to_ptr.hbm [resolvable:$true] %s6284_s28 }
 0x146   : > { %5885 = vmatmul.msk.bf16.gmra.mxu2 %vm957_vm9, %v2172_v20  ;;  %v3390_v2 = vadd.f32 %v7318_v53, %v2672_v55  ;;  %v2772_v53 = vld [vmem:[#allocation2 + $0xb0] sm:$0x1]  ;;  %v1206_v20 = vld [vmem:[#allocation2 + $0xac] sm:$0xf]  ;;  %v2079_v55 = vrot.slane %v1925_v54, 5  ;;  %v594_v13 = vshrl.u32 %v333_v41, 16  ;;  %v334_v38 = vpack.c.bf16 %v302_v43, %v302_v43  ;;  %p6291_p1 = scmp.lt.s32.totalorder %s6285_s28, %s8053_s3 }
 0x147   : > { %v7362_v29 = vpop.f32.mrf.mxu1  ;;  %v3111_v14 = vshll.u32 %v2772_v53, 16  ;;  %v1560_v1 = vshll.u32 %v1206_v20, 16  ;;  %v1564_v31 = vshrl.u32 %v1206_v20, 16  ;;  %v7397_v0 = vsel %vm6877_vm15, %v5870_v18, %v2076_v63  ;;  %v769_v19 = vld [vmem:[#allocation2 + $0xc0] sm:$0xf]  ;;  %s6286_s29 = scalar_lea.hbm %s6285_s28, 256 }
 0x148   : > { %5966 = vmatmul.msk.bf16.gmra.mxu3 %vm957_vm9, %v6185_v22  ;;  %3422 = vst [vmem:[%s6958_s10 + $0x28] sm:$0xff] %v3390_v2  ;;  %v3241_v22 = vpack.c.b16 %v3222_v27, %v3221_v58  ;;  %v596_v59 = vrot.slane %v594_v13, 7  ;;  %v1677_v25 = vpack.c.b16 %v1659_v57, %v1658_v26  ;;  %v7401_v48 = vsel %vm6877_vm15, %v2078_v21, %v2079_v55  ;;  %v2774_v58 = vld [vmem:[#allocation2 + $0xb8] sm:$0xf]  ;;  %v1607_v26 = vld [vmem:[%s6958_s10 + $0x48] sm:$0xff]  ;;  %p6287_p12 = scmp.ne.s32.totalorder %s6285_s28, %s6286_s29  ;;  %p6292_p2 = scmp.lt.s32.totalorder %s6290_s7, %s6286_s29 }
 0x149   : > { %v2252_v61 = vpop.f32.mrf.mxu2  ;;  %v7373_v35 = vpop.f32.mrf.mxu0  ;;  %v1566_v7 = vrot.slane %v1564_v31, 4  ;;  %v3104_v4 = vsel %vm6860_vm12, %v3099_v10, %v7366_v46  ;;  %v1557_v34 = vor.u32 %v1556_v52, %v1553_v42  ;;  %v597_v63 = vshll.u32 %v333_v41, 16 }
 0x14a   : > { %v2323_v5 = vadd.f32 %v2252_v61, %v1826_v56  ;;  %5853 = vmatmul.msk.bf16.gmra.mxu1 %vm957_vm9, %v1676_v9  ;;  %v3109_v56 = vrot.slane %v3108_v8, 4  ;;  %v3113_v9 = vrot.slane %v3111_v14, 5  ;;  %v2773_v61 = vld [vmem:[#allocation2 + $0xb4] sm:$0xf]  ;;  %v602_v51 = vshrl.u32 %v334_v38, 16  ;;  %p6288_p13 = pnand %p6287_p12, %p6413_p4  ;;  %p6293_p3 = por %p6292_p2, %p6291_p1 }
 0x14b   : > { %v2602_v28 = vpop.f32.mrf.mxu3  ;;  %v605_v32 = vshll.u32 %v334_v38, 16  ;;  %v1828_v46 = vadd.f32 %v7362_v29, %v1606_v6  ;;  %v599_v14 = vor.u32 %v597_v63, %v596_v59  ;;  %v3116_v30 = vshrl.u32 %v2773_v61, 16  ;;  %v1926_v6 = vld [vmem:[#allocation2 + $0xa8] sm:$0xe] }
 0x14c   : > { %v2673_v37 = vadd.f32 %v2602_v28, %v2323_v5  ;;  %v3114_v60 = vsel %vm6860_vm12, %v3109_v56, %v3113_v9  ;;  %v1570_v28 = vshll.u32 %v1207_v40, 16  ;;  %v600_v54 = vrot.slane %v596_v59, 4  ;;  %v1208_v56 = vld [vmem:[#allocation2 + $0xb4] sm:$0xf]  ;;  %v1209_v9 = vld [vmem:[#allocation2 + $0xb8] sm:$0xf]  ;;  %p6289_p0 = pneg %p6288_p13 }
 0x14d   : > { %v604_v62 = vrot.slane %v602_v51, 7  ;;  %v3125_v8 = vshll.u32 %v2774_v58, 16  ;;  %v3129_v41 = vshrl.u32 %v2774_v58, 16  ;;  %v1558_v36 = vrot.slane %v1557_v34, 4  ;;  %v1927_v59 = vld [vmem:[#allocation2 + $0xac] sm:$0xf] }
 0x14e   : > { %v3391_v50 = vadd.f32 %v7339_v45, %v2673_v37  ;;  %v7393_v45 = vrot.slane %v1560_v1, 5  ;;  %v3119_v37 = vshll.u32 %v2773_v61, 16  ;;  %v3223_v1 = vunpack.c.l.b16 %v3104_v4  ;;  %v1928_v51 = vld [vmem:[#allocation2 + $0xb0] sm:$0x1]  ;;  %p6294_p5 = pnand %p6293_p3, %p6289_p0 }
 0x14f   : > { %v7387_v23 = vpop.f32.mrf.mxu1  ;;  %v3224_v31 = vunpack.c.l.b16 %v3114_v60  ;;  %v770_v29 = vsel %vm6477_vm8, %v599_v14, %v769_v19  ;;  %v1572_v18 = vrot.slane %v1570_v28, 5  ;;  %v607_v21 = vor.u32 %v605_v32, %v604_v62 }
 0x150   : > { %3423 = vst [vmem:[%s6958_s10 + $0x30] sm:$0xff] %v3391_v50  ;;  %v1567_v5 = vor.u32 %v1566_v7, %v7393_v45  ;;  %v609_v55 = vrot.slane %v604_v62, 4  ;;  %v3121_v43 = vrot.slane %v3119_v37, 5  ;;  %v7426_v15 = vrot.slane %v3125_v8, 5  ;;  %v1210_v37 = vld [vmem:[#allocation2 + $0xbc] sm:$0x1] }
 0x151   : > { %v2254_v16 = vpop.f32.mrf.mxu2  ;;  %v7391_v2 = vpop.f32.mrf.mxu0  ;;  %771 = vst [vmem:[#allocation2 + $0xc0] sm:$0xf] %v770_v29  ;;  %v608_v13 = vsel %vm6468_vm7, %v600_v54, %v607_v21  ;;  %v1829_v42 = vadd.f32 %v7387_v23, %v1607_v26  ;;  %v2155_v52 = vunpack.c.l.b16 %v7397_v0  ;;  %v2156_v7 = vunpack.c.l.b16 %v7401_v48 }
 0x152   : > { %v2324_v47 = vadd.f32 %v2254_v16, %v1827_v11  ;;  %v1568_v50 = vrot.slane %v1567_v5, 4  ;;  %v3131_v16 = vrot.slane %v3129_v41, 4  ;;  %772 = vst.msk [vmem:[#allocation2 + $0xc4] sm:$0xf] %vm215_vm1, %v608_v13  ;;  %v1563_v12 = vsel %vm6860_vm12, %v1558_v36, %v7393_v45 }
 0x153   : > { %v2604_v49 = vpop.f32.mrf.mxu3  ;;  %v3242_v40 = vpack.c.b16 %v3224_v31, %v3223_v1  ;;  %v1575_v0 = vshrl.u32 %v1208_v56, 16  ;;  %v2174_v34 = vpack.c.b16 %v2156_v7, %v2155_v52  ;;  %v1660_v63 = vunpack.c.l.b16 %v1563_v12 }
 0x154   : > { %v2674_v53 = vadd.f32 %v2604_v49, %v2324_v47  ;;  %5984 = vmatmul.msk.bf16.gmra.mxu0 %vm957_vm9, %v3241_v22  ;;  %v3118_v22 = vrot.slane %v3116_v30, 4  ;;  %v2775_v47 = vld [vmem:[#allocation2 + $0xbc] sm:$0x1]  ;;  %v1573_v49 = vsel %vm6860_vm12, %v1568_v50, %v1572_v18  ;;  %v3132_v4 = vor.u32 %v3131_v16, %v7426_v15 }
 0x155   : > { %v1661_v58 = vunpack.c.l.b16 %v1573_v49  ;;  %v1577_v32 = vrot.slane %v1575_v0, 4  ;;  %v5871_v36 = vrot.slane %v1926_v6, 9  ;;  %v2086_v18 = vrot.slane %v1928_v51, 5 }
 0x156   : > { %5886 = vmatmul.msk.bf16.gmra.mxu2 %vm957_vm9, %v2173_v24  ;;  %v3392_v20 = vadd.f32 %v7373_v35, %v2674_v53  ;;  %v773_v24 = vld [vmem:[#allocation2 + $0xc8] sm:$0x1]  ;;  %v1578_v53 = vshll.u32 %v1208_v56, 16  ;;  %v3122_v48 = vor.u32 %v3121_v43, %v3118_v22  ;;  %v3133_v62 = vrot.slane %v3132_v4, 4 }
 0x157   : > { %v7414_v27 = vpop.f32.mrf.mxu1  ;;  %v774_v61 = vsel %vm6440_vm4, %v609_v55, %v773_v24 }
 0x158   : > { %5967 = vmatmul.msk.bf16.gmra.mxu3 %vm957_vm9, %v6186_v44  ;;  %3424 = vst [vmem:[%s6958_s10 + $0x38] sm:$0xff] %v3392_v20  ;;  %v1584_v44 = vshll.u32 %v1209_v9, 16  ;;  %v2083_v20 = vrot.slane %v1927_v59, 5  ;;  %v1580_v19 = vrot.slane %v1578_v53, 5  ;;  %v3123_v54 = vrot.slane %v3122_v48, 4 }
 0x159   : > { %v2257_v35 = vpop.f32.mrf.mxu2  ;;  %v7418_v39 = vpop.f32.mrf.mxu0  ;;  %775 = vst [vmem:[#allocation2 + $0xc8] sm:$0x1] %v774_v61  ;;  %v2776_v31 = vld [vmem:[#allocation2 + $0xc0] sm:$0xf]  ;;  %v2777_v29 = vld [vmem:[#allocation2 + $0xc4] sm:$0xf] }
 0x15a   : > { %v2325_v11 = vadd.f32 %v2257_v35, %v1828_v46  ;;  %5854 = vmatmul.msk.bf16.gmra.mxu1 %vm957_vm9, %v1677_v25  ;;  %v1588_v25 = vshrl.u32 %v1209_v9, 16  ;;  %v7444_v46 = vrot.slane %v1584_v44, 5  ;;  %v1678_v35 = vpack.c.b16 %v1661_v58, %v1660_v63  ;;  %v1609_v61 = vld [vmem:[%s6958_s10 + $0x58] sm:$0xff] }
 0x15b   : > { %v2607_v57 = vpop.f32.mrf.mxu3  ;;  %v2085_v1 = vrot.slane %v2083_v20, 4  ;;  %v1581_v21 = vor.u32 %v1580_v19, %v1577_v32  ;;  %v3140_v56 = vshrl.u32 %v2776_v31, 16  ;;  %v3143_v9 = vshll.u32 %v2776_v31, 16 }
 0x15c   : > { %v2675_v10 = vadd.f32 %v2607_v57, %v2325_v11  ;;  %v1590_v14 = vrot.slane %v1588_v25, 4  ;;  %v1608_v11 = vld [vmem:[%s6958_s10 + $0x50] sm:$0xff]  ;;  %v1594_v57 = vshll.u32 %v1210_v37, 16  ;;  %v3149_v13 = vshll.u32 %v2777_v29, 16 }
 0x15d   : > { %v1830_v55 = vadd.f32 %v7414_v27, %v1608_v11  ;;  %v3153_v16 = vshrl.u32 %v2777_v29, 16  ;;  %v2084_v27 = vsel %vm6877_vm15, %v5871_v36, %v2083_v20  ;;  %v2087_v7 = vsel %vm6877_vm15, %v2085_v1, %v2086_v18 }
 0x15e   : > { %v3393_v38 = vadd.f32 %v7391_v2, %v2675_v10  ;;  %v3135_v2 = vshll.u32 %v2775_v47, 16  ;;  %v1591_v26 = vor.u32 %v1590_v14, %v7444_v46  ;;  %v1596_v24 = vrot.slane %v1594_v57, 5 }
 0x15f   : > { %v7438_v23 = vpop.f32.mrf.mxu1  ;;  %v3142_v59 = vrot.slane %v3140_v56, 4  ;;  %v3145_v0 = vrot.slane %v3143_v9, 5  ;;  %v7466_v53 = vrot.slane %v3149_v13, 5  ;;  %v3155_v44 = vrot.slane %v3153_v16, 4  ;;  %v3451_v56 = vld [vmem:[#allocation2 + $0x14] sm:$0x1] }
 0x160   : > { %3425 = vst [vmem:[%s6958_s10 + $0x40] sm:$0xff] %v3393_v38  ;;  %v3137_v8 = vrot.slane %v3135_v2, 5  ;;  %v1592_v47 = vrot.slane %v1591_v26, 4  ;;  %v2157_v25 = vunpack.c.l.b16 %v2084_v27  ;;  %v2158_v48 = vunpack.c.l.b16 %v2087_v7  ;;  %v2778_v2 = vld [vmem:[#allocation2 + $0xc8] sm:$0x1] }
 0x161   : > { %v2259_v45 = vpop.f32.mrf.mxu2  ;;  %v3330_v5 = vpop.f32.mrf.mxu0  ;;  %v1831_v63 = vadd.f32 %v7438_v23, %v1609_v61  ;;  %v3156_v32 = vor.u32 %v3155_v44, %v7466_v53  ;;  %v3159_v19 = vshll.u32 %v2778_v2, 16  ;;  %v5013_v2 = vld [vmem:[#allocation2 + $0x1c] sm:$0xf]  ;;  %v1611_v61 = vld [vmem:[%s6958_s10 + $0x68] sm:$0xff] }
 0x162   : > { %v2326_v60 = vadd.f32 %v2259_v45, %v1829_v42  ;;  %v3138_v22 = vsel %vm6860_vm12, %v3133_v62, %v3137_v8  ;;  %v6188_v8 = vld [vmem:[#allocation2 + $0xb4] sm:$0xff] }
 0x163   : > { %v2609_v28 = vpop.f32.mrf.mxu3  ;;  %v3226_v49 = vunpack.c.l.b16 %v3138_v22  ;;  %v3157_v31 = vrot.slane %v3156_v32, 4  ;;  %v3161_v29 = vrot.slane %v3159_v19, 5  ;;  %v5012_v32 = vld [vmem:[#allocation2 + $0x18] sm:$0xe]  ;;  %v5110_v19 = vrot.slane %v5013_v2, 5 }
 0x164   : > { %v2676_v30 = vadd.f32 %v2609_v28, %v2326_v60  ;;  %5985 = vmatmul.msk.bf16.gmra.mxu0 %vm957_vm9, %v3242_v40  ;;  %v1930_v40 = vld [vmem:[#allocation2 + $0xb8] sm:$0xf]  ;;  %v1597_v60 = vsel %vm6860_vm12, %v1592_v47, %v1596_v24  ;;  %v1929_v28 = vld [vmem:[#allocation2 + $0xb4] sm:$0xe] }
 0x165   : > { %v2090_v58 = vrot.slane %v1930_v40, 5  ;;  %v1663_v37 = vunpack.c.l.b16 %v1597_v60  ;;  %v5872_v23 = vrot.slane %v1929_v28, 9 }
 0x166   : > { %5887 = vmatmul.msk.bf16.gmra.mxu2 %vm957_vm9, %v2174_v34  ;;  %v3394_v41 = vadd.f32 %v7418_v39, %v2676_v30  ;;  %v3128_v39 = vsel %vm6860_vm12, %v3123_v54, %v7426_v15  ;;  %v1582_v15 = vrot.slane %v1581_v21, 4  ;;  %v2175_v30 = vpack.c.b16 %v2158_v48, %v2157_v25  ;;  %v1610_v21 = vld [vmem:[%s6958_s10 + $0x60] sm:$0xff] }
 0x167   : > { %v7450_v50 = vpop.f32.mrf.mxu1  ;;  %v3225_v12 = vunpack.c.l.b16 %v3128_v39  ;;  %v4295_v39 = vld [vmem:[#allocation2 + $0x1c] sm:$0xf]  ;;  %v2091_v13 = vsel %vm6877_vm15, %v5872_v23, %v2090_v58 }
 0x168   : > { %5968 = vmatmul.msk.bf16.gmra.mxu3 %vm957_vm9, %v6187_v3  ;;  %3426 = vst [vmem:[%s6958_s10 + $0x48] sm:$0xff] %v3394_v41  ;;  %v1587_v34 = vsel %vm6860_vm12, %v1582_v15, %v7444_v46  ;;  %v1931_v46 = vld [vmem:[#allocation2 + $0xbc] sm:$0x1]  ;;  %v2092_v41 = vrot.slane %v2090_v58, 4  ;;  %v1832_v22 = vadd.f32 %v7450_v50, %v1610_v21  ;;  %v3162_v50 = vsel %vm6860_vm12, %v3157_v31, %v3161_v29  ;;  %v4297_v31 = vld [vmem:[#allocation2 + $0x24] sm:$0xf] }
 0x169   : > { %v2262_v43 = vpop.f32.mrf.mxu2  ;;  %v3332_v10 = vpop.f32.mrf.mxu0  ;;  %v3243_v6 = vpack.c.b16 %v3226_v49, %v3225_v12  ;;  %v1662_v3 = vunpack.c.l.b16 %v1587_v34  ;;  %v2093_v36 = vrot.slane %v1931_v46, 5  ;;  %v4352_v15 = vshll.u32 %v4295_v39, 16  ;;  %v4296_v46 = vld [vmem:[#allocation2 + $0x20] sm:$0x1] }
 0x16a   : > { %v2327_v42 = vadd.f32 %v2262_v43, %v1830_v55  ;;  %5855 = vmatmul.msk.bf16.gmra.mxu1 %vm957_vm9, %v1678_v35  ;;  %v3450_v35 = vld [vmem:[#allocation2 + $0x10] sm:$0xf]  ;;  %v4294_v55 = vld [vmem:[#allocation2 + $0x18] sm:$0xf]  ;;  %v3449_v43 = vld [vmem:[#allocation2 + $0xc] sm:$0xe] }
 0x16b   : > { %v2612_v52 = vpop.f32.mrf.mxu3  ;;  %v1679_v18 = vpack.c.b16 %v1663_v37, %v1662_v3  ;;  %v3547_v57 = vrot.slane %v3450_v35, 5  ;;  %v4346_v7 = vshll.u32 %v4294_v55, 16  ;;  %v5988_v24 = vrot.slane %v3449_v43, 9  ;;  %v6189_v35 = vld [vmem:[#allocation2 + $0xc0] sm:$0xff] }
 0x16c   : > { %v2677_v38 = vadd.f32 %v2612_v52, %v2327_v42  ;;  %v4343_v52 = vshrl.u32 %v4294_v55, 16  ;;  %v3550_v12 = vrot.slane %v3451_v56, 5  ;;  %v4356_v49 = vshrl.u32 %v4295_v39, 16  ;;  %v1612_v55 = vld [vmem:[%s6958_s10 + $0x70] sm:$0xff]  ;;  %v3452_v56 = vld [vmem:[#allocation2 + $0x18] sm:$0xe] }
 0x16d   : > { %v3548_v60 = vsel %vm6877_vm15, %v5988_v24, %v3547_v57  ;;  %v7504_v58 = vrot.slane %v4352_v15, 5  ;;  %v5112_v29 = vrot.slane %v5110_v19, 4 }
 0x16e   : > { %v3395_v4 = vadd.f32 %v3330_v5, %v2677_v38  ;;  %v3146_v5 = vor.u32 %v3145_v0, %v3142_v59  ;;  %v3549_v38 = vrot.slane %v3547_v57, 4  ;;  %v3228_v0 = vunpack.c.l.b16 %v3162_v50  ;;  %v4298_v57 = vld [vmem:[#allocation2 + $0x28] sm:$0xf] }
 0x16f   : > { %v7469_v45 = vpop.f32.mrf.mxu1  ;;  %v4345_v48 = vrot.slane %v4343_v52, 4  ;;  %v3691_v3 = vunpack.c.l.b16 %v3548_v60  ;;  %v4370_v50 = vshll.u32 %v4297_v31, 16  ;;  %v4376_v15 = vshll.u32 %v4298_v57, 16 }
 0x170   : > { %3427 = vst [vmem:[%s6958_s10 + $0x50] sm:$0xff] %v3395_v4  ;;  %v3147_v1 = vrot.slane %v3146_v5, 4  ;;  %v4348_v4 = vrot.slane %v4346_v7, 5 }
 0x171   : > { %v2264_v20 = vpop.f32.mrf.mxu2  ;;  %v3335_v51 = vpop.f32.mrf.mxu0 }
 0x172   : > { %v2328_v14 = vadd.f32 %v2264_v20, %v1831_v63  ;;  %v3152_v42 = vsel %vm6860_vm12, %v3147_v1, %v7466_v53  ;;  %v2159_v53 = vunpack.c.l.b16 %v2091_v13  ;;  %v3551_v63 = vsel %vm6877_vm15, %v3549_v38, %v3550_v12 }
 0x173   : > { %v2614_v54 = vpop.f32.mrf.mxu3  ;;  %v3227_v59 = vunpack.c.l.b16 %v3152_v42  ;;  %v1833_v20 = vadd.f32 %v7469_v45, %v1611_v61  ;;  %v3692_v37 = vunpack.c.l.b16 %v3551_v63  ;;  %v3453_v45 = vld [vmem:[#allocation2 + $0x1c] sm:$0xf]  ;;  %v4362_v1 = vshll.u32 %v4296_v46, 16 }
 0x174   : > { %v2678_v62 = vadd.f32 %v2614_v54, %v2328_v14  ;;  %5986 = vmatmul.msk.bf16.gmra.mxu0 %vm957_vm9, %v3243_v6  ;;  %v4358_v6 = vrot.slane %v4356_v49, 4  ;;  %v5014_v54 = vld [vmem:[#allocation2 + $0x20] sm:$0x1]  ;;  %v4367_v42 = vshrl.u32 %v4297_v31, 16  ;;  %v7527_v61 = vrot.slane %v4376_v15, 5 }
 0x175   : > { %v3244_v28 = vpack.c.b16 %v3228_v0, %v3227_v59  ;;  %v3723_v21 = vpack.c.b16 %v3692_v37, %v3691_v3  ;;  %v4364_v52 = vrot.slane %v4362_v1, 5 }
 0x176   : > { %5888 = vmatmul.msk.bf16.gmra.mxu2 %vm957_vm9, %v2175_v30  ;;  %v3396_v11 = vadd.f32 %v3332_v10, %v2678_v62  ;;  %v2094_v10 = vsel %vm6877_vm15, %v2092_v41, %v2093_v36  ;;  %v4359_v23 = vor.u32 %v4358_v6, %v7504_v58  ;;  %v6119_v36 = vrot.slane %v5012_v32, 9  ;;  %v4299_v6 = vld [vmem:[#allocation2 + $0x2c] sm:$0x1] }
 0x177   : > { %v7482_v26 = vpop.f32.mrf.mxu1  ;;  %v2160_v44 = vunpack.c.l.b16 %v2094_v10  ;;  %v3454_v10 = vld [vmem:[#allocation2 + $0x20] sm:$0x1] }
 0x178   : > { %5969 = vmatmul.msk.bf16.gmra.mxu3 %vm957_vm9, %v6188_v8  ;;  %3428 = vst [vmem:[%s6958_s10 + $0x58] sm:$0xff] %v3396_v11  ;;  %v4349_v8 = vor.u32 %v4348_v4, %v4345_v48  ;;  %v5113_v11 = vrot.slane %v5014_v54, 5  ;;  %v4360_v43 = vrot.slane %v4359_v23, 4  ;;  %v1834_v13 = vadd.f32 %v7482_v26, %v1612_v55  ;;  %v4301_v55 = vld [vmem:[#allocation2 + $0x34] sm:$0xf] }
 0x179   : > { %v2267_v9 = vpop.f32.mrf.mxu2  ;;  %v3337_v16 = vpop.f32.mrf.mxu0  ;;  %v2176_v30 = vpack.c.b16 %v2160_v44, %v2159_v53  ;;  %v5989_v26 = vrot.slane %v3452_v56, 9  ;;  %v3557_v59 = vrot.slane %v3454_v10, 5  ;;  %v5016_v53 = vld [vmem:[#allocation2 + $0x28] sm:$0xf]  ;;  %v4372_v48 = vrot.slane %v4370_v50, 5  ;;  %v1614_v50 = vld [vmem:[%s6958_s10 + $0x80] sm:$0xff] }
 0x17a   : > { %v2329_v27 = vadd.f32 %v2267_v9, %v1832_v22  ;;  %5856 = vmatmul.msk.bf16.gmra.mxu1 %vm957_vm9, %v1679_v18  ;;  %v4350_v22 = vrot.slane %v4349_v8, 4  ;;  %v3554_v9 = vrot.slane %v3453_v45, 5  ;;  %v5114_v24 = vsel %vm6877_vm15, %v5112_v29, %v5113_v11 }
 0x17b   : > { %v2617_v47 = vpop.f32.mrf.mxu3  ;;  %v5255_v4 = vunpack.c.l.b16 %v5114_v24  ;;  %v4365_v2 = vsel %vm6860_vm12, %v4360_v43, %v4364_v52 }
 0x17c   : > { %v2679_v40 = vadd.f32 %v2617_v47, %v2329_v27  ;;  %v4380_v47 = vshrl.u32 %v4298_v57, 16  ;;  %v4355_v49 = vsel %vm6860_vm12, %v4350_v22, %v7504_v58  ;;  %v3555_v58 = vsel %vm6877_vm15, %v5989_v26, %v3554_v9  ;;  %v4300_v57 = vld [vmem:[#allocation2 + $0x30] sm:$0xf] }
 0x17d   : > { %v4761_v37 = vunpack.c.l.b16 %v4365_v2  ;;  %v4391_v52 = vshrl.u32 %v4300_v57, 16  ;;  %v4394_v15 = vshll.u32 %v4300_v57, 16  ;;  %v4404_v26 = vshrl.u32 %v4301_v55, 16 }
 0x17e   : > { %v3397_v25 = vadd.f32 %v3335_v51, %v2679_v40  ;;  %v3556_v40 = vrot.slane %v3554_v9, 4  ;;  %v4382_v60 = vrot.slane %v4380_v47, 4  ;;  %v4400_v47 = vshll.u32 %v4301_v55, 16  ;;  %v3459_v55 = vld [vmem:[#allocation2 + $0x34] sm:$0xf] }
 0x17f   : > { %v7498_v34 = vpop.f32.mrf.mxu1  ;;  %v4393_v2 = vrot.slane %v4391_v52, 4  ;;  %v4303_v52 = vld [vmem:[#allocation2 + $0x3c] sm:$0xf] }
 0x180   : > { %3429 = vst [vmem:[%s6958_s10 + $0x60] sm:$0xff] %v3397_v25  ;;  %v4369_v25 = vrot.slane %v4367_v42, 4  ;;  %v4383_v23 = vor.u32 %v4382_v60, %v7527_v61 }
 0x181   : > { %v2269_v51 = vpop.f32.mrf.mxu2  ;;  %v3340_v5 = vpop.f32.mrf.mxu0 }
 0x182   : > { %v2330_v14 = vadd.f32 %v2269_v51, %v1833_v20  ;;  %v5015_v20 = vld [vmem:[#allocation2 + $0x24] sm:$0xe]  ;;  %v1613_v51 = vld [vmem:[%s6958_s10 + $0x78] sm:$0xff]  ;;  %v4373_v46 = vor.u32 %v4372_v48, %v4369_v25  ;;  %v4384_v43 = vrot.slane %v4383_v23, 4 }
 0x183   : > { %v2619_v62 = vpop.f32.mrf.mxu3  ;;  %v1835_v3 = vadd.f32 %v7498_v34, %v1613_v51  ;;  %v1615_v51 = vld [vmem:[%s6958_s10 + $0x88] sm:$0xff] }
 0x184   : > { %v2680_v41 = vadd.f32 %v2619_v62, %v2330_v14  ;;  %5987 = vmatmul.msk.bf16.gmra.mxu0 %vm957_vm9, %v3244_v28  ;;  %v5117_v28 = vrot.slane %v5016_v53, 5  ;;  %v3558_v14 = vsel %vm6877_vm15, %v3556_v40, %v3557_v59  ;;  %v3693_v62 = vunpack.c.l.b16 %v3555_v58 }
 0x185   : > { %v3694_v1 = vunpack.c.l.b16 %v3558_v14  ;;  %v4374_v22 = vrot.slane %v4373_v46, 4  ;;  %v7557_v58 = vrot.slane %v4400_v47, 5 }
 0x186   : > { %5889 = vmatmul.msk.bf16.gmra.mxu2 %vm957_vm9, %v2176_v30  ;;  %v3398_v18 = vadd.f32 %v3337_v16, %v2680_v41  ;;  %v5111_v16 = vsel %vm6877_vm15, %v6119_v36, %v5110_v19  ;;  %v4760_v19 = vunpack.c.l.b16 %v4355_v49  ;;  %v5017_v30 = vld [vmem:[#allocation2 + $0x2c] sm:$0x1]  ;;  %v4386_v41 = vshll.u32 %v4299_v6, 16  ;;  %v6190_v36 = vld [vmem:[#allocation2 + $0x18] sm:$0xff] }
 0x187   : > { %v7512_v39 = vpop.f32.mrf.mxu1  ;;  %v5254_v0 = vunpack.c.l.b16 %v5111_v16  ;;  %v5119_v31 = vrot.slane %v5117_v28, 4  ;;  %v5120_v29 = vrot.slane %v5017_v30, 5  ;;  %v4379_v49 = vsel %vm6860_vm12, %v4374_v22, %v7527_v61 }
 0x188   : > { %5970 = vmatmul.msk.bf16.gmra.mxu3 %vm957_vm9, %v6189_v35  ;;  %3430 = vst [vmem:[%s6958_s10 + $0x68] sm:$0xff] %v3398_v18  ;;  %v6120_v35 = vrot.slane %v5015_v20, 9  ;;  %v4792_v34 = vpack.c.b16 %v4761_v37, %v4760_v19  ;;  %v4388_v56 = vrot.slane %v4386_v41, 5  ;;  %v1836_v24 = vadd.f32 %v7512_v39, %v1614_v50  ;;  %v4302_v20 = vld [vmem:[#allocation2 + $0x38] sm:$0x1] }
 0x189   : > { %v2272_v27 = vpop.f32.mrf.mxu2  ;;  %v3342_v7 = vpop.f32.mrf.mxu0  ;;  %v5121_v42 = vsel %vm6877_vm15, %v5119_v31, %v5120_v29  ;;  %v4406_v61 = vrot.slane %v4404_v26, 4  ;;  %v4762_v14 = vunpack.c.l.b16 %v4379_v49  ;;  %v4410_v41 = vshll.u32 %v4302_v20, 16  ;;  %v5018_v29 = vld [vmem:[#allocation2 + $0x30] sm:$0xe] }
 0x18a   : > { %v2331_v38 = vadd.f32 %v2272_v27, %v1834_v13  ;;  %6005 = vmatmul.msk.bf16.vlgmr.msra.gmra.mxu1 %vm957_vm9, %v3723_v21  ;;  %v3456_v21 = vld [vmem:[#allocation2 + $0x28] sm:$0xf]  ;;  %v3724_v13 = vpack.c.b16 %v3694_v1, %v3693_v62  ;;  %v5118_v10 = vsel %vm6877_vm15, %v6120_v35, %v5117_v28  ;;  %v5257_v53 = vunpack.c.l.b16 %v5121_v42  ;;  %v5019_v28 = vld [vmem:[#allocation2 + $0x34] sm:$0xf] }
 0x18b   : > { %v2622_v12 = vpop.f32.mrf.mxu3  ;;  %v3561_v27 = vrot.slane %v3456_v21, 5  ;;  %v5256_v39 = vunpack.c.l.b16 %v5118_v10  ;;  %v5124_v35 = vrot.slane %v5019_v28, 5  ;;  %v4412_v22 = vrot.slane %v4410_v41, 5  ;;  %v1616_v42 = vld [vmem:[%s6958_s10 + $0x90] sm:$0xff] }
 0x18c   : > { %v2681_v44 = vadd.f32 %v2622_v12, %v2331_v38  ;;  %v3457_v38 = vld [vmem:[#allocation2 + $0x2c] sm:$0x1] }
 0x18d   : > { %v3563_v48 = vrot.slane %v3561_v27, 4  ;;  %v5287_v62 = vpack.c.b16 %v5257_v53, %v5256_v39  ;;  %v4418_v39 = vshll.u32 %v4303_v52, 16 }
 0x18e   : > { %v3399_v63 = vadd.f32 %v3340_v5, %v2681_v44  ;;  %v5286_v5 = vpack.c.b16 %v5255_v4, %v5254_v0  ;;  %v4389_v0 = vsel %vm6860_vm12, %v4384_v43, %v4388_v56  ;;  %v3564_v4 = vrot.slane %v3457_v38, 5 }
 0x18f   : > { %v7532_v32 = vpop.f32.mrf.mxu1  ;;  %v4763_v30 = vunpack.c.l.b16 %v4389_v0  ;;  %v6121_v43 = vrot.slane %v5018_v29, 9  ;;  %v5126_v56 = vrot.slane %v5124_v35, 4  ;;  %v4415_v0 = vshrl.u32 %v4303_v52, 16  ;;  %v6192_v29 = vld [vmem:[#allocation2 + $0x30] sm:$0xff]  ;;  %v1618_v52 = vld [vmem:[%s6958_s10 + $0xa0] sm:$0xff] }
 0x190   : > { %3431 = vst [vmem:[%s6958_s10 + $0x70] sm:$0xff] %v3399_v63  ;;  %v4396_v63 = vrot.slane %v4394_v15, 5  ;;  %v3565_v37 = vsel %vm6877_vm15, %v3563_v48, %v3564_v4  ;;  %v1837_v46 = vadd.f32 %v7532_v32, %v1615_v51  ;;  %v4304_v15 = vld [vmem:[#allocation2 + $0x40] sm:$0xf] }
 0x191   : > { %v2274_v54 = vpop.f32.mrf.mxu2  ;;  %v3345_v8 = vpop.f32.mrf.mxu0  ;;  %v3696_v31 = vunpack.c.l.b16 %v3565_v37  ;;  %v4793_v21 = vpack.c.b16 %v4763_v30, %v4762_v14  ;;  %v4424_v53 = vshll.u32 %v4304_v15, 16  ;;  %v4417_v51 = vrot.slane %v4415_v0, 4  ;;  %v1617_v30 = vld [vmem:[%s6958_s10 + $0x98] sm:$0xff] }
 0x192   : > { %v2332_v45 = vadd.f32 %v2274_v54, %v1835_v3  ;;  %v4407_v54 = vor.u32 %v4406_v61, %v7557_v58  ;;  %v4420_v14 = vrot.slane %v4418_v39, 5 }
 0x193   : > { %v2624_v11 = vpop.f32.mrf.mxu3 }
 0x194   : > { %v2682_v18 = vadd.f32 %v2624_v11, %v2332_v45  ;;  %6136 = vmatmul.msk.bf16.vlgmr.msra.gmra.mxu0 %vm957_vm9, %v5286_v5  ;;  %v4397_v5 = vor.u32 %v4396_v63, %v4393_v2  ;;  %v5020_v11 = vld [vmem:[#allocation2 + $0x38] sm:$0x1]  ;;  %v4408_v57 = vrot.slane %v4407_v54, 4  ;;  %v4428_v2 = vshrl.u32 %v4304_v15, 16 }
 0x196   : > { %6086 = vmatmul.msk.bf16.vlgmr.msra.gmra.mxu2 %vm957_vm9, %v6190_v36  ;;  %v3400_v9 = vadd.f32 %v3342_v7, %v2682_v18  ;;  %v3455_v7 = vld [vmem:[#allocation2 + $0x24] sm:$0xe]  ;;  %v4398_v32 = vrot.slane %v4397_v5, 4  ;;  %v7594_v5 = vrot.slane %v4424_v53, 5  ;;  %v4430_v54 = vrot.slane %v4428_v2, 4 }
 0x197   : > { %v7546_v16 = vpop.f32.mrf.mxu1  ;;  %v5990_v25 = vrot.slane %v3455_v7, 9  ;;  %v6191_v36 = vld [vmem:[#allocation2 + $0x24] sm:$0xff]  ;;  %v3460_v7 = vld [vmem:[#allocation2 + $0x38] sm:$0x1] }
 0x198   : > { %6103 = vmatmul.msk.bf16.vlgmr.msra.gmra.mxu3 %vm957_vm9, %v4792_v34  ;;  %3432 = vst [vmem:[%s6958_s10 + $0x78] sm:$0xff] %v3400_v9  ;;  %v5127_v9 = vrot.slane %v5020_v11, 5  ;;  %v1838_v47 = vadd.f32 %v7546_v16, %v1616_v42  ;;  %v4403_v26 = vsel %vm6860_vm12, %v4398_v32, %v7557_v58  ;;  %v3571_v4 = vrot.slane %v3460_v7, 5  ;;  %v4306_v42 = vld [vmem:[#allocation2 + $0x48] sm:$0xf] }
 0x199   : > { %v2277_v12 = vpop.f32.mrf.mxu2  ;;  %v3347_v40 = vpop.f32.mrf.mxu0  ;;  %v3562_v3 = vsel %vm6877_vm15, %v5990_v25, %v3561_v27  ;;  %v3568_v27 = vrot.slane %v3459_v55, 5  ;;  %v4764_v61 = vunpack.c.l.b16 %v4403_v26  ;;  %v4421_v32 = vor.u32 %v4420_v14, %v4417_v51 }
 0x19a   : > { %v2333_v59 = vadd.f32 %v2277_v12, %v1836_v24  ;;  %6006 = vmatmul.msk.bf16.gmra.mxu1 %vm957_vm9, %v3724_v13  ;;  %v3695_v1 = vunpack.c.l.b16 %v3562_v3  ;;  %v3458_v24 = vld [vmem:[#allocation2 + $0x30] sm:$0xe]  ;;  %v4413_v12 = vsel %vm6860_vm12, %v4408_v57, %v4412_v22  ;;  %v5128_v16 = vsel %vm6877_vm15, %v5126_v56, %v5127_v9  ;;  %v3462_v22 = vld [vmem:[#allocation2 + $0x40] sm:$0xf] }
 0x19b   : > { %v2627_v44 = vpop.f32.mrf.mxu3  ;;  %v5991_v25 = vrot.slane %v3458_v24, 9  ;;  %v3570_v48 = vrot.slane %v3568_v27, 4  ;;  %v5259_v58 = vunpack.c.l.b16 %v5128_v16  ;;  %v4765_v28 = vunpack.c.l.b16 %v4413_v12  ;;  %v3461_v12 = vld [vmem:[#allocation2 + $0x3c] sm:$0xe] }
 0x19c   : > { %v2683_v60 = vadd.f32 %v2627_v44, %v2333_v59  ;;  %v3725_v10 = vpack.c.b16 %v3696_v31, %v3695_v1  ;;  %v5023_v1 = vld [vmem:[#allocation2 + $0x44] sm:$0x1]  ;;  %v4431_v57 = vor.u32 %v4430_v54, %v7594_v5  ;;  %v3575_v7 = vrot.slane %v3462_v22, 5 }
 0x19d   : > { %v3569_v37 = vsel %vm6877_vm15, %v5991_v25, %v3568_v27  ;;  %v5134_v9 = vrot.slane %v5023_v1, 5  ;;  %v4307_v27 = vld [vmem:[#allocation2 + $0x4c] sm:$0xf]  ;;  %v4439_v39 = vshrl.u32 %v4306_v42, 16  ;;  %v4442_v53 = vshll.u32 %v4306_v42, 16  ;;  %v1619_v54 = vld [vmem:[%s6958_s10 + $0xa8] sm:$0xff] }
 0x19e   : > { %v3401_v6 = vadd.f32 %v3345_v8, %v2683_v60  ;;  %v3697_v11 = vunpack.c.l.b16 %v3569_v37  ;;  %v4432_v24 = vrot.slane %v4431_v57, 4  ;;  %v4452_v25 = vshrl.u32 %v4307_v27, 16  ;;  %v6193_v57 = vld [vmem:[#allocation2 + $0x3c] sm:$0xff]  ;;  %v3465_v42 = vld [vmem:[#allocation2 + $0x4c] sm:$0xf] }
 0x19f   : > { %v7560_v19 = vpop.f32.mrf.mxu1  ;;  %v5992_v2 = vrot.slane %v3461_v12, 9  ;;  %v4441_v51 = vrot.slane %v4439_v39, 4  ;;  %v4444_v14 = vrot.slane %v4442_v53, 5  ;;  %v3582_v12 = vrot.slane %v3465_v42, 5  ;;  %v3466_v39 = vld [vmem:[#allocation2 + $0x50] sm:$0x1] }
 0x1a0   : > { %3433 = vst [vmem:[%s6958_s10 + $0x80] sm:$0xff] %v3401_v6  ;;  %v5022_v6 = vld [vmem:[#allocation2 + $0x40] sm:$0xf]  ;;  %v4454_v37 = vrot.slane %v4452_v25, 4 }
 0x1a1   : > { %v2279_v8 = vpop.f32.mrf.mxu2  ;;  %v3350_v23 = vpop.f32.mrf.mxu0  ;;  %v5131_v41 = vrot.slane %v5022_v6, 5 }
 0x1a2   : > { %v2334_v45 = vadd.f32 %v2279_v8, %v1837_v46  ;;  %v3572_v46 = vsel %vm6877_vm15, %v3570_v48, %v3571_v4  ;;  %v4305_v8 = vld [vmem:[#allocation2 + $0x44] sm:$0x1] }
 0x1a3   : > { %v2629_v18 = vpop.f32.mrf.mxu3  ;;  %v4434_v55 = vshll.u32 %v4305_v8, 16  ;;  %v5133_v56 = vrot.slane %v5131_v41, 4 }
 0x1a4   : > { %v2684_v34 = vadd.f32 %v2629_v18, %v2334_v45  ;;  %6137 = vmatmul.msk.bf16.gmra.mxu0 %vm957_vm9, %v5287_v62  ;;  %v1839_v62 = vadd.f32 %v7560_v19, %v1617_v30  ;;  %v3698_v18 = vunpack.c.l.b16 %v3572_v46 }
 0x1a5   : > { %v4436_v26 = vrot.slane %v4434_v55, 5  ;;  %v5135_v16 = vsel %vm6877_vm15, %v5133_v56, %v5134_v9 }
 0x1a6   : > { %6087 = vmatmul.msk.bf16.gmra.mxu2 %vm957_vm9, %v6191_v36  ;;  %v3402_v13 = vadd.f32 %v3347_v40, %v2684_v34  ;;  %v5125_v40 = vsel %vm6877_vm15, %v6121_v43, %v5124_v35  ;;  %v5021_v36 = vld [vmem:[#allocation2 + $0x3c] sm:$0xe] }
 0x1a7   : > { %v7572_v50 = vpop.f32.mrf.mxu1  ;;  %v5258_v63 = vunpack.c.l.b16 %v5125_v40  ;;  %v6122_v43 = vrot.slane %v5021_v36, 9  ;;  %v3463_v40 = vld [vmem:[#allocation2 + $0x44] sm:$0x1] }
 0x1a8   : > { %6104 = vmatmul.msk.bf16.gmra.mxu3 %vm957_vm9, %v4793_v21  ;;  %3434 = vst [vmem:[%s6958_s10 + $0x88] sm:$0xff] %v3402_v13  ;;  %v4794_v21 = vpack.c.b16 %v4765_v28, %v4764_v61  ;;  %v4437_v61 = vsel %vm6860_vm12, %v4432_v24, %v4436_v26  ;;  %v5025_v28 = vld [vmem:[#allocation2 + $0x4c] sm:$0xf] }
 0x1a9   : > { %v2282_v38 = vpop.f32.mrf.mxu2  ;;  %v3352_v49 = vpop.f32.mrf.mxu0  ;;  %v4767_v1 = vunpack.c.l.b16 %v4437_v61  ;;  %v3585_v61 = vrot.slane %v3466_v39, 5  ;;  %v3467_v39 = vld [vmem:[#allocation2 + $0x54] sm:$0xe] }
 0x1aa   : > { %v2335_v59 = vadd.f32 %v2282_v38, %v1838_v47  ;;  %6007 = vmatmul.msk.bf16.gmra.mxu1 %vm957_vm9, %v3725_v10  ;;  %v3726_v10 = vpack.c.b16 %v3698_v18, %v3697_v11  ;;  %v4422_v47 = vrot.slane %v4421_v32, 4  ;;  %v1840_v38 = vadd.f32 %v7572_v50, %v1618_v52  ;;  %v5026_v11 = vld [vmem:[#allocation2 + $0x50] sm:$0x1] }
 0x1ab   : > { %v2632_v44 = vpop.f32.mrf.mxu3  ;;  %v5141_v9 = vrot.slane %v5026_v11, 5 }
 0x1ac   : > { %v2685_v60 = vadd.f32 %v2632_v44, %v2335_v59  ;;  %v4448_v44 = vshll.u32 %v4307_v27, 16  ;;  %v4427_v4 = vsel %vm6860_vm12, %v4422_v47, %v7594_v5  ;;  %v3576_v5 = vsel %vm6877_vm15, %v5992_v2, %v3575_v7 }
 0x1ad   : > { %v4766_v36 = vunpack.c.l.b16 %v4427_v4  ;;  %v3699_v55 = vunpack.c.l.b16 %v3576_v5  ;;  %v1621_v5 = vld [vmem:[%s6958_s10 + $0xb8] sm:$0xff] }
 0x1ae   : > { %v3403_v20 = vadd.f32 %v3350_v23, %v2685_v60  ;;  %v5288_v23 = vpack.c.b16 %v5259_v58, %v5258_v63  ;;  %v3577_v60 = vrot.slane %v3575_v7, 4  ;;  %v3578_v63 = vrot.slane %v3463_v40, 5  ;;  %v4309_v40 = vld [vmem:[#allocation2 + $0x54] sm:$0xf] }
 0x1af   : > { %v7588_v3 = vpop.f32.mrf.mxu1  ;;  %v7617_v30 = vrot.slane %v4448_v44, 5 }
 0x1b0   : > { %3435 = vst [vmem:[%s6958_s10 + $0x90] sm:$0xff] %v3403_v20  ;;  %v5261_v20 = vunpack.c.l.b16 %v5135_v16  ;;  %v3579_v8 = vsel %vm6877_vm15, %v3577_v60, %v3578_v63 }
 0x1b1   : > { %v2284_v35 = vpop.f32.mrf.mxu2  ;;  %v3355_v45 = vpop.f32.mrf.mxu0 }
 0x1b2   : > { %v2336_v31 = vadd.f32 %v2284_v35, %v1839_v62  ;;  %v1841_v35 = vadd.f32 %v7588_v3, %v1619_v54  ;;  %v5028_v54 = vld [vmem:[#allocation2 + $0x58] sm:$0xf] }
 0x1b3   : > { %v2634_v34 = vpop.f32.mrf.mxu3 }
 0x1b4   : > { %v2686_v19 = vadd.f32 %v2634_v34, %v2336_v31  ;;  %6138 = vmatmul.msk.bf16.gmra.mxu0 %vm957_vm9, %v5288_v23  ;;  %v4308_v23 = vld [vmem:[#allocation2 + $0x50] sm:$0x1]  ;;  %v4445_v34 = vor.u32 %v4444_v14, %v4441_v51 }
 0x1b5   : > { %v4458_v22 = vshll.u32 %v4308_v23, 16 }
 0x1b6   : > { %6088 = vmatmul.msk.bf16.gmra.mxu2 %vm957_vm9, %v6192_v29  ;;  %v3404_v13 = vadd.f32 %v3352_v49, %v2686_v19  ;;  %v5132_v49 = vsel %vm6877_vm15, %v6122_v43, %v5131_v41  ;;  %v5138_v41 = vrot.slane %v5025_v28, 5  ;;  %v5024_v29 = vld [vmem:[#allocation2 + $0x48] sm:$0xe]  ;;  %v3700_v19 = vunpack.c.l.b16 %v3579_v8 }
 0x1b7   : > { %v7602_v15 = vpop.f32.mrf.mxu1  ;;  %v5260_v6 = vunpack.c.l.b16 %v5132_v49  ;;  %v6123_v56 = vrot.slane %v5024_v29, 9  ;;  %v4446_v27 = vrot.slane %v4445_v34, 4  ;;  %v4460_v7 = vrot.slane %v4458_v22, 5  ;;  %v5027_v22 = vld [vmem:[#allocation2 + $0x54] sm:$0xe] }
 0x1b8   : > { %6105 = vmatmul.msk.bf16.gmra.mxu3 %vm957_vm9, %v4794_v21  ;;  %3436 = vst [vmem:[%s6958_s10 + $0x98] sm:$0xff] %v3404_v13  ;;  %v4455_v21 = vor.u32 %v4454_v37, %v7617_v30  ;;  %v5140_v3 = vrot.slane %v5138_v41, 4  ;;  %v3727_v47 = vpack.c.b16 %v3700_v19, %v3699_v55  ;;  %v4466_v28 = vshll.u32 %v4309_v40, 16  ;;  %v4311_v19 = vld [vmem:[#allocation2 + $0x5c] sm:$0x1] }
 0x1b9   : > { %v2287_v59 = vpop.f32.mrf.mxu2  ;;  %v3357_v0 = vpop.f32.mrf.mxu0  ;;  %v5289_v31 = vpack.c.b16 %v5261_v20, %v5260_v6  ;;  %v5139_v49 = vsel %vm6877_vm15, %v6123_v56, %v5138_v41  ;;  %v4451_v44 = vsel %vm6860_vm12, %v4446_v27, %v7617_v30  ;;  %v4463_v6 = vshrl.u32 %v4309_v40, 16 }
 0x1ba   : > { %v2337_v48 = vadd.f32 %v2287_v59, %v1840_v38  ;;  %6008 = vmatmul.msk.bf16.gmra.mxu1 %vm957_vm9, %v3726_v10  ;;  %v4795_v10 = vpack.c.b16 %v4767_v1, %v4766_v36  ;;  %v4456_v24 = vrot.slane %v4455_v21, 4  ;;  %v1620_v38 = vld [vmem:[%s6958_s10 + $0xb0] sm:$0xff]  ;;  %v5142_v16 = vsel %vm6877_vm15, %v5140_v3, %v5141_v9 }
 0x1bb   : > { %v2637_v50 = vpop.f32.mrf.mxu3  ;;  %v1842_v59 = vadd.f32 %v7602_v15, %v1620_v38  ;;  %v5262_v15 = vunpack.c.l.b16 %v5139_v49  ;;  %v5263_v2 = vunpack.c.l.b16 %v5142_v16  ;;  %v4768_v37 = vunpack.c.l.b16 %v4451_v44  ;;  %v1622_v38 = vld [vmem:[%s6958_s10 + $0xc0] sm:$0xff]  ;;  %v4312_v49 = vld [vmem:[#allocation2 + $0x60] sm:$0xf]  ;;  %v4313_v16 = vld [vmem:[#allocation2 + $0x64] sm:$0xf] }
 0x1bc   : > { %v2687_v58 = vadd.f32 %v2637_v50, %v2337_v48  ;;  %v4310_v48 = vld [vmem:[#allocation2 + $0x58] sm:$0xf]  ;;  %v4461_v4 = vsel %vm6860_vm12, %v4456_v24, %v4460_v7  ;;  %v5145_v21 = vrot.slane %v5028_v54, 5  ;;  %v4482_v42 = vshll.u32 %v4311_v19, 16 }
 0x1bd   : > { %v4472_v51 = vshll.u32 %v4310_v48, 16  ;;  %v4476_v14 = vshrl.u32 %v4310_v48, 16  ;;  %v5290_v36 = vpack.c.b16 %v5263_v2, %v5262_v15  ;;  %v6124_v27 = vrot.slane %v5027_v22, 9 }
 0x1be   : > { %v3405_v46 = vadd.f32 %v3355_v45, %v2687_v58  ;;  %v3584_v58 = vrot.slane %v3582_v12, 4 }
 0x1bf   : > { %v7620_v62 = vpop.f32.mrf.mxu1  ;;  %v7656_v29 = vrot.slane %v4472_v51, 5  ;;  %v4478_v11 = vrot.slane %v4476_v14, 4 }
 0x1c0   : > { %3437 = vst [vmem:[%s6958_s10 + $0xa0] sm:$0xff] %v3405_v46  ;;  %v4769_v46 = vunpack.c.l.b16 %v4461_v4  ;;  %v3586_v41 = vsel %vm6877_vm15, %v3584_v58, %v3585_v61  ;;  %v1843_v1 = vadd.f32 %v7620_v62, %v1621_v5  ;;  %v5994_v61 = vrot.slane %v3467_v39, 9 }
 0x1c1   : > { %v2289_v45 = vpop.f32.mrf.mxu2  ;;  %v3360_v18 = vpop.f32.mrf.mxu0  ;;  %v3702_v55 = vunpack.c.l.b16 %v3586_v41  ;;  %v5031_v41 = vld [vmem:[#allocation2 + $0x64] sm:$0xf] }
 0x1c2   : > { %v2338_v32 = vadd.f32 %v2289_v45, %v1841_v35  ;;  %v4465_v35 = vrot.slane %v4463_v6, 4  ;;  %v4796_v9 = vpack.c.b16 %v4769_v46, %v4768_v37  ;;  %v5152_v19 = vrot.slane %v5031_v41, 5 }
 0x1c3   : > { %v2639_v43 = vpop.f32.mrf.mxu3 }
 0x1c4   : > { %v2688_v13 = vadd.f32 %v2639_v43, %v2338_v32  ;;  %6139 = vmatmul.msk.bf16.gmra.mxu0 %vm957_vm9, %v5289_v31  ;;  %v4468_v31 = vrot.slane %v4466_v28, 5  ;;  %v5029_v43 = vld [vmem:[#allocation2 + $0x5c] sm:$0x1]  ;;  %v4500_v28 = vshrl.u32 %v4313_v16, 16 }
 0x1c6   : > { %6089 = vmatmul.msk.bf16.gmra.mxu2 %vm957_vm9, %v6193_v57  ;;  %v3406_v52 = vadd.f32 %v3357_v0, %v2688_v13  ;;  %v3464_v0 = vld [vmem:[#allocation2 + $0x48] sm:$0xe]  ;;  %v4469_v62 = vor.u32 %v4468_v31, %v4465_v35  ;;  %v4479_v13 = vor.u32 %v4478_v11, %v7656_v29  ;;  %v1623_v35 = vld [vmem:[%s6958_s10 + $0xc8] sm:$0xff] }
 0x1c7   : > { %v7632_v26 = vpop.f32.mrf.mxu1  ;;  %v5993_v63 = vrot.slane %v3464_v0, 9 }
 0x1c8   : > { %6106 = vmatmul.msk.bf16.gmra.mxu3 %vm957_vm9, %v4795_v10  ;;  %3438 = vst [vmem:[%s6958_s10 + $0xa8] sm:$0xff] %v3406_v52  ;;  %v3468_v10 = vld [vmem:[#allocation2 + $0x58] sm:$0xf]  ;;  %v5147_v52 = vrot.slane %v5145_v21, 4  ;;  %v4470_v0 = vrot.slane %v4469_v62, 4  ;;  %v4480_v48 = vrot.slane %v4479_v13, 4 }
 0x1c9   : > { %v2292_v53 = vpop.f32.mrf.mxu2  ;;  %v3362_v25 = vpop.f32.mrf.mxu0  ;;  %v3583_v23 = vsel %vm6877_vm15, %v5993_v63, %v3582_v12  ;;  %v3589_v40 = vrot.slane %v3468_v10, 5  ;;  %v4496_v63 = vshll.u32 %v4313_v16, 16  ;;  %v5032_v62 = vld [vmem:[#allocation2 + $0x68] sm:$0x1] }
 0x1ca   : > { %v2339_v50 = vadd.f32 %v2292_v53, %v1842_v59  ;;  %6009 = vmatmul.msk.bf16.gmra.mxu1 %vm957_vm9, %v3727_v47  ;;  %v3701_v57 = vunpack.c.l.b16 %v3583_v23  ;;  %v5148_v47 = vrot.slane %v5029_v43, 5  ;;  %v1844_v59 = vadd.f32 %v7632_v26, %v1622_v38  ;;  %v3469_v53 = vld [vmem:[#allocation2 + $0x5c] sm:$0x1]  ;;  %v6195_v43 = vld [vmem:[#allocation2 + $0x54] sm:$0xff] }
 0x1cb   : > { %v2642_v60 = vpop.f32.mrf.mxu3  ;;  %v4487_v26 = vshrl.u32 %v4312_v49, 16  ;;  %v3591_v6 = vrot.slane %v3589_v40, 4  ;;  %v4475_v37 = vsel %vm6860_vm12, %v4470_v0, %v7656_v29  ;;  %v7684_v11 = vrot.slane %v4496_v63, 5  ;;  %v1624_v0 = vld [vmem:[%s6958_s10 + $0xd0] sm:$0xff] }
 0x1cc   : > { %v2689_v20 = vadd.f32 %v2642_v60, %v2339_v50  ;;  %v3728_v7 = vpack.c.b16 %v3702_v55, %v3701_v57  ;;  %v4484_v50 = vrot.slane %v4482_v42, 5  ;;  %v5149_v15 = vsel %vm6877_vm15, %v5147_v52, %v5148_v47  ;;  %v5030_v55 = vld [vmem:[#allocation2 + $0x60] sm:$0xe]  ;;  %v3471_v52 = vld [vmem:[#allocation2 + $0x64] sm:$0xf] }
 0x1cd   : > { %v4490_v60 = vshll.u32 %v4312_v49, 16  ;;  %v4489_v5 = vrot.slane %v4487_v26, 4  ;;  %v6125_v47 = vrot.slane %v5030_v55, 9  ;;  %v5154_v38 = vrot.slane %v5152_v19, 4 }
 0x1ce   : > { %v3407_v30 = vadd.f32 %v3360_v18, %v2689_v20  ;;  %v6194_v18 = vld [vmem:[#allocation2 + $0x48] sm:$0xff]  ;;  %v3592_v20 = vrot.slane %v3469_v53, 5  ;;  %v4485_v46 = vsel %vm6860_vm12, %v4480_v48, %v4484_v50  ;;  %v3470_v48 = vld [vmem:[#allocation2 + $0x60] sm:$0xe]  ;;  %v3596_v50 = vrot.slane %v3471_v52, 5 }
 0x1cf   : > { %v7648_v8 = vpop.f32.mrf.mxu1  ;;  %v4492_v23 = vrot.slane %v4490_v60, 5 }
 0x1d0   : > { %3439 = vst [vmem:[%s6958_s10 + $0xb0] sm:$0xff] %v3407_v30  ;;  %v5265_v30 = vunpack.c.l.b16 %v5149_v15  ;;  %v3593_v31 = vsel %vm6877_vm15, %v3591_v6, %v3592_v20  ;;  %v1845_v29 = vadd.f32 %v7648_v8, %v1623_v35  ;;  %v3472_v15 = vld [vmem:[#allocation2 + $0x68] sm:$0x1] }
 0x1d1   : > { %v2294_v45 = vpop.f32.mrf.mxu2  ;;  %v3365_v34 = vpop.f32.mrf.mxu0  ;;  %v4493_v10 = vor.u32 %v4492_v23, %v4489_v5 }
 0x1d2   : > { %v2340_v32 = vadd.f32 %v2294_v45, %v1843_v1  ;;  %v3590_v1 = vsel %vm6877_vm15, %v5994_v61, %v3589_v40  ;;  %v4502_v45 = vrot.slane %v4500_v28, 4  ;;  %v5155_v40 = vrot.slane %v5032_v62, 5 }
 0x1d3   : > { %v2644_v56 = vpop.f32.mrf.mxu3  ;;  %v4494_v53 = vrot.slane %v4493_v10, 4 }
 0x1d4   : > { %v2690_v3 = vadd.f32 %v2644_v56, %v2340_v32  ;;  %6140 = vmatmul.msk.bf16.gmra.mxu0 %vm957_vm9, %v5290_v36  ;;  %v3703_v56 = vunpack.c.l.b16 %v3590_v1  ;;  %v4503_v42 = vor.u32 %v4502_v45, %v7684_v11  ;;  %v5156_v20 = vsel %vm6877_vm15, %v5154_v38, %v5155_v40 }
 0x1d5   : > { %v5267_v35 = vunpack.c.l.b16 %v5156_v20 }
 0x1d6   : > { %6090 = vmatmul.msk.bf16.gmra.mxu2 %vm957_vm9, %v6194_v18  ;;  %v3408_v24 = vadd.f32 %v3362_v25, %v2690_v3  ;;  %v5146_v25 = vsel %vm6877_vm15, %v6124_v27, %v5145_v21  ;;  %v4770_v18 = vunpack.c.l.b16 %v4475_v37  ;;  %v3704_v3 = vunpack.c.l.b16 %v3593_v31 }
 0x1d7   : > { %v7662_v12 = vpop.f32.mrf.mxu1  ;;  %v5264_v14 = vunpack.c.l.b16 %v5146_v25  ;;  %v3599_v37 = vrot.slane %v3472_v15, 5 }
 0x1d8   : > { %6107 = vmatmul.msk.bf16.gmra.mxu3 %vm957_vm9, %v4796_v9  ;;  %3440 = vst [vmem:[%s6958_s10 + $0xb8] sm:$0xff] %v3408_v24  ;;  %v4314_v9 = vld [vmem:[#allocation2 + $0x68] sm:$0x1]  ;;  %v3729_v16 = vpack.c.b16 %v3704_v3, %v3703_v56  ;;  %v1846_v25 = vadd.f32 %v7662_v12, %v1624_v0  ;;  %v5995_v12 = vrot.slane %v3470_v48, 9  ;;  %v4319_v0 = vld [vmem:[#allocation2 + $0x7c] sm:$0xf] }
 0x1d9   : > { %v2297_v44 = vpop.f32.mrf.mxu2  ;;  %v3367_v4 = vpop.f32.mrf.mxu0  ;;  %v5291_v21 = vpack.c.b16 %v5265_v30, %v5264_v14  ;;  %v4506_v24 = vshll.u32 %v4314_v9, 16  ;;  %v4499_v14 = vsel %vm6860_vm12, %v4494_v53, %v7684_v11  ;;  %v3598_v30 = vrot.slane %v3596_v50, 4 }
 0x1da   : > { %v2341_v2 = vadd.f32 %v2297_v44, %v1844_v59  ;;  %6010 = vmatmul.msk.bf16.gmra.mxu1 %vm957_vm9, %v3728_v7  ;;  %v4315_v7 = vld [vmem:[#allocation2 + $0x6c] sm:$0xf]  ;;  %v4316_v59 = vld [vmem:[#allocation2 + $0x70] sm:$0xf]  ;;  %v4504_v44 = vrot.slane %v4503_v42, 4  ;;  %v3597_v11 = vsel %vm6877_vm15, %v5995_v12, %v3596_v50  ;;  %v4548_v12 = vshrl.u32 %v4319_v0, 16 }
 0x1db   : > { %v2647_v58 = vpop.f32.mrf.mxu3  ;;  %v4514_v26 = vshll.u32 %v4315_v7, 16  ;;  %v4508_v63 = vrot.slane %v4506_v24, 5  ;;  %v4520_v61 = vshll.u32 %v4316_v59, 16  ;;  %v4524_v6 = vshrl.u32 %v4316_v59, 16  ;;  %v4318_v59 = vld [vmem:[#allocation2 + $0x78] sm:$0xf] }
 0x1dc   : > { %v2691_v51 = vadd.f32 %v2647_v58, %v2341_v2  ;;  %v4511_v2 = vshrl.u32 %v4315_v7, 16 }
 0x1dd   : > { %v4516_v41 = vrot.slane %v4514_v26, 5  ;;  %v4509_v1 = vsel %vm6860_vm12, %v4504_v44, %v4508_v63  ;;  %v7707_v31 = vrot.slane %v4520_v61, 5  ;;  %v4526_v45 = vrot.slane %v4524_v6, 4  ;;  %v1626_v26 = vld [vmem:[%s6958_s10 + $0xe0] sm:$0xff] }
 0x1de   : > { %v3409_v54 = vadd.f32 %v3365_v34, %v2691_v51  ;;  %v4771_v34 = vunpack.c.l.b16 %v4485_v46  ;;  %v4513_v23 = vrot.slane %v4511_v2, 4  ;;  %v4773_v3 = vunpack.c.l.b16 %v4509_v1 }
 0x1df   : > { %v7678_v36 = vpop.f32.mrf.mxu1  ;;  %v4527_v42 = vor.u32 %v4526_v45, %v7707_v31  ;;  %v4535_v63 = vshrl.u32 %v4318_v59, 16  ;;  %v4538_v61 = vshll.u32 %v4318_v59, 16  ;;  %v4544_v6 = vshll.u32 %v4319_v0, 16  ;;  %v3477_v0 = vld [vmem:[#allocation2 + $0x7c] sm:$0xf] }
 0x1e0   : > { %3441 = vst [vmem:[%s6958_s10 + $0xc0] sm:$0xff] %v3409_v54  ;;  %v4797_v27 = vpack.c.b16 %v4771_v34, %v4770_v18  ;;  %v5034_v54 = vld [vmem:[#allocation2 + $0x70] sm:$0xf]  ;;  %v4317_v18 = vld [vmem:[#allocation2 + $0x74] sm:$0x1]  ;;  %v4517_v9 = vor.u32 %v4516_v41, %v4513_v23 }
 0x1e1   : > { %v2299_v32 = vpop.f32.mrf.mxu2  ;;  %v3370_v57 = vpop.f32.mrf.mxu0  ;;  %v5033_v34 = vld [vmem:[#allocation2 + $0x6c] sm:$0xe]  ;;  %v4528_v44 = vrot.slane %v4527_v42, 4  ;;  %v4537_v1 = vrot.slane %v4535_v63, 4  ;;  %v4321_v63 = vld [vmem:[#allocation2 + $0x84] sm:$0xf] }
 0x1e2   : > { %v2342_v22 = vadd.f32 %v2299_v32, %v1845_v29  ;;  %v1625_v32 = vld [vmem:[%s6958_s10 + $0xd8] sm:$0xff]  ;;  %v4518_v53 = vrot.slane %v4517_v9, 4 }
 0x1e3   : > { %v2649_v13 = vpop.f32.mrf.mxu3  ;;  %v1847_v56 = vadd.f32 %v7678_v36, %v1625_v32  ;;  %v1627_v32 = vld [vmem:[%s6958_s10 + $0xe8] sm:$0xff] }
 0x1e4   : > { %v2692_v8 = vadd.f32 %v2649_v13, %v2342_v22  ;;  %6141 = vmatmul.msk.bf16.gmra.mxu0 %vm957_vm9, %v5291_v21  ;;  %v5159_v21 = vrot.slane %v5034_v54, 5  ;;  %v3600_v22 = vsel %vm6877_vm15, %v3598_v30, %v3599_v37  ;;  %v3705_v13 = vunpack.c.l.b16 %v3597_v11 }
 0x1e5   : > { %v3706_v24 = vunpack.c.l.b16 %v3600_v22  ;;  %v7737_v11 = vrot.slane %v4544_v6, 5 }
 0x1e6   : > { %6091 = vmatmul.msk.bf16.gmra.mxu2 %vm957_vm9, %v6195_v43  ;;  %v3410_v49 = vadd.f32 %v3367_v4, %v2692_v8  ;;  %v5153_v4 = vsel %vm6877_vm15, %v6125_v47, %v5152_v19  ;;  %v4772_v19 = vunpack.c.l.b16 %v4499_v14  ;;  %v5035_v43 = vld [vmem:[#allocation2 + $0x74] sm:$0x1]  ;;  %v4530_v8 = vshll.u32 %v4317_v18, 16  ;;  %v6196_v47 = vld [vmem:[#allocation2 + $0x60] sm:$0xff] }
 0x1e7   : > { %v7692_v39 = vpop.f32.mrf.mxu1  ;;  %v5266_v46 = vunpack.c.l.b16 %v5153_v4  ;;  %v5161_v7 = vrot.slane %v5159_v21, 4  ;;  %v5162_v38 = vrot.slane %v5035_v43, 5  ;;  %v4523_v14 = vsel %vm6860_vm12, %v4518_v53, %v7707_v31 }
 0x1e8   : > { %6108 = vmatmul.msk.bf16.gmra.mxu3 %vm957_vm9, %v4797_v27  ;;  %3442 = vst [vmem:[%s6958_s10 + $0xc8] sm:$0xff] %v3410_v49  ;;  %v6126_v27 = vrot.slane %v5033_v34, 9  ;;  %v4798_v36 = vpack.c.b16 %v4773_v3, %v4772_v19  ;;  %v4532_v48 = vrot.slane %v4530_v8, 5  ;;  %v1848_v20 = vadd.f32 %v7692_v39, %v1626_v26  ;;  %v4320_v34 = vld [vmem:[#allocation2 + $0x80] sm:$0x1] }
 0x1e9   : > { %v2302_v60 = vpop.f32.mrf.mxu2  ;;  %v3372_v58 = vpop.f32.mrf.mxu0  ;;  %v5163_v2 = vsel %vm6877_vm15, %v5161_v7, %v5162_v38  ;;  %v4550_v31 = vrot.slane %v4548_v12, 4  ;;  %v4774_v22 = vunpack.c.l.b16 %v4523_v14  ;;  %v4554_v8 = vshll.u32 %v4320_v34, 16  ;;  %v5036_v38 = vld [vmem:[#allocation2 + $0x78] sm:$0xe] }
 0x1ea   : > { %v2343_v28 = vadd.f32 %v2302_v60, %v1846_v25  ;;  %6011 = vmatmul.msk.bf16.gmra.mxu1 %vm957_vm9, %v3729_v16  ;;  %v3474_v16 = vld [vmem:[#allocation2 + $0x70] sm:$0xf]  ;;  %v3730_v25 = vpack.c.b16 %v3706_v24, %v3705_v13  ;;  %v5160_v15 = vsel %vm6877_vm15, %v6126_v27, %v5159_v21  ;;  %v5269_v54 = vunpack.c.l.b16 %v5163_v2  ;;  %v5037_v21 = vld [vmem:[#allocation2 + $0x7c] sm:$0xf]  ;;  %v1628_v2 = vld [vmem:[%s6958_s10 + $0xf0] sm:$0xff] }
 0x1eb   : > { %v2652_v51 = vpop.f32.mrf.mxu3  ;;  %v3603_v60 = vrot.slane %v3474_v16, 5  ;;  %v5268_v39 = vunpack.c.l.b16 %v5160_v15  ;;  %v5166_v27 = vrot.slane %v5037_v21, 5  ;;  %v4556_v53 = vrot.slane %v4554_v8, 5 }
 0x1ec   : > { %v2693_v5 = vadd.f32 %v2652_v51, %v2343_v28  ;;  %v3475_v28 = vld [vmem:[#allocation2 + $0x74] sm:$0x1] }
 0x1ed   : > { %v3605_v41 = vrot.slane %v3603_v60, 4  ;;  %v5293_v13 = vpack.c.b16 %v5269_v54, %v5268_v39  ;;  %v4562_v39 = vshll.u32 %v4321_v63, 16 }
 0x1ee   : > { %v3411_v29 = vadd.f32 %v3370_v57, %v2693_v5  ;;  %v5292_v57 = vpack.c.b16 %v5267_v35, %v5266_v46  ;;  %v4533_v46 = vsel %vm6860_vm12, %v4528_v44, %v4532_v48  ;;  %v3606_v35 = vrot.slane %v3475_v28, 5 }
 0x1ef   : > { %v7712_v55 = vpop.f32.mrf.mxu1  ;;  %v4775_v43 = vunpack.c.l.b16 %v4533_v46  ;;  %v6127_v44 = vrot.slane %v5036_v38, 9  ;;  %v5168_v48 = vrot.slane %v5166_v27, 4  ;;  %v4559_v46 = vshrl.u32 %v4321_v63, 16  ;;  %v6198_v38 = vld [vmem:[#allocation2 + $0x78] sm:$0xff] }
 0x1f0   : > { %3443 = vst [vmem:[%s6958_s10 + $0xd0] sm:$0xff] %v3411_v29  ;;  %v4540_v29 = vrot.slane %v4538_v61, 5  ;;  %v3607_v3 = vsel %vm6877_vm15, %v3605_v41, %v3606_v35  ;;  %v1849_v9 = vadd.f32 %v7712_v55, %v1627_v32  ;;  %v4322_v61 = vld [vmem:[#allocation2 + $0x88] sm:$0xf]  ;;  %v3657_v63 = vld [vmem:[%s6958_s10] sm:$0xff] }
 0x1f1   : > { %v2304_v62 = vpop.f32.mrf.mxu2  ;;  %v3375_v10 = vpop.f32.mrf.mxu0  ;;  %v3708_v7 = vunpack.c.l.b16 %v3607_v3  ;;  %v4799_v16 = vpack.c.b16 %v4775_v43, %v4774_v22  ;;  %v4568_v54 = vshll.u32 %v4322_v61, 16  ;;  %v4561_v32 = vrot.slane %v4559_v46, 4  ;;  %v1629_v43 = vld [vmem:[%s6958_s10 + $0xf8] sm:$0xff] }
 0x1f2   : > { %v2344_v52 = vadd.f32 %v2304_v62, %v1847_v56  ;;  %v4551_v62 = vor.u32 %v4550_v31, %v7737_v11  ;;  %v4564_v22 = vrot.slane %v4562_v39, 5 }
 0x1f3   : > { %v2654_v40 = vpop.f32.mrf.mxu3 }
 0x1f4   : > { %v2694_v49 = vadd.f32 %v2654_v40, %v2344_v52  ;;  %6142 = vmatmul.msk.bf16.gmra.mxu0 %vm957_vm9, %v5292_v57  ;;  %v4541_v57 = vor.u32 %v4540_v29, %v4537_v1  ;;  %v5038_v40 = vld [vmem:[#allocation2 + $0x80] sm:$0x1]  ;;  %v4552_v59 = vrot.slane %v4551_v62, 4  ;;  %v4572_v1 = vshrl.u32 %v4322_v61, 16 }
 0x1f6   : > { %6092 = vmatmul.msk.bf16.gmra.mxu2 %vm957_vm9, %v6196_v47  ;;  %v3412_v50 = vadd.f32 %v3372_v58, %v2694_v49  ;;  %v3473_v58 = vld [vmem:[#allocation2 + $0x6c] sm:$0xe]  ;;  %v4542_v55 = vrot.slane %v4541_v57, 4  ;;  %v7774_v57 = vrot.slane %v4568_v54, 5  ;;  %v4574_v62 = vrot.slane %v4572_v1, 4 }
 0x1f7   : > { %v7726_v4 = vpop.f32.mrf.mxu1  ;;  %v5996_v23 = vrot.slane %v3473_v58, 9  ;;  %v6197_v47 = vld [vmem:[#allocation2 + $0x6c] sm:$0xff]  ;;  %v3478_v58 = vld [vmem:[#allocation2 + $0x80] sm:$0x1] }
 0x1f8   : > { %6109 = vmatmul.msk.bf16.gmra.mxu3 %vm957_vm9, %v4798_v36  ;;  %3444 = vst [vmem:[%s6958_s10 + $0xd8] sm:$0xff] %v3412_v50  ;;  %v5169_v50 = vrot.slane %v5038_v40, 5  ;;  %v1850_v6 = vadd.f32 %v7726_v4, %v1628_v2  ;;  %v4547_v12 = vsel %vm6860_vm12, %v4542_v55, %v7737_v11  ;;  %v3613_v35 = vrot.slane %v3478_v58, 5  ;;  %v4324_v2 = vld [vmem:[#allocation2 + $0x90] sm:$0xf] }
 0x1f9   : > { %v2307_v51 = vpop.f32.mrf.mxu2  ;;  %v3377_v30 = vpop.f32.mrf.mxu0  ;;  %v3604_v56 = vsel %vm6877_vm15, %v5996_v23, %v3603_v60  ;;  %v3610_v60 = vrot.slane %v3477_v0, 5  ;;  %v4776_v31 = vunpack.c.l.b16 %v4547_v12  ;;  %v4565_v55 = vor.u32 %v4564_v22, %v4561_v32 }
 0x1fa   : > { %v2345_v37 = vadd.f32 %v2307_v51, %v1848_v20  ;;  %6012 = vmatmul.msk.bf16.gmra.mxu1 %vm957_vm9, %v3730_v25  ;;  %v3707_v24 = vunpack.c.l.b16 %v3604_v56  ;;  %v3476_v20 = vld [vmem:[#allocation2 + $0x78] sm:$0xe]  ;;  %v4557_v51 = vsel %vm6860_vm12, %v4552_v59, %v4556_v53  ;;  %v5170_v4 = vsel %vm6877_vm15, %v5168_v48, %v5169_v50  ;;  %v3480_v53 = vld [vmem:[#allocation2 + $0x88] sm:$0xf] }
 0x1fb   : > { %v2657_v5 = vpop.f32.mrf.mxu3  ;;  %v5997_v23 = vrot.slane %v3476_v20, 9  ;;  %v3612_v41 = vrot.slane %v3610_v60, 4  ;;  %v5271_v11 = vunpack.c.l.b16 %v5170_v4  ;;  %v4777_v21 = vunpack.c.l.b16 %v4557_v51  ;;  %v3479_v51 = vld [vmem:[#allocation2 + $0x84] sm:$0xe] }
 0x1fc   : > { %v2695_v45 = vadd.f32 %v2657_v5, %v2345_v37  ;;  %v3731_v15 = vpack.c.b16 %v3708_v7, %v3707_v24  ;;  %v5041_v24 = vld [vmem:[#allocation2 + $0x8c] sm:$0x1]  ;;  %v4575_v59 = vor.u32 %v4574_v62, %v7774_v57  ;;  %v3617_v58 = vrot.slane %v3480_v53, 5  ;;  %v4326_v62 = vld [vmem:[#allocation2 + $0x98] sm:$0x1] }
 0x1fd   : > { %v3611_v3 = vsel %vm6877_vm15, %v5997_v23, %v3610_v60  ;;  %v5176_v50 = vrot.slane %v5041_v24, 5  ;;  %v4325_v60 = vld [vmem:[#allocation2 + $0x94] sm:$0xf]  ;;  %v4583_v39 = vshrl.u32 %v4324_v2, 16  ;;  %v4586_v54 = vshll.u32 %v4324_v2, 16 }
 0x1fe   : > { %v3413_v18 = vadd.f32 %v3375_v10, %v2695_v45  ;;  %v3709_v40 = vunpack.c.l.b16 %v3611_v3  ;;  %v4576_v20 = vrot.slane %v4575_v59, 4  ;;  %v4596_v23 = vshrl.u32 %v4325_v60, 16 }
 0x1ff   : > { %v7740_v19 = vpop.f32.mrf.mxu1  ;;  %v5998_v1 = vrot.slane %v3479_v51, 9  ;;  %v4585_v32 = vrot.slane %v4583_v39, 4  ;;  %v4588_v22 = vrot.slane %v4586_v54, 5  ;;  %v4602_v59 = vshll.u32 %v4326_v62, 16 }
 0x200   : > { %3445 = vst [vmem:[%s6958_s10 + $0xe0] sm:$0xff] %v3413_v18  ;;  %v5040_v18 = vld [vmem:[#allocation2 + $0x88] sm:$0xf]  ;;  %v4598_v3 = vrot.slane %v4596_v23, 4 }
 0x201   : > { %v2309_v10 = vpop.f32.mrf.mxu2  ;;  %v3380_v42 = vpop.f32.mrf.mxu0  ;;  %v5173_v8 = vrot.slane %v5040_v18, 5 }
 0x202   : > { %v2346_v52 = vadd.f32 %v2309_v10, %v1849_v9  ;;  %v3614_v9 = vsel %vm6877_vm15, %v3612_v41, %v3613_v35  ;;  %v4323_v10 = vld [vmem:[#allocation2 + $0x8c] sm:$0x1] }
 0x203   : > { %v2659_v49 = vpop.f32.mrf.mxu3  ;;  %v4578_v0 = vshll.u32 %v4323_v10, 16  ;;  %v5175_v48 = vrot.slane %v5173_v8, 4 }
 0x204   : > { %v2696_v36 = vadd.f32 %v2659_v49, %v2346_v52  ;;  %6143 = vmatmul.msk.bf16.gmra.mxu0 %vm957_vm9, %v5293_v13  ;;  %v1851_v13 = vadd.f32 %v7740_v19, %v1629_v43  ;;  %v3710_v49 = vunpack.c.l.b16 %v3614_v9 }
 0x205   : > { %v4580_v12 = vrot.slane %v4578_v0, 5  ;;  %v5177_v4 = vsel %vm6877_vm15, %v5175_v48, %v5176_v50 }
 0x206   : > { %6093 = vmatmul.msk.bf16.gmra.mxu2 %vm957_vm9, %v6197_v47  ;;  %v3414_v25 = vadd.f32 %v3377_v30, %v2696_v36  ;;  %v5167_v30 = vsel %vm6877_vm15, %v6127_v44, %v5166_v27  ;;  %v5039_v47 = vld [vmem:[#allocation2 + $0x84] sm:$0xe] }
 0x207   : > { %v7752_v26 = vpop.f32.mrf.mxu1  ;;  %v5270_v29 = vunpack.c.l.b16 %v5167_v30  ;;  %v6128_v44 = vrot.slane %v5039_v47, 9  ;;  %v3481_v30 = vld [vmem:[#allocation2 + $0x8c] sm:$0x1] }
 0x208   : > { %6110 = vmatmul.msk.bf16.gmra.mxu3 %vm957_vm9, %v4799_v16  ;;  %3446 = vst [vmem:[%s6958_s10 + $0xe8] sm:$0xff] %v3414_v25  ;;  %v4800_v16 = vpack.c.b16 %v4777_v21, %v4776_v31  ;;  %v4581_v31 = vsel %vm6860_vm12, %v4576_v20, %v4580_v12  ;;  %v5043_v21 = vld [vmem:[#allocation2 + $0x94] sm:$0xf]  ;;  %v3659_v12 = vld [vmem:[%s6958_s10 + $0x10] sm:$0xff] }
 0x209   : > { %v2312_v28 = vpop.f32.mrf.mxu2  ;;  %v3382_v14 = vpop.f32.mrf.mxu0 }
 0x20a   : > { %v2347_v37 = vadd.f32 %v2312_v28, %v1850_v6  ;;  %6013 = vmatmul.msk.bf16.gmra.mxu1 %vm957_vm9, %v3731_v15  ;;  %v3732_v15 = vpack.c.b16 %v3710_v49, %v3709_v40  ;;  %v4566_v6 = vrot.slane %v4565_v55, 4  ;;  %v3879_v28 = vadd.f32 %v7752_v26, %v3657_v63  ;;  %v5042_v40 = vld [vmem:[#allocation2 + $0x90] sm:$0xe]  ;;  %v5044_v49 = vld [vmem:[#allocation2 + $0x98] sm:$0x1] }
 0x20b   : > { %v2662_v5 = vpop.f32.mrf.mxu3  ;;  %v5183_v2 = vrot.slane %v5044_v49, 5 }
 0x20c   : > { %v2697_v45 = vadd.f32 %v2662_v5, %v2347_v37  ;;  %v4592_v5 = vshll.u32 %v4325_v60, 16  ;;  %v4571_v35 = vsel %vm6860_vm12, %v4566_v6, %v7774_v57  ;;  %v4327_v6 = vld [vmem:[#allocation2 + $0x9c] sm:$0xf] }
 0x20d   : > { %v4778_v57 = vunpack.c.l.b16 %v4571_v35  ;;  %v4607_v23 = vshrl.u32 %v4327_v6, 16 }
 0x20e   : > { %v3415_v34 = vadd.f32 %v3380_v42, %v2697_v45  ;;  %v5294_v42 = vpack.c.b16 %v5271_v11, %v5270_v29  ;;  %v3619_v45 = vrot.slane %v3617_v58, 4  ;;  %v3620_v29 = vrot.slane %v3481_v30, 5 }
 0x20f   : > { %v7768_v56 = vpop.f32.mrf.mxu1  ;;  %v7797_v43 = vrot.slane %v4592_v5, 5  ;;  %v3484_v5 = vld [vmem:[#allocation2 + $0x98] sm:$0x1] }
 0x210   : > { %3447 = vst [vmem:[%s6958_s10 + $0xf0] sm:$0xff] %v3415_v34  ;;  %v5273_v34 = vunpack.c.l.b16 %v5177_v4  ;;  %v3482_v4 = vld [vmem:[#allocation2 + $0x90] sm:$0xe] }
 0x211   : > { %v2314_v27 = vpop.f32.mrf.mxu2  ;;  %v5362_v52 = vpop.f32.mrf.mxu0  ;;  %v4599_v55 = vor.u32 %v4598_v3, %v7797_v43 }
 0x212   : > { %v2348_v7 = vadd.f32 %v2314_v27, %v1851_v13  ;;  %v3658_v13 = vld [vmem:[%s6958_s10 + $0x8] sm:$0xff]  ;;  %v5180_v27 = vrot.slane %v5043_v21, 5 }
 0x213   : > { %v2664_v36 = vpop.f32.mrf.mxu3  ;;  %v3880_v47 = vadd.f32 %v7768_v56, %v3658_v13  ;;  %v3483_v56 = vld [vmem:[#allocation2 + $0x94] sm:$0xf] }
 0x214   : > { %v2698_v19 = vadd.f32 %v2664_v36, %v2348_v7  ;;  %6144 = vmatmul.msk.bf16.gmra.mxu0 %vm957_vm9, %v5294_v42  ;;  %v3618_v42 = vsel %vm6877_vm15, %v5998_v1, %v3617_v58  ;;  %v4779_v7 = vunpack.c.l.b16 %v4581_v31  ;;  %v4600_v58 = vrot.slane %v4599_v55, 4 }
 0x215   : > { %v5999_v31 = vrot.slane %v3482_v4, 9  ;;  %v4331_v4 = vld [vmem:[#allocation2 + $0xac] sm:$0xf] }
 0x216   : > { %6094 = vmatmul.msk.bf16.gmra.mxu2 %vm957_vm9, %v6198_v38  ;;  %v3416_v25 = vadd.f32 %v3382_v14, %v2698_v19  ;;  %v5174_v14 = vsel %vm6877_vm15, %v6128_v44, %v5173_v8  ;;  %v3621_v8 = vsel %vm6877_vm15, %v3619_v45, %v3620_v29  ;;  %v6199_v19 = vld [vmem:[#allocation2 + $0x84] sm:$0xff]  ;;  %v3711_v44 = vunpack.c.l.b16 %v3618_v42 }
 0x217   : > { %v7782_v61 = vpop.f32.mrf.mxu1  ;;  %v5272_v18 = vunpack.c.l.b16 %v5174_v14  ;;  %v3712_v48 = vunpack.c.l.b16 %v3621_v8  ;;  %v4801_v63 = vpack.c.b16 %v4779_v7, %v4778_v57  ;;  %v4604_v14 = vrot.slane %v4602_v59, 5  ;;  %v5046_v57 = vld [vmem:[#allocation2 + $0xa0] sm:$0xf] }
 0x218   : > { %6111 = vmatmul.msk.bf16.gmra.mxu3 %vm957_vm9, %v4800_v16  ;;  %3448 = vst [vmem:[%s6958_s10 + $0xf8] sm:$0xff] %v3416_v25  ;;  %v4589_v16 = vor.u32 %v4588_v22, %v4585_v32  ;;  %v6129_v25 = vrot.slane %v5042_v40, 9  ;;  %v3881_v39 = vadd.f32 %v7782_v61, %v3659_v12  ;;  %v3627_v32 = vrot.slane %v3484_v5, 5  ;;  %v5045_v40 = vld [vmem:[#allocation2 + $0x9c] sm:$0xe] }
 0x219   : > { %v4150_v37 = vpop.f32.mrf.mxu2  ;;  %v5364_v46 = vpop.f32.mrf.mxu0  ;;  %v5295_v38 = vpack.c.b16 %v5273_v34, %v5272_v18  ;;  %v3733_v30 = vpack.c.b16 %v3712_v48, %v3711_v44  ;;  %v4605_v3 = vsel %vm6860_vm12, %v4600_v58, %v4604_v14  ;;  %v5187_v49 = vrot.slane %v5046_v57, 5  ;;  %v3486_v14 = vld [vmem:[#allocation2 + $0xa0] sm:$0xf] }
 0x21a   : > { %v4230_v41 = vadd.f32 %v4150_v37, %v3879_v28  ;;  %6014 = vmatmul.msk.bf16.gmra.mxu1 %vm957_vm9, %v3732_v15  ;;  %v5182_v15 = vrot.slane %v5180_v27, 4  ;;  %v4590_v20 = vrot.slane %v4589_v16, 4  ;;  %v4328_v28 = vld [vmem:[#allocation2 + $0xa0] sm:$0xf]  ;;  %v3624_v37 = vrot.slane %v3483_v56, 5 }
 0x21b   : > { %v4868_v26 = vpop.f32.mrf.mxu3  ;;  %v4616_v1 = vshll.u32 %v4328_v28, 16  ;;  %v4620_v45 = vshrl.u32 %v4328_v28, 16  ;;  %v4781_v59 = vunpack.c.l.b16 %v4605_v3  ;;  %v5189_v58 = vrot.slane %v5187_v49, 4 }
 0x21c   : > { %v4948_v11 = vadd.f32 %v4868_v26, %v4230_v41  ;;  %v5181_v41 = vsel %vm6877_vm15, %v6129_v25, %v5180_v27  ;;  %v5184_v26 = vsel %vm6877_vm15, %v5182_v15, %v5183_v2  ;;  %v4595_v61 = vsel %vm6860_vm12, %v4590_v20, %v7797_v43 }
 0x21d   : > { %v3626_v21 = vrot.slane %v3624_v37, 4  ;;  %v5274_v62 = vunpack.c.l.b16 %v5181_v41  ;;  %v5275_v13 = vunpack.c.l.b16 %v5184_v26  ;;  %v7827_v8 = vrot.slane %v4616_v1, 5  ;;  %v3661_v1 = vld [vmem:[%s6958_s10 + $0x20] sm:$0xff] }
 0x21e   : > { %v5442_v9 = vadd.f32 %v5362_v52, %v4948_v11  ;;  %v4622_v27 = vrot.slane %v4620_v45, 4  ;;  %v4780_v55 = vunpack.c.l.b16 %v4595_v61 }
 0x21f   : > { %v7800_v10 = vpop.f32.mrf.mxu1  ;;  %v3628_v7 = vsel %vm6877_vm15, %v3626_v21, %v3627_v32  ;;  %v3487_v32 = vld [vmem:[#allocation2 + $0xa4] sm:$0x1] }
 0x220   : > { %v5538_v24 = vmul.f32 0.1, %v5442_v9  ;;  %v4623_v48 = vor.u32 %v4622_v27, %v7827_v8  ;;  %v3714_v25 = vunpack.c.l.b16 %v3628_v7 }
 0x221   : > { %v4152_v52 = vpop.f32.mrf.mxu2  ;;  %v5367_v36 = vpop.f32.mrf.mxu0 }
 0x222   : > { %v4231_v0 = vadd.f32 %v4152_v52, %v3880_v47  ;;  %v5570_v53 = vmax.f32 %v5442_v9, %v5538_v24  ;;  %v4609_v9 = vrot.slane %v4607_v23, 4  ;;  %v3625_v24 = vsel %vm6877_vm15, %v5999_v31, %v3624_v37  ;;  %v3660_v52 = vld [vmem:[%s6958_s10 + $0x18] sm:$0xff] }
 0x223   : > { %v4870_v50 = vpop.f32.mrf.mxu3  ;;  %v3713_v56 = vunpack.c.l.b16 %v3625_v24  ;;  %v4624_v5 = vrot.slane %v4623_v48, 4  ;;  %v4640_v31 = vshll.u32 %v4331_v4, 16  ;;  %v3634_v24 = vrot.slane %v3487_v32, 5 }
 0x224   : > { %v4949_v60 = vadd.f32 %v4870_v50, %v4231_v0  ;;  %5602 = vst [vmem:[%s6958_s10] sm:$0xff] %v5570_v53  ;;  %6145 = vmatmul.msk.bf16.gmra.mxu0 %vm957_vm9, %v5295_v38  ;;  %v4329_v38 = vld [vmem:[#allocation2 + $0xa4] sm:$0x1]  ;;  %v5296_v0 = vpack.c.b16 %v5275_v13, %v5274_v62  ;;  %v3882_v53 = vadd.f32 %v7800_v10, %v3660_v52 }
 0x225   : > { %v4626_v2 = vshll.u32 %v4329_v38, 16  ;;  %v3734_v37 = vpack.c.b16 %v3714_v25, %v3713_v56 }
 0x226   : > { %6095 = vmatmul.msk.bf16.gmra.mxu2 %vm957_vm9, %v6199_v19  ;;  %v5443_v51 = vadd.f32 %v5364_v46, %v4949_v60  ;;  %v4610_v46 = vshll.u32 %v4327_v6, 16  ;;  %v5047_v19 = vld [vmem:[#allocation2 + $0xa4] sm:$0x1]  ;;  %v6130_v60 = vrot.slane %v5045_v40, 9  ;;  %v6200_v6 = vld [vmem:[#allocation2 + $0x90] sm:$0xff] }
 0x227   : > { %v7813_v54 = vpop.f32.mrf.mxu1  ;;  %v5190_v28 = vrot.slane %v5047_v19, 5  ;;  %v4628_v23 = vrot.slane %v4626_v2, 5  ;;  %v3662_v19 = vld [vmem:[%s6958_s10 + $0x28] sm:$0xff] }
 0x228   : > { %6112 = vmatmul.msk.bf16.gmra.mxu3 %vm957_vm9, %v4801_v63  ;;  %v5539_v35 = vmul.f32 0.1, %v5443_v51  ;;  %v4612_v43 = vrot.slane %v4610_v46, 5 }
 0x229   : > { %v4155_v29 = vpop.f32.mrf.mxu2  ;;  %v5369_v11 = vpop.f32.mrf.mxu0  ;;  %v5191_v46 = vsel %vm6877_vm15, %v5189_v58, %v5190_v28  ;;  %v6201_v28 = vld [vmem:[#allocation2 + $0x9c] sm:$0xff] }
 0x22a   : > { %v4232_v18 = vadd.f32 %v4155_v29, %v3881_v39  ;;  %v5571_v34 = vmax.f32 %v5443_v51, %v5539_v35  ;;  %6015 = vmatmul.msk.bf16.gmra.mxu1 %vm957_vm9, %v3733_v30  ;;  %v4330_v51 = vld [vmem:[#allocation2 + $0xa8] sm:$0xf]  ;;  %v4802_v30 = vpack.c.b16 %v4781_v59, %v4780_v55  ;;  %v5188_v35 = vsel %vm6877_vm15, %v6130_v60, %v5187_v49  ;;  %v4332_v59 = vld [vmem:[#allocation2 + $0xb0] sm:$0x1] }
 0x22b   : > { %v4873_v22 = vpop.f32.mrf.mxu3  ;;  %v4631_v26 = vshrl.u32 %v4330_v51, 16  ;;  %v3631_v29 = vrot.slane %v3486_v14, 5  ;;  %v4634_v61 = vshll.u32 %v4330_v51, 16  ;;  %v5050_v14 = vld [vmem:[#allocation2 + $0xb0] sm:$0x1] }
 0x22c   : > { %v4950_v42 = vadd.f32 %v4873_v22, %v4232_v18  ;;  %5603 = vst [vmem:[%s6958_s10 + $0x8] sm:$0xff] %v5571_v34  ;;  %v4644_v18 = vshrl.u32 %v4331_v4, 16  ;;  %v3883_v34 = vadd.f32 %v7813_v54, %v3661_v1  ;;  %v5276_v54 = vunpack.c.l.b16 %v5188_v35 }
 0x22d   : > { %v4633_v7 = vrot.slane %v4631_v26, 4  ;;  %v4636_v40 = vrot.slane %v4634_v61, 5  ;;  %v4333_v61 = vld [vmem:[#allocation2 + $0xb4] sm:$0xf] }
 0x22e   : > { %v5444_v47 = vadd.f32 %v5367_v36, %v4950_v42  ;;  %v4613_v36 = vor.u32 %v4612_v43, %v4609_v9  ;;  %v4629_v9 = vsel %vm6860_vm12, %v4624_v5, %v4628_v23  ;;  %v5277_v42 = vunpack.c.l.b16 %v5191_v46  ;;  %v3489_v23 = vld [vmem:[#allocation2 + $0xac] sm:$0xf] }
 0x22f   : > { %v7834_v16 = vpop.f32.mrf.mxu1  ;;  %v4646_v49 = vrot.slane %v4644_v18, 4  ;;  %v4637_v2 = vor.u32 %v4636_v40, %v4633_v7  ;;  %v5197_v46 = vrot.slane %v5050_v14, 5  ;;  %v5053_v14 = vld [vmem:[#allocation2 + $0xbc] sm:$0x1] }
 0x230   : > { %v5540_v44 = vmul.f32 0.1, %v5444_v47  ;;  %v4614_v39 = vrot.slane %v4613_v36, 4  ;;  %v3884_v56 = vadd.f32 %v7834_v16, %v3662_v19  ;;  %v5052_v19 = vld [vmem:[#allocation2 + $0xb8] sm:$0xf] }
 0x231   : > { %v4157_v50 = vpop.f32.mrf.mxu2  ;;  %v5372_v15 = vpop.f32.mrf.mxu0 }
 0x232   : > { %v4233_v63 = vadd.f32 %v4157_v50, %v3882_v53  ;;  %v5572_v20 = vmax.f32 %v5444_v47, %v5540_v44  ;;  %v4619_v3 = vsel %vm6860_vm12, %v4614_v39, %v7827_v8  ;;  %v3633_v47 = vrot.slane %v3631_v29, 4 }
 0x233   : > { %v4875_v12 = vpop.f32.mrf.mxu3  ;;  %v7857_v8 = vrot.slane %v4640_v31, 5  ;;  %v4782_v55 = vunpack.c.l.b16 %v4619_v3  ;;  %v4783_v44 = vunpack.c.l.b16 %v4629_v9  ;;  %v5297_v50 = vpack.c.b16 %v5277_v42, %v5276_v54  ;;  %v3663_v31 = vld [vmem:[%s6958_s10 + $0x30] sm:$0xff]  ;;  %v3490_v9 = vld [vmem:[#allocation2 + $0xb0] sm:$0x1] }
 0x234   : > { %v4951_v10 = vadd.f32 %v4875_v12, %v4233_v63  ;;  %5604 = vst [vmem:[%s6958_s10 + $0x10] sm:$0xff] %v5572_v20  ;;  %6146 = vmatmul.msk.bf16.gmra.mxu0 %vm957_vm9, %v5296_v0  ;;  %v5049_v0 = vld [vmem:[#allocation2 + $0xac] sm:$0xf]  ;;  %v3635_v48 = vsel %vm6877_vm15, %v3633_v47, %v3634_v24  ;;  %v4638_v39 = vrot.slane %v4637_v2, 4  ;;  %v3488_v3 = vld [vmem:[#allocation2 + $0xa8] sm:$0xe] }
 0x235   : > { %v5194_v20 = vrot.slane %v5049_v0, 5  ;;  %v4803_v16 = vpack.c.b16 %v4783_v44, %v4782_v55  ;;  %v4655_v54 = vshrl.u32 %v4333_v61, 16  ;;  %v4658_v47 = vshll.u32 %v4333_v61, 16 }
 0x236   : > { %6096 = vmatmul.msk.bf16.gmra.mxu2 %vm957_vm9, %v6200_v6  ;;  %v5445_v41 = vadd.f32 %v5369_v11, %v4951_v10  ;;  %v3485_v11 = vld [vmem:[#allocation2 + $0x9c] sm:$0xe]  ;;  %v4650_v6 = vshll.u32 %v4332_v59, 16  ;;  %v3716_v10 = vunpack.c.l.b16 %v3635_v48 }
 0x237   : > { %v7846_v45 = vpop.f32.mrf.mxu1  ;;  %v6000_v27 = vrot.slane %v3485_v11, 9  ;;  %v5196_v35 = vrot.slane %v5194_v20, 4  ;;  %v4657_v48 = vrot.slane %v4655_v54, 4 }
 0x238   : > { %6113 = vmatmul.msk.bf16.gmra.mxu3 %vm957_vm9, %v4802_v30  ;;  %v5541_v21 = vmul.f32 0.1, %v5445_v41  ;;  %v5048_v30 = vld [vmem:[#allocation2 + $0xa8] sm:$0xe]  ;;  %v3885_v11 = vadd.f32 %v7846_v45, %v3663_v31  ;;  %v5204_v31 = vrot.slane %v5053_v14, 5 }
 0x239   : > { %v4160_v22 = vpop.f32.mrf.mxu2  ;;  %v5374_v62 = vpop.f32.mrf.mxu0  ;;  %v3632_v36 = vsel %vm6877_vm15, %v6000_v27, %v3631_v29  ;;  %v6131_v26 = vrot.slane %v5048_v30, 9  ;;  %v5198_v45 = vsel %vm6877_vm15, %v5196_v35, %v5197_v46  ;;  %v5051_v30 = vld [vmem:[#allocation2 + $0xb4] sm:$0xe] }
 0x23a   : > { %v4234_v13 = vadd.f32 %v4160_v22, %v3883_v34  ;;  %v5573_v57 = vmax.f32 %v5445_v41, %v5541_v21  ;;  %6016 = vmatmul.msk.bf16.gmra.mxu1 %vm957_vm9, %v3734_v37  ;;  %v3715_v51 = vunpack.c.l.b16 %v3632_v36  ;;  %v4652_v41 = vrot.slane %v4650_v6, 5  ;;  %v4334_v21 = vld [vmem:[#allocation2 + $0xb8] sm:$0xf] }
 0x23b   : > { %v4878_v43 = vpop.f32.mrf.mxu3  ;;  %v3638_v34 = vrot.slane %v3489_v23, 5  ;;  %v4643_v22 = vsel %vm6860_vm12, %v4638_v39, %v7857_v8  ;;  %v5195_v42 = vsel %vm6877_vm15, %v6131_v26, %v5194_v20  ;;  %v4664_v24 = vshll.u32 %v4334_v21, 16 }
 0x23c   : > { %v4952_v38 = vadd.f32 %v4878_v43, %v4234_v13  ;;  %5605 = vst [vmem:[%s6958_s10 + $0x18] sm:$0xff] %v5573_v57  ;;  %v3735_v29 = vpack.c.b16 %v3716_v10, %v3715_v51  ;;  %v5278_v55 = vunpack.c.l.b16 %v5195_v42  ;;  %v5279_v59 = vunpack.c.l.b16 %v5198_v45 }
 0x23d   : > { %v3640_v40 = vrot.slane %v3638_v34, 4  ;;  %v4784_v0 = vunpack.c.l.b16 %v4643_v22  ;;  %v3665_v22 = vld [vmem:[%s6958_s10 + $0x40] sm:$0xff] }
 0x23e   : > { %v5446_v52 = vadd.f32 %v5372_v15, %v4952_v38  ;;  %v4647_v15 = vor.u32 %v4646_v49, %v7857_v8  ;;  %v6001_v38 = vrot.slane %v3488_v3, 9  ;;  %v3641_v8 = vrot.slane %v3490_v9, 5 }
 0x23f   : > { %v7860_v53 = vpop.f32.mrf.mxu1  ;;  %v4668_v49 = vshrl.u32 %v4334_v21, 16 }
 0x240   : > { %v5542_v25 = vmul.f32 0.1, %v5446_v52  ;;  %v4648_v5 = vrot.slane %v4647_v15, 4  ;;  %v3639_v2 = vsel %vm6877_vm15, %v6001_v38, %v3638_v34  ;;  %v3642_v15 = vsel %vm6877_vm15, %v3640_v40, %v3641_v8 }
 0x241   : > { %v4162_v60 = vpop.f32.mrf.mxu2  ;;  %v5377_v63 = vpop.f32.mrf.mxu0  ;;  %v4670_v6 = vrot.slane %v4668_v49, 4  ;;  %v3717_v39 = vunpack.c.l.b16 %v3639_v2  ;;  %v5055_v2 = vld [vmem:[#allocation2 + $0xc4] sm:$0xf] }
 0x242   : > { %v4235_v58 = vadd.f32 %v4162_v60, %v3884_v56  ;;  %v5574_v12 = vmax.f32 %v5446_v52, %v5542_v25  ;;  %v3664_v56 = vld [vmem:[%s6958_s10 + $0x38] sm:$0xff]  ;;  %v7894_v60 = vrot.slane %v4664_v24, 5 }
 0x243   : > { %v4880_v4 = vpop.f32.mrf.mxu3  ;;  %v3886_v20 = vadd.f32 %v7860_v53, %v3664_v56 }
 0x244   : > { %v4953_v37 = vadd.f32 %v4880_v4, %v4235_v58  ;;  %5606 = vst [vmem:[%s6958_s10 + $0x20] sm:$0xff] %v5574_v12  ;;  %6147 = vmatmul.msk.bf16.gmra.mxu0 %vm957_vm9, %v5297_v50  ;;  %v4660_v50 = vrot.slane %v4658_v47, 5  ;;  %v5201_v12 = vrot.slane %v5052_v19, 5  ;;  %v4671_v53 = vor.u32 %v4670_v6, %v7894_v60 }
 0x246   : > { %6097 = vmatmul.msk.bf16.gmra.mxu2 %vm957_vm9, %v6201_v28  ;;  %v5447_v1 = vadd.f32 %v5374_v62, %v4953_v37  ;;  %v4653_v62 = vsel %vm6860_vm12, %v4648_v5, %v4652_v41  ;;  %v4335_v28 = vld [vmem:[#allocation2 + $0xbc] sm:$0x1]  ;;  %v6202_v37 = vld [vmem:[#allocation2 + $0xa8] sm:$0xff]  ;;  %v3718_v5 = vunpack.c.l.b16 %v3642_v15  ;;  %v4661_v26 = vor.u32 %v4660_v50, %v4657_v48 }
 0x247   : > { %v7872_v18 = vpop.f32.mrf.mxu1  ;;  %v4785_v36 = vunpack.c.l.b16 %v4653_v62  ;;  %v4674_v35 = vshll.u32 %v4335_v28, 16  ;;  %v5203_v61 = vrot.slane %v5201_v12, 4 }
 0x248   : > { %6114 = vmatmul.msk.bf16.gmra.mxu3 %vm957_vm9, %v4803_v16  ;;  %v5543_v32 = vmul.f32 0.1, %v5447_v1  ;;  %v3736_v21 = vpack.c.b16 %v3718_v5, %v3717_v39  ;;  %v4662_v9 = vrot.slane %v4661_v26, 4  ;;  %v3887_v42 = vadd.f32 %v7872_v18, %v3665_v22 }
 0x249   : > { %v4165_v13 = vpop.f32.mrf.mxu2  ;;  %v5379_v57 = vpop.f32.mrf.mxu0  ;;  %v4804_v41 = vpack.c.b16 %v4785_v36, %v4784_v0  ;;  %v4676_v62 = vrot.slane %v4674_v35, 5  ;;  %v5205_v47 = vsel %vm6877_vm15, %v5203_v61, %v5204_v31  ;;  %v6203_v61 = vld [vmem:[#allocation2 + $0xb4] sm:$0xff] }
 0x24a   : > { %v4236_v43 = vadd.f32 %v4165_v13, %v3885_v11  ;;  %v5575_v27 = vmax.f32 %v5447_v1, %v5543_v32  ;;  %6017 = vmatmul.msk.bf16.gmra.mxu1 %vm957_vm9, %v3735_v29  ;;  %v3492_v1 = vld [vmem:[#allocation2 + $0xb8] sm:$0xf]  ;;  %v6132_v29 = vrot.slane %v5051_v30, 9  ;;  %v4336_v11 = vld [vmem:[#allocation2 + $0xc0] sm:$0xf]  ;;  %v4672_v13 = vrot.slane %v4671_v53, 4 }
 0x24b   : > { %v4883_v7 = vpop.f32.mrf.mxu3  ;;  %v4337_v32 = vld [vmem:[#allocation2 + $0xc4] sm:$0xf]  ;;  %v3645_v54 = vrot.slane %v3492_v1, 5  ;;  %v4679_v38 = vshrl.u32 %v4336_v11, 16  ;;  %v4682_v40 = vshll.u32 %v4336_v11, 16  ;;  %v5281_v56 = vunpack.c.l.b16 %v5205_v47 }
 0x24c   : > { %v4954_v52 = vadd.f32 %v4883_v7, %v4236_v43  ;;  %5607 = vst [vmem:[%s6958_s10 + $0x28] sm:$0xff] %v5575_v27  ;;  %v3491_v43 = vld [vmem:[#allocation2 + $0xb4] sm:$0xe]  ;;  %v3493_v27 = vld [vmem:[#allocation2 + $0xbc] sm:$0x1]  ;;  %v4688_v8 = vshll.u32 %v4337_v32, 16  ;;  %v4677_v48 = vsel %vm6860_vm12, %v4672_v13, %v4676_v62 }
 0x24d   : > { %v4692_v49 = vshrl.u32 %v4337_v32, 16  ;;  %v6002_v0 = vrot.slane %v3491_v43, 9  ;;  %v3647_v19 = vrot.slane %v3645_v54, 4  ;;  %v4681_v15 = vrot.slane %v4679_v38, 4  ;;  %v3495_v13 = vld [vmem:[#allocation2 + $0xc4] sm:$0xf] }
 0x24e   : > { %v5448_v44 = vadd.f32 %v5377_v63, %v4954_v52  ;;  %v5298_v63 = vpack.c.b16 %v5279_v59, %v5278_v55  ;;  %v4667_v59 = vsel %vm6860_vm12, %v4662_v9, %v7894_v60  ;;  %v4684_v6 = vrot.slane %v4682_v40, 5  ;;  %v5054_v60 = vld [vmem:[#allocation2 + $0xc0] sm:$0xe]  ;;  %v4339_v38 = vld [vmem:[#allocation2 + $0xcc] sm:$0xf] }
 0x24f   : > { %v7888_v25 = vpop.f32.mrf.mxu1  ;;  %v4786_v30 = vunpack.c.l.b16 %v4667_v59  ;;  %v3646_v14 = vsel %vm6877_vm15, %v6002_v0, %v3645_v54  ;;  %v4787_v5 = vunpack.c.l.b16 %v4677_v48  ;;  %v6133_v1 = vrot.slane %v5054_v60, 9 }
 0x250   : > { %v5544_v58 = vmul.f32 0.1, %v5448_v44  ;;  %v4685_v53 = vor.u32 %v4684_v6, %v4681_v15 }
 0x251   : > { %v4167_v51 = vpop.f32.mrf.mxu2  ;;  %v5382_v10 = vpop.f32.mrf.mxu0  ;;  %v4805_v9 = vpack.c.b16 %v4787_v5, %v4786_v30 }
 0x252   : > { %v4237_v4 = vadd.f32 %v4167_v51, %v3886_v20  ;;  %v5576_v16 = vmax.f32 %v5448_v44, %v5544_v58  ;;  %v3648_v44 = vrot.slane %v3493_v27, 5  ;;  %v7917_v20 = vrot.slane %v4688_v8, 5 }
 0x253   : > { %v4885_v23 = vpop.f32.mrf.mxu3  ;;  %v4694_v58 = vrot.slane %v4692_v49, 4  ;;  %v4686_v62 = vrot.slane %v4685_v53, 4 }
 0x254   : > { %v4955_v46 = vadd.f32 %v4885_v23, %v4237_v4  ;;  %5608 = vst [vmem:[%s6958_s10 + $0x30] sm:$0xff] %v5576_v16  ;;  %6148 = vmatmul.msk.bf16.gmra.mxu0 %vm957_vm9, %v5298_v63  ;;  %v4338_v63 = vld [vmem:[#allocation2 + $0xc8] sm:$0x1]  ;;  %v3649_v4 = vsel %vm6877_vm15, %v3647_v19, %v3648_v44  ;;  %v4340_v19 = vld [vmem:[#allocation2 + $0xd0] sm:$0xf] }
 0x255   : > { %v4695_v35 = vor.u32 %v4694_v58, %v7917_v20  ;;  %v4706_v58 = vshll.u32 %v4339_v38, 16 }
 0x256   : > { %6098 = vmatmul.msk.bf16.gmra.mxu2 %vm957_vm9, %v6202_v37  ;;  %v5449_v34 = vadd.f32 %v5379_v57, %v4955_v46  ;;  %v5202_v57 = vsel %vm6877_vm15, %v6132_v29, %v5201_v12  ;;  %v3666_v12 = vld [vmem:[%s6958_s10 + $0x48] sm:$0xff]  ;;  %v5208_v37 = vrot.slane %v5055_v2, 5  ;;  %v4698_v46 = vshll.u32 %v4338_v63, 16 }
 0x257   : > { %v7902_v3 = vpop.f32.mrf.mxu1  ;;  %v5280_v50 = vunpack.c.l.b16 %v5202_v57  ;;  %v3888_v16 = vadd.f32 %v7888_v25, %v3666_v12  ;;  %v4696_v54 = vrot.slane %v4695_v35, 4  ;;  %v3667_v57 = vld [vmem:[%s6958_s10 + $0x50] sm:$0xff]  ;;  %v4716_v63 = vshrl.u32 %v4340_v19, 16 }
 0x258   : > { %6115 = vmatmul.msk.bf16.gmra.mxu3 %vm957_vm9, %v4804_v41  ;;  %v5545_v45 = vmul.f32 0.1, %v5449_v34  ;;  %v5056_v41 = vld [vmem:[#allocation2 + $0xc8] sm:$0x1]  ;;  %v5210_v25 = vrot.slane %v5208_v37, 4  ;;  %v5209_v27 = vsel %vm6877_vm15, %v6133_v1, %v5208_v37  ;;  %v3889_v8 = vadd.f32 %v7902_v3, %v3667_v57  ;;  %v3668_v37 = vld [vmem:[%s6958_s10 + $0x58] sm:$0xff] }
 0x259   : > { %v4170_v24 = vpop.f32.mrf.mxu2  ;;  %v5384_v7 = vpop.f32.mrf.mxu0  ;;  %v5299_v23 = vpack.c.b16 %v5281_v56, %v5280_v50  ;;  %v5211_v32 = vrot.slane %v5056_v41, 5  ;;  %v5282_v44 = vunpack.c.l.b16 %v5209_v27  ;;  %v4703_v3 = vshrl.u32 %v4339_v38, 16  ;;  %v6204_v1 = vld [vmem:[#allocation2 + $0xc0] sm:$0xff]  ;;  %v3669_v38 = vld [vmem:[%s6958_s10 + $0x60] sm:$0xff] }
 0x25a   : > { %v4238_v52 = vadd.f32 %v4170_v24, %v3887_v42  ;;  %v5577_v18 = vmax.f32 %v5449_v34, %v5545_v45  ;;  %6018 = vmatmul.msk.bf16.gmra.mxu1 %vm957_vm9, %v3736_v21  ;;  %v3719_v34 = vunpack.c.l.b16 %v3646_v14  ;;  %v3720_v21 = vunpack.c.l.b16 %v3649_v4  ;;  %v5058_v4 = vld [vmem:[#allocation2 + $0xd0] sm:$0xf] }
 0x25b   : > { %v4888_v55 = vpop.f32.mrf.mxu3  ;;  %v4700_v42 = vrot.slane %v4698_v46, 5  ;;  %v3652_v24 = vrot.slane %v3495_v13, 5  ;;  %v5212_v40 = vsel %vm6877_vm15, %v5210_v25, %v5211_v32  ;;  %v4708_v41 = vrot.slane %v4706_v58, 5  ;;  %v4341_v25 = vld [vmem:[#allocation2 + $0xd4] sm:$0x1] }
 0x25c   : > { %v4956_v36 = vadd.f32 %v4888_v55, %v4238_v52  ;;  %5609 = vst [vmem:[%s6958_s10 + $0x38] sm:$0xff] %v5577_v18  ;;  %v3737_v43 = vpack.c.b16 %v3720_v21, %v3719_v34  ;;  %v3494_v52 = vld [vmem:[#allocation2 + $0xc0] sm:$0xe]  ;;  %v3496_v18 = vld [vmem:[#allocation2 + $0xc8] sm:$0x1]  ;;  %v4691_v55 = vsel %vm6860_vm12, %v4686_v62, %v7917_v20  ;;  %v5283_v50 = vunpack.c.l.b16 %v5212_v40 }
 0x25d   : > { %v4701_v59 = vsel %vm6860_vm12, %v4696_v54, %v4700_v42  ;;  %v6003_v2 = vrot.slane %v3494_v52, 9  ;;  %v3654_v15 = vrot.slane %v3652_v24, 4  ;;  %v3655_v6 = vrot.slane %v3496_v18, 5  ;;  %v5057_v32 = vld [vmem:[#allocation2 + $0xcc] sm:$0xe] }
 0x25e   : > { %v5450_v28 = vadd.f32 %v5382_v10, %v4956_v36  ;;  %v4788_v12 = vunpack.c.l.b16 %v4691_v55  ;;  %v4789_v30 = vunpack.c.l.b16 %v4701_v59  ;;  %v5300_v14 = vpack.c.b16 %v5283_v50, %v5282_v44 }
 0x25f   : > { %v7920_v51 = vpop.f32.mrf.mxu1  ;;  %v3656_v5 = vsel %vm6877_vm15, %v3654_v15, %v3655_v6  ;;  %v4722_v42 = vshll.u32 %v4341_v25, 16  ;;  %v3670_v6 = vld [vmem:[%s6958_s10 + $0x68] sm:$0xff] }
 0x260   : > { %v5546_v39 = vmul.f32 0.1, %v5450_v28  ;;  %v4806_v13 = vpack.c.b16 %v4789_v30, %v4788_v12 }
 0x261   : > { %v4172_v10 = vpop.f32.mrf.mxu2  ;;  %v5387_v26 = vpop.f32.mrf.mxu0  ;;  %v4724_v55 = vrot.slane %v4722_v42, 5  ;;  %v3673_v42 = vld [vmem:[%s6958_s10 + $0x80] sm:$0xff] }
 0x262   : > { %v4239_v29 = vadd.f32 %v4172_v10, %v3888_v16  ;;  %v5578_v31 = vmax.f32 %v5450_v28, %v5546_v39  ;;  %v4712_v28 = vshll.u32 %v4340_v19, 16  ;;  %v3653_v39 = vsel %vm6877_vm15, %v6003_v2, %v3652_v24 }
 0x263   : > { %v4890_v11 = vpop.f32.mrf.mxu3  ;;  %v3890_v10 = vadd.f32 %v7920_v51, %v3668_v37  ;;  %v3721_v21 = vunpack.c.l.b16 %v3653_v39 }
 0x264   : > { %v4957_v22 = vadd.f32 %v4890_v11, %v4239_v29  ;;  %5610 = vst [vmem:[%s6958_s10 + $0x40] sm:$0xff] %v5578_v31  ;;  %6149 = vmatmul.msk.bf16.gmra.mxu0 %vm957_vm9, %v5299_v23  ;;  %v4705_v23 = vrot.slane %v4703_v3, 4  ;;  %v4714_v35 = vrot.slane %v4712_v28, 5  ;;  %v3722_v11 = vunpack.c.l.b16 %v3656_v5 }
 0x266   : > { %6099 = vmatmul.msk.bf16.gmra.mxu2 %vm957_vm9, %v6203_v61  ;;  %v5451_v45 = vadd.f32 %v5384_v7, %v4957_v22  ;;  %v5215_v61 = vrot.slane %v5058_v4, 5  ;;  %v5059_v22 = vld [vmem:[#allocation2 + $0xd4] sm:$0x1]  ;;  %v4709_v51 = vor.u32 %v4708_v41, %v4705_v23  ;;  %v3738_v24 = vpack.c.b16 %v3722_v11, %v3721_v21  ;;  %v6205_v4 = vld [vmem:[#allocation2 + $0xcc] sm:$0xff] }
 0x267   : > { %v7934_v47 = vpop.f32.mrf.mxu1  ;;  %v5218_v27 = vrot.slane %v5059_v22, 5  ;;  %v3671_v23 = vld [vmem:[%s6958_s10 + $0x70] sm:$0xff] }
 0x268   : > { %6116 = vmatmul.msk.bf16.gmra.mxu3 %vm957_vm9, %v4805_v9  ;;  %v5547_v49 = vmul.f32 0.1, %v5451_v45  ;;  %v4710_v52 = vrot.slane %v4709_v51, 4 }
 0x269   : > { %v4175_v7 = vpop.f32.mrf.mxu2  ;;  %v5389_v0 = vpop.f32.mrf.mxu0 }
 0x26a   : > { %v4240_v36 = vadd.f32 %v4175_v7, %v3889_v8  ;;  %v5579_v48 = vmax.f32 %v5451_v45, %v5547_v49  ;;  %6019 = vmatmul.msk.bf16.gmra.mxu1 %vm957_vm9, %v3737_v43  ;;  %v6134_v45 = vrot.slane %v5057_v32, 9  ;;  %v5217_v43 = vrot.slane %v5215_v61, 4 }
 0x26b   : > { %v4893_v56 = vpop.f32.mrf.mxu3  ;;  %v3891_v8 = vadd.f32 %v7934_v47, %v3669_v38  ;;  %v4715_v3 = vsel %vm6860_vm12, %v4710_v52, %v4714_v35 }
 0x26c   : > { %v4958_v20 = vadd.f32 %v4893_v56, %v4240_v36  ;;  %5611 = vst [vmem:[%s6958_s10 + $0x48] sm:$0xff] %v5579_v48  ;;  %v5216_v19 = vsel %vm6877_vm15, %v6134_v45, %v5215_v61  ;;  %v4790_v58 = vunpack.c.l.b16 %v4715_v3 }
 0x26d   : > { %v5284_v50 = vunpack.c.l.b16 %v5216_v19 }
 0x26e   : > { %v5452_v60 = vadd.f32 %v5387_v26, %v4958_v20  ;;  %v4718_v26 = vrot.slane %v4716_v63, 4 }
 0x26f   : > { %v3831_v16 = vpop.f32.mrf.mxu1 }
 0x270   : > { %v5548_v53 = vmul.f32 0.1, %v5452_v60  ;;  %v4719_v54 = vor.u32 %v4718_v26, %v4714_v35  ;;  %v3892_v20 = vadd.f32 %v3831_v16, %v3670_v6 }
 0x271   : > { %v4177_v46 = vpop.f32.mrf.mxu2  ;;  %v5392_v29 = vpop.f32.mrf.mxu0 }
 0x272   : > { %v4241_v31 = vadd.f32 %v4177_v46, %v3890_v10  ;;  %v5580_v34 = vmax.f32 %v5452_v60, %v5548_v53  ;;  %v4720_v7 = vrot.slane %v4719_v54, 4 }
 0x273   : > { %v4895_v9 = vpop.f32.mrf.mxu3 }
 0x274   : > { %v4959_v62 = vadd.f32 %v4895_v9, %v4241_v31  ;;  %5612 = vst [vmem:[%s6958_s10 + $0x50] sm:$0xff] %v5580_v34  ;;  %6150 = vmatmul.msk.bf16.gmra.mxu0 %vm957_vm9, %v5300_v14  ;;  %v4725_v2 = vsel %vm6860_vm12, %v4720_v7, %v4724_v55  ;;  %v3672_v34 = vld [vmem:[%s6958_s10 + $0x78] sm:$0xff] }
 0x275   : > { %v4791_v63 = vunpack.c.l.b16 %v4725_v2 }
 0x276   : > { %6100 = vmatmul.msk.bf16.gmra.mxu2 %vm957_vm9, %v6204_v1  ;;  %v5453_v57 = vadd.f32 %v5389_v0, %v4959_v62  ;;  %v5219_v0 = vsel %vm6877_vm15, %v5217_v43, %v5218_v27 }
 0x277   : > { %v3834_v40 = vpop.f32.mrf.mxu1  ;;  %v5285_v56 = vunpack.c.l.b16 %v5219_v0  ;;  %v4807_v33 = vpack.c.b16 %v4791_v63, %v4790_v58 }
 0x278   : > { %6117 = vmatmul.msk.bf16.gmra.mxu3 %vm957_vm9, %v4806_v13  ;;  %v5549_v49 = vmul.f32 0.1, %v5453_v57  ;;  %v3893_v10 = vadd.f32 %v3834_v40, %v3671_v23 }
 0x279   : > { %v4180_v18 = vpop.f32.mrf.mxu2  ;;  %v5394_v59 = vpop.f32.mrf.mxu0  ;;  %v5301_v60 = vpack.c.b16 %v5285_v56, %v5284_v50  ;;  %v3675_v50 = vld [vmem:[%s6958_s10 + $0x90] sm:$0xff] }
 0x27a   : > { %v4242_v44 = vadd.f32 %v4180_v18, %v3891_v8  ;;  %v5581_v36 = vmax.f32 %v5453_v57, %v5549_v49  ;;  %6020 = vmatmul.msk.bf16.gmra.mxu1 %vm957_vm9, %v3738_v24  ;;  %v3674_v18 = vld [vmem:[%s6958_s10 + $0x88] sm:$0xff] }
 0x27b   : > { %v4898_v47 = vpop.f32.mrf.mxu3 }
 0x27c   : > { %v4960_v48 = vadd.f32 %v4898_v47, %v4242_v44  ;;  %5613 = vst [vmem:[%s6958_s10 + $0x58] sm:$0xff] %v5581_v36 }
 0x27e   : > { %v5454_v15 = vadd.f32 %v5392_v29, %v4960_v48 }
 0x27f   : > { %v3836_v17 = vpop.f32.mrf.mxu1 }
 0x280   : > { %v5550_v28 = vmul.f32 0.1, %v5454_v15  ;;  %v3894_v11 = vadd.f32 %v3836_v17, %v3672_v34 }
 0x281   : > { %v4182_v12 = vpop.f32.mrf.mxu2  ;;  %v5397_v30 = vpop.f32.mrf.mxu0 }
 0x282   : > { %v4243_v14 = vadd.f32 %v4182_v12, %v3892_v20  ;;  %v5582_v37 = vmax.f32 %v5454_v15, %v5550_v28  ;;  %v3676_v12 = vld [vmem:[%s6958_s10 + $0x98] sm:$0xff] }
 0x283   : > { %v4900_v39 = vpop.f32.mrf.mxu3 }
 0x284   : > { %v4961_v5 = vadd.f32 %v4900_v39, %v4243_v14  ;;  %5614 = vst [vmem:[%s6958_s10 + $0x60] sm:$0xff] %v5582_v37  ;;  %6151 = vmatmul.msk.bf16.gmra.mxu0 %vm957_vm9, %v5301_v60 }
 0x286   : > { %6101 = vmatmul.msk.bf16.gmra.mxu2 %vm957_vm9, %v6205_v4  ;;  %v5455_v16 = vadd.f32 %v5394_v59, %v4961_v5 }
 0x287   : > { %v3839_v41 = vpop.f32.mrf.mxu1 }
 0x288   : > { %6118 = vmatmul.msk.bf16.gmra.mxu3 %vm957_vm9, %v4807_v33  ;;  %v5551_v53 = vmul.f32 0.1, %v5455_v16  ;;  %v3895_v43 = vadd.f32 %v3839_v41, %v3673_v42 }
 0x289   : > { %v4185_v35 = vpop.f32.mrf.mxu2  ;;  %v5399_v26 = vpop.f32.mrf.mxu0 }
 0x28a   : > { %v4244_v46 = vadd.f32 %v4185_v35, %v3893_v10  ;;  %v5583_v1 = vmax.f32 %v5455_v16, %v5551_v53  ;;  %v3677_v10 = vld [vmem:[%s6958_s10 + $0xa0] sm:$0xff] }
 0x28b   : > { %v4903_v29 = vpop.f32.mrf.mxu3 }
 0x28c   : > { %v4962_v61 = vadd.f32 %v4903_v29, %v4244_v46  ;;  %5615 = vst [vmem:[%s6958_s10 + $0x68] sm:$0xff] %v5583_v1 }
 0x28e   : > { %v5456_v31 = vadd.f32 %v5397_v30, %v4962_v61 }
 0x28f   : > { %v3841_v21 = vpop.f32.mrf.mxu1 }
 0x290   : > { %v5552_v25 = vmul.f32 0.1, %v5456_v31  ;;  %v3896_v55 = vadd.f32 %v3841_v21, %v3674_v18 }
 0x291   : > { %v4187_v32 = vpop.f32.mrf.mxu2  ;;  %v5402_v22 = vpop.f32.mrf.mxu0 }
 0x292   : > { %v4245_v9 = vadd.f32 %v4187_v32, %v3894_v11  ;;  %v5584_v13 = vmax.f32 %v5456_v31, %v5552_v25  ;;  %v3678_v11 = vld [vmem:[%s6958_s10 + $0xa8] sm:$0xff] }
 0x293   : > { %v4905_v62 = vpop.f32.mrf.mxu3 }
 0x294   : > { %v4963_v51 = vadd.f32 %v4905_v62, %v4245_v9  ;;  %5616 = vst [vmem:[%s6958_s10 + $0x70] sm:$0xff] %v5584_v13 }
 0x296   : > { %v5457_v54 = vadd.f32 %v5399_v26, %v4963_v51 }
 0x297   : > { %v3844_v45 = vpop.f32.mrf.mxu1 }
 0x298   : > { %v5553_v27 = vmul.f32 0.1, %v5457_v54  ;;  %v3897_v2 = vadd.f32 %v3844_v45, %v3675_v50 }
 0x299   : > { %v4190_v57 = vpop.f32.mrf.mxu2  ;;  %v5404_v24 = vpop.f32.mrf.mxu0 }
 0x29a   : > { %v4246_v38 = vadd.f32 %v4190_v57, %v3895_v43  ;;  %v5585_v40 = vmax.f32 %v5457_v54, %v5553_v27  ;;  %v3679_v43 = vld [vmem:[%s6958_s10 + $0xb0] sm:$0xff] }
 0x29b   : > { %v4908_v8 = vpop.f32.mrf.mxu3 }
 0x29c   : > { %v4964_v49 = vadd.f32 %v4908_v8, %v4246_v38  ;;  %5617 = vst [vmem:[%s6958_s10 + $0x78] sm:$0xff] %v5585_v40 }
 0x29e   : > { %v5458_v52 = vadd.f32 %v5402_v22, %v4964_v49 }
 0x29f   : > { %v3846_v7 = vpop.f32.mrf.mxu1 }
 0x2a0   : > { %v5554_v59 = vmul.f32 0.1, %v5458_v52  ;;  %v3898_v14 = vadd.f32 %v3846_v7, %v3676_v12 }
 0x2a1   : > { %v4192_v19 = vpop.f32.mrf.mxu2  ;;  %v5407_v0 = vpop.f32.mrf.mxu0 }
 0x2a2   : > { %v4247_v44 = vadd.f32 %v4192_v19, %v3896_v55  ;;  %v5586_v36 = vmax.f32 %v5458_v52, %v5554_v59  ;;  %v3680_v55 = vld [vmem:[%s6958_s10 + $0xb8] sm:$0xff] }
 0x2a3   : > { %v4910_v47 = vpop.f32.mrf.mxu3 }
 0x2a4   : > { %v4965_v48 = vadd.f32 %v4910_v47, %v4247_v44  ;;  %5618 = vst [vmem:[%s6958_s10 + $0x80] sm:$0xff] %v5586_v36 }
 0x2a6   : > { %v5459_v3 = vadd.f32 %v5404_v24, %v4965_v48 }
 0x2a7   : > { %v3849_v56 = vpop.f32.mrf.mxu1 }
 0x2a8   : > { %v5555_v15 = vmul.f32 0.1, %v5459_v3  ;;  %v3899_v35 = vadd.f32 %v3849_v56, %v3677_v10 }
 0x2a9   : > { %v4195_v6 = vpop.f32.mrf.mxu2  ;;  %v5409_v17 = vpop.f32.mrf.mxu0 }
 0x2aa   : > { %v4248_v58 = vadd.f32 %v4195_v6, %v3897_v2  ;;  %v5587_v20 = vmax.f32 %v5459_v3, %v5555_v15  ;;  %v3681_v2 = vld [vmem:[%s6958_s10 + $0xc0] sm:$0xff] }
 0x2ab   : > { %v4913_v28 = vpop.f32.mrf.mxu3 }
 0x2ac   : > { %v4966_v63 = vadd.f32 %v4913_v28, %v4248_v58  ;;  %5619 = vst [vmem:[%s6958_s10 + $0x88] sm:$0xff] %v5587_v20 }
 0x2ae   : > { %v5460_v60 = vadd.f32 %v5407_v0, %v4966_v63 }
 0x2af   : > { %v3851_v30 = vpop.f32.mrf.mxu1 }
 0x2b0   : > { %v5556_v4 = vmul.f32 0.1, %v5460_v60  ;;  %v3900_v32 = vadd.f32 %v3851_v30, %v3678_v11 }
 0x2b1   : > { %v4197_v37 = vpop.f32.mrf.mxu2  ;;  %v5412_v39 = vpop.f32.mrf.mxu0 }
 0x2b2   : > { %v4249_v5 = vadd.f32 %v4197_v37, %v3898_v14  ;;  %v5588_v33 = vmax.f32 %v5460_v60, %v5556_v4  ;;  %v3682_v14 = vld [vmem:[%s6958_s10 + $0xc8] sm:$0xff] }
 0x2b3   : > { %v4915_v16 = vpop.f32.mrf.mxu3 }
 0x2b4   : > { %v4967_v23 = vadd.f32 %v4915_v16, %v4249_v5  ;;  %5620 = vst [vmem:[%s6958_s10 + $0x90] sm:$0xff] %v5588_v33 }
 0x2b6   : > { %v5461_v41 = vadd.f32 %v5409_v17, %v4967_v23 }
 0x2b7   : > { %v3854_v53 = vpop.f32.mrf.mxu1 }
 0x2b8   : > { %v5557_v26 = vmul.f32 0.1, %v5461_v41  ;;  %v3901_v57 = vadd.f32 %v3854_v53, %v3679_v43  ;;  %v3685_v43 = vld [vmem:[%s6958_s10 + $0xe0] sm:$0xff] }
 0x2b9   : > { %v4200_v46 = vpop.f32.mrf.mxu2  ;;  %v5414_v1 = vpop.f32.mrf.mxu0 }
 0x2ba   : > { %v4250_v29 = vadd.f32 %v4200_v46, %v3899_v35  ;;  %v5589_v61 = vmax.f32 %v5461_v41, %v5557_v26  ;;  %v3683_v35 = vld [vmem:[%s6958_s10 + $0xd0] sm:$0xff] }
 0x2bb   : > { %v4918_v31 = vpop.f32.mrf.mxu3 }
 0x2bc   : > { %v4968_v34 = vadd.f32 %v4918_v31, %v4250_v29  ;;  %5621 = vst [vmem:[%s6958_s10 + $0x98] sm:$0xff] %v5589_v61 }
 0x2be   : > { %v5462_v21 = vadd.f32 %v5412_v39, %v4968_v34 }
 0x2bf   : > { %v3856_v25 = vpop.f32.mrf.mxu1 }
 0x2c0   : > { %v5558_v22 = vmul.f32 0.1, %v5462_v21  ;;  %v3902_v59 = vadd.f32 %v3856_v25, %v3680_v55  ;;  %v3684_v25 = vld [vmem:[%s6958_s10 + $0xd8] sm:$0xff]  ;;  %v3686_v55 = vld [vmem:[%s6958_s10 + $0xe8] sm:$0xff] }
 0x2c1   : > { %v4202_v9 = vpop.f32.mrf.mxu2  ;;  %v5417_v13 = vpop.f32.mrf.mxu0 }
 0x2c2   : > { %v4251_v62 = vadd.f32 %v4202_v9, %v3900_v32  ;;  %v5590_v51 = vmax.f32 %v5462_v21, %v5558_v22 }
 0x2c3   : > { %v4920_v54 = vpop.f32.mrf.mxu3 }
 0x2c4   : > { %v4969_v42 = vadd.f32 %v4920_v54, %v4251_v62  ;;  %5622 = vst [vmem:[%s6958_s10 + $0xa0] sm:$0xff] %v5590_v51 }
 0x2c6   : > { %v5463_v45 = vadd.f32 %v5414_v1, %v4969_v42 }
 0x2c7   : > { %v3859_v27 = vpop.f32.mrf.mxu1 }
 0x2c8   : > { %v5559_v24 = vmul.f32 0.1, %v5463_v45  ;;  %v3903_v15 = vadd.f32 %v3859_v27, %v3681_v2  ;;  %v3687_v2 = vld [vmem:[%s6958_s10 + $0xf0] sm:$0xff] }
 0x2c9   : > { %v4205_v38 = vpop.f32.mrf.mxu2  ;;  %v5419_v40 = vpop.f32.mrf.mxu0 }
 0x2ca   : > { %v4252_v8 = vadd.f32 %v4205_v38, %v3901_v57  ;;  %v5591_v49 = vmax.f32 %v5463_v45, %v5559_v24 }
 0x2cb   : > { %v4923_v52 = vpop.f32.mrf.mxu3 }
 0x2cc   : > { %v4970_v18 = vadd.f32 %v4923_v52, %v4252_v8  ;;  %5623 = vst [vmem:[%s6958_s10 + $0xa8] sm:$0xff] %v5591_v49 }
 0x2ce   : > { %v5464_v7 = vadd.f32 %v5417_v13, %v4970_v18 }
 0x2cf   : > { %v3861_v0 = vpop.f32.mrf.mxu1 }
 0x2d0   : > { %v5560_v19 = vmul.f32 0.1, %v5464_v7  ;;  %v3904_v4 = vadd.f32 %v3861_v0, %v3682_v14  ;;  %v3688_v14 = vld [vmem:[%s6958_s10 + $0xf8] sm:$0xff] }
 0x2d1   : > { %v4207_v44 = vpop.f32.mrf.mxu2  ;;  %v5422_v36 = vpop.f32.mrf.mxu0 }
 0x2d2   : > { %v4253_v47 = vadd.f32 %v4207_v44, %v3902_v59  ;;  %v5592_v48 = vmax.f32 %v5464_v7, %v5560_v19 }
 0x2d3   : > { %v4925_v3 = vpop.f32.mrf.mxu3 }
 0x2d4   : > { %v4971_v50 = vadd.f32 %v4925_v3, %v4253_v47  ;;  %5624 = vst [vmem:[%s6958_s10 + $0xb0] sm:$0xff] %v5592_v48 }
 0x2d6   : > { %v5465_v56 = vadd.f32 %v5419_v40, %v4971_v50 }
 0x2d7   : > { %v3864_v60 = vpop.f32.mrf.mxu1 }
 0x2d8   : > { %v5561_v6 = vmul.f32 0.1, %v5465_v56  ;;  %v3905_v26 = vadd.f32 %v3864_v60, %v3683_v35 }
 0x2d9   : > { %v4210_v17 = vpop.f32.mrf.mxu2  ;;  %v5424_v58 = vpop.f32.mrf.mxu0 }
 0x2da   : > { %v4254_v20 = vadd.f32 %v4210_v17, %v3903_v15  ;;  %v5593_v28 = vmax.f32 %v5465_v56, %v5561_v6 }
 0x2db   : > { %v4928_v63 = vpop.f32.mrf.mxu3 }
 0x2dc   : > { %v4972_v12 = vadd.f32 %v4928_v63, %v4254_v20  ;;  %5625 = vst [vmem:[%s6958_s10 + $0xb8] sm:$0xff] %v5593_v28 }
 0x2de   : > { %v5466_v30 = vadd.f32 %v5422_v36, %v4972_v12 }
 0x2df   : > { %v3866_v10 = vpop.f32.mrf.mxu1 }
 0x2e0   : > { %v5562_v37 = vmul.f32 0.1, %v5466_v30  ;;  %v3906_v22 = vadd.f32 %v3866_v10, %v3684_v25 }
 0x2e1   : > { %v4212_v39 = vpop.f32.mrf.mxu2  ;;  %v5427_v23 = vpop.f32.mrf.mxu0 }
 0x2e2   : > { %v4255_v5 = vadd.f32 %v4212_v39, %v3904_v4  ;;  %v5594_v33 = vmax.f32 %v5466_v30, %v5562_v37 }
 0x2e3   : > { %v4930_v16 = vpop.f32.mrf.mxu3 }
 0x2e4   : > { %v4973_v41 = vadd.f32 %v4930_v16, %v4255_v5  ;;  %5626 = vst [vmem:[%s6958_s10 + $0xc0] sm:$0xff] %v5594_v33 }
 0x2e6   : > { %v5467_v53 = vadd.f32 %v5424_v58, %v4973_v41 }
 0x2e7   : > { %v3869_v32 = vpop.f32.mrf.mxu1 }
 0x2e8   : > { %v5563_v46 = vmul.f32 0.1, %v5467_v53  ;;  %v3907_v57 = vadd.f32 %v3869_v32, %v3685_v43 }
 0x2e9   : > { %v4215_v1 = vpop.f32.mrf.mxu2  ;;  %v5429_v21 = vpop.f32.mrf.mxu0 }
 0x2ea   : > { %v4256_v29 = vadd.f32 %v4215_v1, %v3905_v26  ;;  %v5595_v61 = vmax.f32 %v5467_v53, %v5563_v46 }
 0x2eb   : > { %v4933_v31 = vpop.f32.mrf.mxu3 }
 0x2ec   : > { %v4974_v34 = vadd.f32 %v4933_v31, %v4256_v29  ;;  %5627 = vst [vmem:[%s6958_s10 + $0xc8] sm:$0xff] %v5595_v61 }
 0x2ee   : > { %v5468_v11 = vadd.f32 %v5427_v23, %v4974_v34 }
 0x2ef   : > { %v3871_v40 = vpop.f32.mrf.mxu1 }
 0x2f0   : > { %v5564_v9 = vmul.f32 0.1, %v5468_v11  ;;  %v3908_v59 = vadd.f32 %v3871_v40, %v3686_v55 }
 0x2f1   : > { %v4217_v13 = vpop.f32.mrf.mxu2  ;;  %v5432_v27 = vpop.f32.mrf.mxu0 }
 0x2f2   : > { %v4257_v62 = vadd.f32 %v4217_v13, %v3906_v22  ;;  %v5596_v51 = vmax.f32 %v5468_v11, %v5564_v9 }
 0x2f3   : > { %v4935_v54 = vpop.f32.mrf.mxu3 }
 0x2f4   : > { %v4975_v42 = vadd.f32 %v4935_v54, %v4257_v62  ;;  %5628 = vst [vmem:[%s6958_s10 + $0xd0] sm:$0xff] %v5596_v51 }
 0x2f6   : > { %v5469_v45 = vadd.f32 %v5429_v21, %v4975_v42 }
 0x2f7   : > { %v3874_v48 = vpop.f32.mrf.mxu1 }
 0x2f8   : > { %v5565_v24 = vmul.f32 0.1, %v5469_v45  ;;  %v3909_v15 = vadd.f32 %v3874_v48, %v3687_v2 }
 0x2f9   : > { %v4220_v38 = vpop.f32.mrf.mxu2  ;;  %v5434_v44 = vpop.f32.mrf.mxu0 }
 0x2fa   : > { %v4258_v8 = vadd.f32 %v4220_v38, %v3907_v57  ;;  %v5597_v49 = vmax.f32 %v5469_v45, %v5565_v24 }
 0x2fb   : > { %v4938_v52 = vpop.f32.mrf.mxu3 }
 0x2fc   : > { %v4976_v18 = vadd.f32 %v4938_v52, %v4258_v8  ;;  %5629 = vst [vmem:[%s6958_s10 + $0xd8] sm:$0xff] %v5597_v49 }
 0x2fe   : > { %v5470_v7 = vadd.f32 %v5432_v27, %v4976_v18 }
 0x2ff   : > { %v3876_v12 = vpop.f32.mrf.mxu1 }
 0x300   : > { %v5566_v19 = vmul.f32 0.1, %v5470_v7  ;;  %v3910_v4 = vadd.f32 %v3876_v12, %v3688_v14 }
 0x301   : > { %v4222_v0 = vpop.f32.mrf.mxu2  ;;  %v5437_v63 = vpop.f32.mrf.mxu0 }
 0x302   : > { %v4259_v36 = vadd.f32 %v4222_v0, %v3908_v59  ;;  %v5598_v47 = vmax.f32 %v5470_v7, %v5566_v19 }
 0x303   : > { %v4940_v3 = vpop.f32.mrf.mxu3 }
 0x304   : > { %v4977_v50 = vadd.f32 %v4940_v3, %v4259_v36  ;;  %5630 = vst [vmem:[%s6958_s10 + $0xe0] sm:$0xff] %v5598_v47 }
 0x306   : > { %v5471_v56 = vadd.f32 %v5434_v44, %v4977_v50 }
 0x308   : > { %v5567_v6 = vmul.f32 0.1, %v5471_v56 }
 0x309   : > { %v4225_v17 = vpop.f32.mrf.mxu2  ;;  %v5439_v41 = vpop.f32.mrf.mxu0 }
 0x30a   : > { %v4260_v58 = vadd.f32 %v4225_v17, %v3909_v15  ;;  %v5599_v20 = vmax.f32 %v5471_v56, %v5567_v6 }
 0x30b   : > { %v4943_v28 = vpop.f32.mrf.mxu3 }
 0x30c   : > { %v4978_v60 = vadd.f32 %v4943_v28, %v4260_v58  ;;  %5631 = vst [vmem:[%s6958_s10 + $0xe8] sm:$0xff] %v5599_v20 }
 0x30e   : > { %v5472_v30 = vadd.f32 %v5437_v63, %v4978_v60 }
 0x310   : > { %v5568_v37 = vmul.f32 0.1, %v5472_v30 }
 0x311   : > { %v4227_v39 = vpop.f32.mrf.mxu2 }
 0x312   : > { %v4261_v5 = vadd.f32 %v4227_v39, %v3910_v4  ;;  %v5600_v33 = vmax.f32 %v5472_v30, %v5568_v37 }
 0x313   : > { %v4945_v16 = vpop.f32.mrf.mxu3 }
 0x314   : > { %v4979_v23 = vadd.f32 %v4945_v16, %v4261_v5  ;;  %5632 = vst [vmem:[%s6958_s10 + $0xf0] sm:$0xff] %v5600_v33 }
 0x316   : > { %v5473_v10 = vadd.f32 %v5439_v41, %v4979_v23 }
 0x318   : > { %v5569_v53 = vmul.f32 0.1, %v5473_v10 }
 0x31a   : > { %v5601_v35 = vmax.f32 %v5473_v10, %v5569_v53 }
 0x31c   : > { %5633 = vst [vmem:[%s6958_s10 + $0xf8] sm:$0xff] %v5601_v35 }
 0x31d   : > { %6297 = shalt.err (!%p6294_p5)
}
 0x31e   : > { %s6351_s6 = smov 128   ;;  %s6352_s10 = smov 8  }
 0x31f   : > { %6210 = dma.vmem_to_hbm [thread:$0]  (%p6413_p4), %s5649_s26, 4096, %s5651_s27, %s5635_s15, %s6351_s6, %s6351_s6, %s6352_s10  }
 0x320 PF: > { %p6216_p6 = scmp.ge.s32.totalorder %s6348_s17, 2  ;;  %s5665_s11 = sand.u32 1, %s6328_s12  }
 0x321   : > { %s5666_s18 = scalar_lea.sflag [#allocation4], %s5665_s11 }
 0x322   : > { %p6213_p7 = pnand %p6216_p6, %p6420_p8 }
 0x324   : > { %p6214_p9 = pneg %p6213_p7 }
 0x326   : > { %6323 = dma.done.wait (%p6214_p9), %s5666_s18, 4096  }
 0x327   : > { %6325 = vsyncadd (%p6214_p9), %s5666_s18, 4294963200  ;;  %s16_s17 = sadd.s32 1, %s6348_s17   ;;  %s8066_s12 = smov %s6332_s13 }
 0x328   : > { %p13_p10 = scmp.ge.s32.totalorder %s16_s17, 4   ;;  %s8067_s13 = smov %s6336_s14 }
 0x329   : > { %s8068_s14 = smov %s6426_s25  ;;  %s8069_s15 = smov %s6344_s16 }
 0x32a   : > { %s8070_s16 = smov %s8072_s20  ;;  %15 = sbr.rel (!%p13_p10) target bundleno = 4 (0x4), region = 83 }
 0x32f   :  { %5672 = vsyncpa [#allocation4], 1 }
 0x330   :  { %5674 = vsyncpa [#allocation4 + $0x1], 1 }

</bundles_post_ra>
